<compile_context>
chip_gen: v6e
topology: v6e:2x2x1
jax: 0.10.0
libtpu: 0.0.40
codegen_flags: <defaults>
</compile_context>

<pallas_src>
import functools

import jax
import jax.numpy as jnp
from jax.experimental import pallas as pl
from jax.experimental.pallas import tpu as pltpu

EPS = 1e-5


def _bn_relu_from_stats(h, ssum, ssq, inv_n, g, be):
    """Training-mode BN (+ReLU) from accumulated sum / sum-of-squares."""
    mu = ssum * inv_n
    var = ssq * inv_n - mu * mu            # biased variance, E[x^2] - E[x]^2
    s = g * jax.lax.rsqrt(var + EPS)
    t = be - mu * s
    return jnp.maximum(h * s + t, 0.0)


def _bn_relu_direct(h, g, be):
    """Training-mode BN (+ReLU) with stats computed in place (tiny FC head)."""
    mu = jnp.mean(h, axis=0, keepdims=True)
    var = jnp.mean(jnp.square(h - mu), axis=0, keepdims=True)
    return jnp.maximum((h - mu) * jax.lax.rsqrt(var + EPS) * g + be, 0.0)


def stn3d_kernel(
    # inputs ----------------------------------------------------------------
    x_ref,                                    # (TB*N, 3) row tile of points
    w1_ref, b1_ref, g1_ref, be1_ref,          # conv1: 3 -> 64      (f32)
    w2_ref, b2_ref, g2_ref, be2_ref,          # conv2: 64 -> 128    (w2 bf16)
    w3_ref, b3_ref, g3_ref, be3_ref,          # conv3: 128 -> 1024  (w3 bf16)
    wf1_ref, bf1_ref, g4_ref, be4_ref,        # fc1: 1024 -> 512
    wf2_ref, bf2_ref, g5_ref, be5_ref,        # fc2: 512 -> 256
    wf3_ref, bf3_ref,                         # fc3: 256 -> 9
    iden_ref,                                 # (1, 9) flattened identity
    # outputs ---------------------------------------------------------------
    out_ref,                                  # (B, 9)
    # scratch (persists across grid steps) ------------------------------------
    sum1, sq1, sum2, sq2, sum3, sq3,          # BN running sum / sum-of-squares
    hmax, hmin,                               # (B, 1024) pre-BN3 per-batch extrema
    *, B, N, TB,
):
    p = pl.program_id(0)                      # pass: 0=BN1 stats, 1=BN2, 2=BN3+head
    bt = pl.program_id(1)                     # batch-tile index
    nbt = pl.num_programs(1)
    inv_rows = 1.0 / float(B * N)             # BN1-3 stats are over all B*N points

    @pl.when(jnp.logical_and(p == 0, bt == 0))
    def _init():
        sum1[...] = jnp.zeros_like(sum1)
        sq1[...] = jnp.zeros_like(sq1)
        sum2[...] = jnp.zeros_like(sum2)
        sq2[...] = jnp.zeros_like(sq2)
        sum3[...] = jnp.zeros_like(sum3)
        sq3[...] = jnp.zeros_like(sq3)

    # conv1 (3 -> 64): contraction depth 3 would waste an MXU pass, so do it
    # on the VPU as three broadcast multiply-adds.
    x = x_ref[...]                                            # (TB*N, 3) f32
    w1 = w1_ref[...]
    h1 = (x[:, 0:1] * w1[0:1, :]
          + x[:, 1:2] * w1[1:2, :]
          + x[:, 2:3] * w1[2:3, :]
          + b1_ref[...])                                      # (TB*N, 64) f32

    @pl.when(p == 0)
    def _stats_bn1():
        sum1[...] += jnp.sum(h1, axis=0, keepdims=True)
        sq1[...] += jnp.sum(h1 * h1, axis=0, keepdims=True)

    @pl.when(p >= 1)
    def _later_passes():
        a1 = _bn_relu_from_stats(h1, sum1[...], sq1[...], inv_rows,
                                 g1_ref[...], be1_ref[...])
        # conv2 (64 -> 128): MXU, bf16 operands, f32 accumulation.
        h2 = jnp.dot(a1.astype(w2_ref.dtype), w2_ref[...],
                     preferred_element_type=jnp.float32) + b2_ref[...]

        @pl.when(p == 1)
        def _stats_bn2():
            sum2[...] += jnp.sum(h2, axis=0, keepdims=True)
            sq2[...] += jnp.sum(h2 * h2, axis=0, keepdims=True)

        @pl.when(p == 2)
        def _stats_bn3_and_head():
            a2 = _bn_relu_from_stats(h2, sum2[...], sq2[...], inv_rows,
                                     g2_ref[...], be2_ref[...])
            # conv3 (128 -> 1024): MXU, bf16 operands, f32 accumulation.
            h3 = jnp.dot(a2.astype(w3_ref.dtype), w3_ref[...],
                         preferred_element_type=jnp.float32) + b3_ref[...]
            sum3[...] += jnp.sum(h3, axis=0, keepdims=True)
            sq3[...] += jnp.sum(h3 * h3, axis=0, keepdims=True)

            # Per-batch-element max/min of the *pre-BN* conv3 activations.
            # BN3 (per-channel affine) + ReLU are monotone, so the pooled
            # features can be reconstructed once the full-batch stats exist.
            if N % 8 == 0:
                # Layout-preserving split of the row axis (N sublane-aligned):
                # one XLU cross-sublane reduce + one aligned (TB, 1024) store.
                h3b = h3.reshape(TB, N, h3.shape[-1])
                row0 = pl.multiple_of(bt * TB, TB)
                hmax[pl.ds(row0, TB), :] = jnp.max(h3b, axis=1)
                hmin[pl.ds(row0, TB), :] = jnp.min(h3b, axis=1)
            else:
                # TODO(synk): fallback for sublane-unaligned N; per-element
                # unroll (TB is small by construction).
                for j in range(TB):
                    seg = h3[j * N:(j + 1) * N, :]
                    row = bt * TB + j
                    hmax[pl.ds(row, 1), :] = jnp.max(seg, axis=0, keepdims=True)
                    hmin[pl.ds(row, 1), :] = jnp.min(seg, axis=0, keepdims=True)

            # Final grid step: BN3 stats + pooled extrema are complete.
            @pl.when(bt == nbt - 1)
            def _head():
                mu3 = sum3[...] * inv_rows
                var3 = sq3[...] * inv_rows - mu3 * mu3
                s3 = g3_ref[...] * jax.lax.rsqrt(var3 + EPS)
                t3 = be3_ref[...] - mu3 * s3
                pooled = jnp.maximum(
                    jnp.where(s3 >= 0.0,
                              hmax[...] * s3 + t3,
                              hmin[...] * s3 + t3),
                    0.0)                                       # (B, 1024)

                f = jnp.dot(pooled, wf1_ref[...],
                            preferred_element_type=jnp.float32) + bf1_ref[...]
                f = _bn_relu_direct(f, g4_ref[...], be4_ref[...])   # (B, 512)
                f = jnp.dot(f, wf2_ref[...],
                            preferred_element_type=jnp.float32) + bf2_ref[...]
                f = _bn_relu_direct(f, g5_ref[...], be5_ref[...])   # (B, 256)
                out = jnp.dot(f, wf3_ref[...],
                              preferred_element_type=jnp.float32) + bf3_ref[...]
                out_ref[...] = out + iden_ref[...]                  # (B, 9)


def stn3d_forward(x_ncw, params, *, tile_b=None):
    """x_ncw: (B, 3, N) float32 (PyTorch NCW layout).  Returns (B, 3, 3)."""
    B, C, N = x_ncw.shape
    assert C == 3, "STN3D expects 3 input channels"
    x_pts = jnp.transpose(x_ncw, (0, 2, 1)).reshape(B * N, 3).astype(jnp.float32)

    if tile_b is None:
        # Largest batch-divisor whose row tile stays <= ~2048 points (sized
        # against v7x's 64 MiB VMEM with headroom; v5e/v6e have plenty of slack).
        candidates = [d for d in range(1, B + 1)
                      if B % d == 0 and (d == B or (d * N) % 8 == 0)]
        fitting = [d for d in candidates if d * N <= 2048]
        tile_b = max(fitting) if fitting else min(candidates)
    assert B % tile_b == 0
    # TODO(synk): pad the last row tile to support N not sublane (8) aligned
    # when tile_b < B.
    assert tile_b == B or (tile_b * N) % 8 == 0
    num_tiles = B // tile_b
    rows = tile_b * N

    inputs = (x_pts,) + tuple(params)

    def resident(a):
        # Full-array block with a constant index map: stays in VMEM across the
        # whole grid (no re-DMA of weights / BN params per row tile).
        return pl.BlockSpec(a.shape, lambda p, b: (0, 0))

    in_specs = [pl.BlockSpec((rows, 3), lambda p, b: (b, 0))]
    in_specs += [resident(a) for a in params]
    out_specs = pl.BlockSpec((B, 9), lambda p, b: (0, 0))

    out = pl.pallas_call(
        functools.partial(stn3d_kernel, B=B, N=N, TB=tile_b),
        out_shape=jax.ShapeDtypeStruct((B, 9), jnp.float32),
        grid=(3, num_tiles),                       # (pass, batch-tile)
        in_specs=in_specs,
        out_specs=out_specs,
        scratch_shapes=[
            pltpu.VMEM((1, 64), jnp.float32),      # sum1
            pltpu.VMEM((1, 64), jnp.float32),      # sq1
            pltpu.VMEM((1, 128), jnp.float32),     # sum2
            pltpu.VMEM((1, 128), jnp.float32),     # sq2
            pltpu.VMEM((1, 1024), jnp.float32),    # sum3
            pltpu.VMEM((1, 1024), jnp.float32),    # sq3
            pltpu.VMEM((B, 1024), jnp.float32),    # hmax (pre-BN3, per batch)
            pltpu.VMEM((B, 1024), jnp.float32),    # hmin (pre-BN3, per batch)
        ],
        compiler_params=pltpu.CompilerParams(
            # Both grid axes carry accumulator state -> must stay sequential.
            dimension_semantics=("arbitrary", "arbitrary"),
            vmem_limit_bytes=48 * 1024 * 1024,
        ),
    )(*inputs)
    return out.reshape(B, 3, 3)


def init_params(key):
    """Deterministic synthetic parameters matching STN3D's __init__ shapes.

    Weights are stored transposed, i.e. (in, out), ready for row-major matmul.
    conv2 / conv3 weights are kept in bf16 (MXU operands); accumulation and all
    BN math stay in f32.
    """
    dims = [(3, 64), (64, 128), (128, 1024), (1024, 512), (512, 256), (256, 9)]
    keys = jax.random.split(key, 2 * len(dims))
    raw = []
    for li, (cin, cout) in enumerate(dims):
        w = 0.05 * jax.random.normal(keys[2 * li], (cin, cout), jnp.float32)
        b = 0.01 * jax.random.normal(keys[2 * li + 1], (1, cout), jnp.float32)
        raw.append((w, b))

    def bn(c):
        return jnp.ones((1, c), jnp.float32), jnp.zeros((1, c), jnp.float32)

    (w1, b1), (w2, b2), (w3, b3), (wf1, bf1), (wf2, bf2), (wf3, bf3) = raw
    w2 = w2.astype(jnp.bfloat16)
    w3 = w3.astype(jnp.bfloat16)
    g1, be1 = bn(64)
    g2, be2 = bn(128)
    g3, be3 = bn(1024)
    g4, be4 = bn(512)
    g5, be5 = bn(256)

    iden = jnp.array([[1, 0, 0, 0, 1, 0, 0, 0, 1]], dtype=jnp.float32)  # (1, 9)

    return (w1, b1, g1, be1,
            w2, b2, g2, be2,
            w3, b3, g3, be3,
            wf1, bf1, g4, be4,
            wf2, bf2, g5, be5,
            wf3, bf3,
            iden)


def stn3d_reference(x_ncw, params):
    """Pure-JAX reference with identical semantics (same mixed-precision policy)."""
    (w1, b1, g1, be1,
     w2, b2, g2, be2,
     w3, b3, g3, be3,
     wf1, bf1, g4, be4,
     wf2, bf2, g5, be5,
     wf3, bf3, iden) = params
    B, _, N = x_ncw.shape
    h = jnp.transpose(x_ncw, (0, 2, 1)).reshape(B * N, 3)

    def bn_relu(h, g, be):
        mu = jnp.mean(h, axis=0, keepdims=True)
        var = jnp.mean((h - mu) ** 2, axis=0, keepdims=True)
        return jnp.maximum((h - mu) / jnp.sqrt(var + EPS) * g + be, 0.0)

    h = bn_relu(h @ w1 + b1, g1, be1)
    h = bn_relu(jnp.dot(h.astype(w2.dtype), w2,
                        preferred_element_type=jnp.float32) + b2, g2, be2)
    h = bn_relu(jnp.dot(h.astype(w3.dtype), w3,
                        preferred_element_type=jnp.float32) + b3, g3, be3)
    pooled = jnp.max(h.reshape(B, N, -1), axis=1)
    f = bn_relu(pooled @ wf1 + bf1, g4, be4)
    f = bn_relu(f @ wf2 + bf2, g5, be5)
    out = f @ wf3 + bf3 + iden
    return out.reshape(B, 3, 3)


if __name__ == "__main__":
    key = jax.random.PRNGKey(0)
    k_x, k_p = jax.random.split(key)
    params = init_params(k_p)

    # Config 1: single row tile (tile covers the whole batch).
    B1, N1 = 2, 16
    x1 = jax.random.normal(k_x, (B1, 3, N1), jnp.float32)     # PyTorch NCW layout
    out1 = jax.block_until_ready(stn3d_forward(x1, params))
    ref1 = stn3d_reference(x1, params)
    assert out1.shape == (B1, 3, 3)
    err1 = jnp.max(jnp.abs(out1 - ref1))
    assert jnp.allclose(out1, ref1, atol=5e-4, rtol=5e-4), f"mismatch(1): {err1}"

    # Config 2: multiple row tiles -> exercises cross-tile BN-stat accumulation
    # and the per-batch max-pool scratch.
    B2, N2 = 4, 64
    x2 = jax.random.normal(jax.random.fold_in(k_x, 1), (B2, 3, N2), jnp.float32)
    out2 = jax.block_until_ready(stn3d_forward(x2, params, tile_b=1))
    ref2 = stn3d_reference(x2, params)
    assert out2.shape == (B2, 3, 3)
    err2 = jnp.max(jnp.abs(out2 - ref2))
    assert jnp.allclose(out2, ref2, atol=5e-4, rtol=5e-4), f"mismatch(2): {err2}"

    print("KERNEL_OK")
</pallas_src>

<mosaic_0001>
module attributes {stable_mosaic.version = 11 : i64} {
  func.func @stn3d_kernel(%arg0: i32, %arg1: i32, %arg2: memref<32x3xf32, #tpu.memory_space<vmem>>, %arg3: memref<3x64xf32, #tpu.memory_space<vmem>>, %arg4: memref<1x64xf32, #tpu.memory_space<vmem>>, %arg5: memref<1x64xf32, #tpu.memory_space<vmem>>, %arg6: memref<1x64xf32, #tpu.memory_space<vmem>>, %arg7: memref<64x128xbf16, #tpu.memory_space<vmem>>, %arg8: memref<1x128xf32, #tpu.memory_space<vmem>>, %arg9: memref<1x128xf32, #tpu.memory_space<vmem>>, %arg10: memref<1x128xf32, #tpu.memory_space<vmem>>, %arg11: memref<128x1024xbf16, #tpu.memory_space<vmem>>, %arg12: memref<1x1024xf32, #tpu.memory_space<vmem>>, %arg13: memref<1x1024xf32, #tpu.memory_space<vmem>>, %arg14: memref<1x1024xf32, #tpu.memory_space<vmem>>, %arg15: memref<1024x512xf32, #tpu.memory_space<vmem>>, %arg16: memref<1x512xf32, #tpu.memory_space<vmem>>, %arg17: memref<1x512xf32, #tpu.memory_space<vmem>>, %arg18: memref<1x512xf32, #tpu.memory_space<vmem>>, %arg19: memref<512x256xf32, #tpu.memory_space<vmem>>, %arg20: memref<1x256xf32, #tpu.memory_space<vmem>>, %arg21: memref<1x256xf32, #tpu.memory_space<vmem>>, %arg22: memref<1x256xf32, #tpu.memory_space<vmem>>, %arg23: memref<256x9xf32, #tpu.memory_space<vmem>>, %arg24: memref<1x9xf32, #tpu.memory_space<vmem>>, %arg25: memref<1x9xf32, #tpu.memory_space<vmem>>, %arg26: memref<2x9xf32, #tpu.memory_space<vmem>>, %arg27: memref<1x64xf32, #tpu.memory_space<vmem>>, %arg28: memref<1x64xf32, #tpu.memory_space<vmem>>, %arg29: memref<1x128xf32, #tpu.memory_space<vmem>>, %arg30: memref<1x128xf32, #tpu.memory_space<vmem>>, %arg31: memref<1x1024xf32, #tpu.memory_space<vmem>>, %arg32: memref<1x1024xf32, #tpu.memory_space<vmem>>, %arg33: memref<2x1024xf32, #tpu.memory_space<vmem>>, %arg34: memref<2x1024xf32, #tpu.memory_space<vmem>>) attributes {dimension_semantics = [#tpu.dimension_semantics<arbitrary>, #tpu.dimension_semantics<arbitrary>], iteration_bounds = array<i64: 3, 1>, scalar_prefetch = 0 : i64, scratch_operands = 8 : i64, tpu.core_type = #tpu.core_type<tc>, window_params = [{transform_indices = @transform_0, window_bounds = array<i64: 32, 3>}, {pipeline_mode = #tpu.pipeline_mode<synchronous>, transform_indices = @transform_1, window_bounds = array<i64: 3, 64>}, {pipeline_mode = #tpu.pipeline_mode<synchronous>, transform_indices = @transform_2, window_bounds = array<i64: 1, 64>}, {pipeline_mode = #tpu.pipeline_mode<synchronous>, transform_indices = @transform_3, window_bounds = array<i64: 1, 64>}, {pipeline_mode = #tpu.pipeline_mode<synchronous>, transform_indices = @transform_4, window_bounds = array<i64: 1, 64>}, {pipeline_mode = #tpu.pipeline_mode<synchronous>, transform_indices = @transform_5, window_bounds = array<i64: 64, 128>}, {pipeline_mode = #tpu.pipeline_mode<synchronous>, transform_indices = @transform_6, window_bounds = array<i64: 1, 128>}, {pipeline_mode = #tpu.pipeline_mode<synchronous>, transform_indices = @transform_7, window_bounds = array<i64: 1, 128>}, {pipeline_mode = #tpu.pipeline_mode<synchronous>, transform_indices = @transform_8, window_bounds = array<i64: 1, 128>}, {pipeline_mode = #tpu.pipeline_mode<synchronous>, transform_indices = @transform_9, window_bounds = array<i64: 128, 1024>}, {pipeline_mode = #tpu.pipeline_mode<synchronous>, transform_indices = @transform_10, window_bounds = array<i64: 1, 1024>}, {pipeline_mode = #tpu.pipeline_mode<synchronous>, transform_indices = @transform_11, window_bounds = array<i64: 1, 1024>}, {pipeline_mode = #tpu.pipeline_mode<synchronous>, transform_indices = @transform_12, window_bounds = array<i64: 1, 1024>}, {pipeline_mode = #tpu.pipeline_mode<synchronous>, transform_indices = @transform_13, window_bounds = array<i64: 1024, 512>}, {pipeline_mode = #tpu.pipeline_mode<synchronous>, transform_indices = @transform_14, window_bounds = array<i64: 1, 512>}, {pipeline_mode = #tpu.pipeline_mode<synchronous>, transform_indices = @transform_15, window_bounds = array<i64: 1, 512>}, {pipeline_mode = #tpu.pipeline_mode<synchronous>, transform_indices = @transform_16, window_bounds = array<i64: 1, 512>}, {pipeline_mode = #tpu.pipeline_mode<synchronous>, transform_indices = @transform_17, window_bounds = array<i64: 512, 256>}, {pipeline_mode = #tpu.pipeline_mode<synchronous>, transform_indices = @transform_18, window_bounds = array<i64: 1, 256>}, {pipeline_mode = #tpu.pipeline_mode<synchronous>, transform_indices = @transform_19, window_bounds = array<i64: 1, 256>}, {pipeline_mode = #tpu.pipeline_mode<synchronous>, transform_indices = @transform_20, window_bounds = array<i64: 1, 256>}, {pipeline_mode = #tpu.pipeline_mode<synchronous>, transform_indices = @transform_21, window_bounds = array<i64: 256, 9>}, {pipeline_mode = #tpu.pipeline_mode<synchronous>, transform_indices = @transform_22, window_bounds = array<i64: 1, 9>}, {pipeline_mode = #tpu.pipeline_mode<synchronous>, transform_indices = @transform_23, window_bounds = array<i64: 1, 9>}, {pipeline_mode = #tpu.pipeline_mode<synchronous>, transform_indices = @transform_24, window_bounds = array<i64: 2, 9>}]} {
    %c0_i32 = arith.constant 0 : i32
    %0 = arith.cmpi eq, %arg0, %c0_i32 : i32
    %c0_i32_0 = arith.constant 0 : i32
    %1 = arith.cmpi eq, %arg1, %c0_i32_0 : i32
    %2 = arith.andi %0, %1 : i1
    %3 = arith.extui %2 : i1 to i32
    %c0_i32_1 = arith.constant 0 : i32
    %4 = arith.cmpi ne, %3, %c0_i32_1 : i32
    scf.if %4 {
      %cst = arith.constant 0.000000e+00 : f32
      %33 = vector.broadcast %cst : f32 to vector<1x64xf32>
      %c0_10 = arith.constant 0 : index
      %c0_11 = arith.constant 0 : index
      %34 = vector.load %arg27[%c0_10, %c0_11] : memref<1x64xf32, #tpu.memory_space<vmem>>, vector<1x64xf32>
      tpu.vector_store %arg27[%c0_10, %c0_11], %33 {strides = array<i32>} : memref<1x64xf32, #tpu.memory_space<vmem>>, vector<1x64xf32>,
      %cst_12 = arith.constant 0.000000e+00 : f32
      %35 = vector.broadcast %cst_12 : f32 to vector<1x64xf32>
      %c0_13 = arith.constant 0 : index
      %c0_14 = arith.constant 0 : index
      %36 = vector.load %arg28[%c0_13, %c0_14] : memref<1x64xf32, #tpu.memory_space<vmem>>, vector<1x64xf32>
      tpu.vector_store %arg28[%c0_13, %c0_14], %35 {strides = array<i32>} : memref<1x64xf32, #tpu.memory_space<vmem>>, vector<1x64xf32>,
      %cst_15 = arith.constant 0.000000e+00 : f32
      %37 = vector.broadcast %cst_15 : f32 to vector<1x128xf32>
      %c0_16 = arith.constant 0 : index
      %c0_17 = arith.constant 0 : index
      %38 = vector.load %arg29[%c0_16, %c0_17] : memref<1x128xf32, #tpu.memory_space<vmem>>, vector<1x128xf32>
      tpu.vector_store %arg29[%c0_16, %c0_17], %37 {strides = array<i32>} : memref<1x128xf32, #tpu.memory_space<vmem>>, vector<1x128xf32>,
      %cst_18 = arith.constant 0.000000e+00 : f32
      %39 = vector.broadcast %cst_18 : f32 to vector<1x128xf32>
      %c0_19 = arith.constant 0 : index
      %c0_20 = arith.constant 0 : index
      %40 = vector.load %arg30[%c0_19, %c0_20] : memref<1x128xf32, #tpu.memory_space<vmem>>, vector<1x128xf32>
      tpu.vector_store %arg30[%c0_19, %c0_20], %39 {strides = array<i32>} : memref<1x128xf32, #tpu.memory_space<vmem>>, vector<1x128xf32>,
      %cst_21 = arith.constant 0.000000e+00 : f32
      %41 = vector.broadcast %cst_21 : f32 to vector<1x1024xf32>
      %c0_22 = arith.constant 0 : index
      %c0_23 = arith.constant 0 : index
      %42 = vector.load %arg31[%c0_22, %c0_23] : memref<1x1024xf32, #tpu.memory_space<vmem>>, vector<1x1024xf32>
      tpu.vector_store %arg31[%c0_22, %c0_23], %41 {strides = array<i32>} : memref<1x1024xf32, #tpu.memory_space<vmem>>, vector<1x1024xf32>,
      %cst_24 = arith.constant 0.000000e+00 : f32
      %43 = vector.broadcast %cst_24 : f32 to vector<1x1024xf32>
      %c0_25 = arith.constant 0 : index
      %c0_26 = arith.constant 0 : index
      %44 = vector.load %arg32[%c0_25, %c0_26] : memref<1x1024xf32, #tpu.memory_space<vmem>>, vector<1x1024xf32>
      tpu.vector_store %arg32[%c0_25, %c0_26], %43 {strides = array<i32>} : memref<1x1024xf32, #tpu.memory_space<vmem>>, vector<1x1024xf32>,
    } else {
    }
    %c0 = arith.constant 0 : index
    %c0_2 = arith.constant 0 : index
    %5 = vector.load %arg2[%c0, %c0_2] : memref<32x3xf32, #tpu.memory_space<vmem>>, vector<32x3xf32>
    %c0_3 = arith.constant 0 : index
    %c0_4 = arith.constant 0 : index
    %6 = vector.load %arg3[%c0_3, %c0_4] : memref<3x64xf32, #tpu.memory_space<vmem>>, vector<3x64xf32>
    %7 = vector.extract_strided_slice %5 {offsets = [0, 0], sizes = [32, 1], strides = [1, 1]} : vector<32x3xf32> to vector<32x1xf32>
    %8 = vector.extract_strided_slice %6 {offsets = [0, 0], sizes = [1, 64], strides = [1, 1]} : vector<3x64xf32> to vector<1x64xf32>
    %9 = vector.broadcast %7 : vector<32x1xf32> to vector<32x64xf32>
    %10 = vector.broadcast %8 : vector<1x64xf32> to vector<32x64xf32>
    %11 = arith.mulf %9, %10 : vector<32x64xf32>
    %12 = vector.extract_strided_slice %5 {offsets = [0, 1], sizes = [32, 1], strides = [1, 1]} : vector<32x3xf32> to vector<32x1xf32>
    %13 = vector.extract_strided_slice %6 {offsets = [1, 0], sizes = [1, 64], strides = [1, 1]} : vector<3x64xf32> to vector<1x64xf32>
    %14 = vector.broadcast %12 : vector<32x1xf32> to vector<32x64xf32>
    %15 = vector.broadcast %13 : vector<1x64xf32> to vector<32x64xf32>
    %16 = arith.mulf %14, %15 : vector<32x64xf32>
    %17 = arith.addf %11, %16 : vector<32x64xf32>
    %18 = vector.extract_strided_slice %5 {offsets = [0, 2], sizes = [32, 1], strides = [1, 1]} : vector<32x3xf32> to vector<32x1xf32>
    %19 = vector.extract_strided_slice %6 {offsets = [2, 0], sizes = [1, 64], strides = [1, 1]} : vector<3x64xf32> to vector<1x64xf32>
    %20 = vector.broadcast %18 : vector<32x1xf32> to vector<32x64xf32>
    %21 = vector.broadcast %19 : vector<1x64xf32> to vector<32x64xf32>
    %22 = arith.mulf %20, %21 : vector<32x64xf32>
    %23 = arith.addf %17, %22 : vector<32x64xf32>
    %c0_5 = arith.constant 0 : index
    %c0_6 = arith.constant 0 : index
    %24 = vector.load %arg4[%c0_5, %c0_6] : memref<1x64xf32, #tpu.memory_space<vmem>>, vector<1x64xf32>
    %25 = vector.broadcast %24 : vector<1x64xf32> to vector<32x64xf32>
    %26 = arith.addf %23, %25 : vector<32x64xf32>
    %c0_i32_7 = arith.constant 0 : i32
    %27 = arith.cmpi eq, %arg0, %c0_i32_7 : i32
    %28 = arith.extui %27 : i1 to i32
    %c0_i32_8 = arith.constant 0 : i32
    %29 = arith.cmpi ne, %28, %c0_i32_8 : i32
    scf.if %29 {
      %c0_10 = arith.constant 0 : index
      %c0_11 = arith.constant 0 : index
      %33 = vector.load %arg27[%c0_10, %c0_11] : memref<1x64xf32, #tpu.memory_space<vmem>>, vector<1x64xf32>
      %cst = arith.constant dense<0.000000e+00> : vector<64xf32>
      %34 = vector.multi_reduction <add>, %26, %cst [0] : vector<32x64xf32> to vector<64xf32>
      %35 = vector.shape_cast %34 : vector<64xf32> to vector<1x64xf32>
      %36 = arith.addf %33, %35 : vector<1x64xf32>
      %c0_12 = arith.constant 0 : index
      %c0_13 = arith.constant 0 : index
      %37 = vector.load %arg27[%c0_12, %c0_13] : memref<1x64xf32, #tpu.memory_space<vmem>>, vector<1x64xf32>
      tpu.vector_store %arg27[%c0_12, %c0_13], %36 {strides = array<i32>} : memref<1x64xf32, #tpu.memory_space<vmem>>, vector<1x64xf32>,
      %c0_14 = arith.constant 0 : index
      %c0_15 = arith.constant 0 : index
      %38 = vector.load %arg28[%c0_14, %c0_15] : memref<1x64xf32, #tpu.memory_space<vmem>>, vector<1x64xf32>
      %39 = arith.mulf %26, %26 : vector<32x64xf32>
      %cst_16 = arith.constant dense<0.000000e+00> : vector<64xf32>
      %40 = vector.multi_reduction <add>, %39, %cst_16 [0] : vector<32x64xf32> to vector<64xf32>
      %41 = vector.shape_cast %40 : vector<64xf32> to vector<1x64xf32>
      %42 = arith.addf %38, %41 : vector<1x64xf32>
      %c0_17 = arith.constant 0 : index
      %c0_18 = arith.constant 0 : index
      %43 = vector.load %arg28[%c0_17, %c0_18] : memref<1x64xf32, #tpu.memory_space<vmem>>, vector<1x64xf32>
      tpu.vector_store %arg28[%c0_17, %c0_18], %42 {strides = array<i32>} : memref<1x64xf32, #tpu.memory_space<vmem>>, vector<1x64xf32>,
    } else {
    }
    %c1_i32 = arith.constant 1 : i32
    %30 = arith.cmpi sge, %arg0, %c1_i32 : i32
    %31 = arith.extui %30 : i1 to i32
    %c0_i32_9 = arith.constant 0 : i32
    %32 = arith.cmpi ne, %31, %c0_i32_9 : i32
    scf.if %32 {
      %c0_10 = arith.constant 0 : index
      %c0_11 = arith.constant 0 : index
      %33 = vector.load %arg27[%c0_10, %c0_11] : memref<1x64xf32, #tpu.memory_space<vmem>>, vector<1x64xf32>
      %c0_12 = arith.constant 0 : index
      %c0_13 = arith.constant 0 : index
      %34 = vector.load %arg28[%c0_12, %c0_13] : memref<1x64xf32, #tpu.memory_space<vmem>>, vector<1x64xf32>
      %c0_14 = arith.constant 0 : index
      %c0_15 = arith.constant 0 : index
      %35 = vector.load %arg5[%c0_14, %c0_15] : memref<1x64xf32, #tpu.memory_space<vmem>>, vector<1x64xf32>
      %c0_16 = arith.constant 0 : index
      %c0_17 = arith.constant 0 : index
      %36 = vector.load %arg6[%c0_16, %c0_17] : memref<1x64xf32, #tpu.memory_space<vmem>>, vector<1x64xf32>
      %cst = arith.constant 3.125000e-02 : f32
      %37 = vector.broadcast %cst : f32 to vector<1x64xf32>
      %38 = arith.mulf %33, %37 : vector<1x64xf32>
      %cst_18 = arith.constant 3.125000e-02 : f32
      %39 = vector.broadcast %cst_18 : f32 to vector<1x64xf32>
      %40 = arith.mulf %34, %39 : vector<1x64xf32>
      %41 = arith.mulf %38, %38 : vector<1x64xf32>
      %42 = arith.subf %40, %41 : vector<1x64xf32>
      %cst_19 = arith.constant 9.99999974E-6 : f32
      %43 = vector.broadcast %cst_19 : f32 to vector<1x64xf32>
      %44 = arith.addf %42, %43 : vector<1x64xf32>
      %45 = math.rsqrt %44 : vector<1x64xf32>
      %46 = arith.mulf %35, %45 : vector<1x64xf32>
      %47 = arith.mulf %38, %46 : vector<1x64xf32>
      %48 = arith.subf %36, %47 : vector<1x64xf32>
      %49 = vector.broadcast %46 : vector<1x64xf32> to vector<32x64xf32>
      %50 = arith.mulf %26, %49 : vector<32x64xf32>
      %51 = vector.broadcast %48 : vector<1x64xf32> to vector<32x64xf32>
      %52 = arith.addf %50, %51 : vector<32x64xf32>
      %cst_20 = arith.constant 0.000000e+00 : f32
      %53 = vector.broadcast %cst_20 : f32 to vector<32x64xf32>
      %54 = arith.maximumf %52, %53 : vector<32x64xf32>
      %55 = arith.truncf %54 : vector<32x64xf32> to vector<32x64xbf16>
      %c0_21 = arith.constant 0 : index
      %c0_22 = arith.constant 0 : index
      %56 = vector.load %arg7[%c0_21, %c0_22] : memref<64x128xbf16, #tpu.memory_space<vmem>>, vector<64x128xbf16>
      %cst_23 = arith.constant dense<0.000000e+00> : vector<32x128xf32>
      %57 = tpu.matmul %55, %56, %cst_23 {dimension_numbers = #tpu.dot_dimension_numbers<[1], [0], [0], [1], [0, 0, 1, 1], [], []>} : vector<32x64xbf16>, vector<64x128xbf16>, vector<32x128xf32> -> vector<32x128xf32>
      %c0_24 = arith.constant 0 : index
      %c0_25 = arith.constant 0 : index
      %58 = vector.load %arg8[%c0_24, %c0_25] : memref<1x128xf32, #tpu.memory_space<vmem>>, vector<1x128xf32>
      %59 = vector.broadcast %58 : vector<1x128xf32> to vector<32x128xf32>
      %60 = arith.addf %57, %59 : vector<32x128xf32>
      %c1_i32_26 = arith.constant 1 : i32
      %61 = arith.cmpi eq, %arg0, %c1_i32_26 : i32
      %62 = arith.extui %61 : i1 to i32
      %c0_i32_27 = arith.constant 0 : i32
      %63 = arith.cmpi ne, %62, %c0_i32_27 : i32
      scf.if %63 {
        %c0_29 = arith.constant 0 : index
        %c0_30 = arith.constant 0 : index
        %67 = vector.load %arg29[%c0_29, %c0_30] : memref<1x128xf32, #tpu.memory_space<vmem>>, vector<1x128xf32>
        %cst_31 = arith.constant dense<0.000000e+00> : vector<128xf32>
        %68 = vector.multi_reduction <add>, %60, %cst_31 [0] : vector<32x128xf32> to vector<128xf32>
        %69 = vector.shape_cast %68 : vector<128xf32> to vector<1x128xf32>
        %70 = arith.addf %67, %69 : vector<1x128xf32>
        %c0_32 = arith.constant 0 : index
        %c0_33 = arith.constant 0 : index
        %71 = vector.load %arg29[%c0_32, %c0_33] : memref<1x128xf32, #tpu.memory_space<vmem>>, vector<1x128xf32>
        tpu.vector_store %arg29[%c0_32, %c0_33], %70 {strides = array<i32>} : memref<1x128xf32, #tpu.memory_space<vmem>>, vector<1x128xf32>,
        %c0_34 = arith.constant 0 : index
        %c0_35 = arith.constant 0 : index
        %72 = vector.load %arg30[%c0_34, %c0_35] : memref<1x128xf32, #tpu.memory_space<vmem>>, vector<1x128xf32>
        %73 = arith.mulf %60, %60 : vector<32x128xf32>
        %cst_36 = arith.constant dense<0.000000e+00> : vector<128xf32>
        %74 = vector.multi_reduction <add>, %73, %cst_36 [0] : vector<32x128xf32> to vector<128xf32>
        %75 = vector.shape_cast %74 : vector<128xf32> to vector<1x128xf32>
        %76 = arith.addf %72, %75 : vector<1x128xf32>
        %c0_37 = arith.constant 0 : index
        %c0_38 = arith.constant 0 : index
        %77 = vector.load %arg30[%c0_37, %c0_38] : memref<1x128xf32, #tpu.memory_space<vmem>>, vector<1x128xf32>
        tpu.vector_store %arg30[%c0_37, %c0_38], %76 {strides = array<i32>} : memref<1x128xf32, #tpu.memory_space<vmem>>, vector<1x128xf32>,
      } else {
      }
      %c2_i32 = arith.constant 2 : i32
      %64 = arith.cmpi eq, %arg0, %c2_i32 : i32
      %65 = arith.extui %64 : i1 to i32
      %c0_i32_28 = arith.constant 0 : i32
      %66 = arith.cmpi ne, %65, %c0_i32_28 : i32
      scf.if %66 {
        %c0_29 = arith.constant 0 : index
        %c0_30 = arith.constant 0 : index
        %67 = vector.load %arg29[%c0_29, %c0_30] : memref<1x128xf32, #tpu.memory_space<vmem>>, vector<1x128xf32>
        %c0_31 = arith.constant 0 : index
        %c0_32 = arith.constant 0 : index
        %68 = vector.load %arg30[%c0_31, %c0_32] : memref<1x128xf32, #tpu.memory_space<vmem>>, vector<1x128xf32>
        %c0_33 = arith.constant 0 : index
        %c0_34 = arith.constant 0 : index
        %69 = vector.load %arg9[%c0_33, %c0_34] : memref<1x128xf32, #tpu.memory_space<vmem>>, vector<1x128xf32>
        %c0_35 = arith.constant 0 : index
        %c0_36 = arith.constant 0 : index
        %70 = vector.load %arg10[%c0_35, %c0_36] : memref<1x128xf32, #tpu.memory_space<vmem>>, vector<1x128xf32>
        %cst_37 = arith.constant 3.125000e-02 : f32
        %71 = vector.broadcast %cst_37 : f32 to vector<1x128xf32>
        %72 = arith.mulf %67, %71 : vector<1x128xf32>
        %cst_38 = arith.constant 3.125000e-02 : f32
        %73 = vector.broadcast %cst_38 : f32 to vector<1x128xf32>
        %74 = arith.mulf %68, %73 : vector<1x128xf32>
        %75 = arith.mulf %72, %72 : vector<1x128xf32>
        %76 = arith.subf %74, %75 : vector<1x128xf32>
        %cst_39 = arith.constant 9.99999974E-6 : f32
        %77 = vector.broadcast %cst_39 : f32 to vector<1x128xf32>
        %78 = arith.addf %76, %77 : vector<1x128xf32>
        %79 = math.rsqrt %78 : vector<1x128xf32>
        %80 = arith.mulf %69, %79 : vector<1x128xf32>
        %81 = arith.mulf %72, %80 : vector<1x128xf32>
        %82 = arith.subf %70, %81 : vector<1x128xf32>
        %83 = vector.broadcast %80 : vector<1x128xf32> to vector<32x128xf32>
        %84 = arith.mulf %60, %83 : vector<32x128xf32>
        %85 = vector.broadcast %82 : vector<1x128xf32> to vector<32x128xf32>
        %86 = arith.addf %84, %85 : vector<32x128xf32>
        %cst_40 = arith.constant 0.000000e+00 : f32
        %87 = vector.broadcast %cst_40 : f32 to vector<32x128xf32>
        %88 = arith.maximumf %86, %87 : vector<32x128xf32>
        %89 = arith.truncf %88 : vector<32x128xf32> to vector<32x128xbf16>
        %c0_41 = arith.constant 0 : index
        %c0_42 = arith.constant 0 : index
        %90 = vector.load %arg11[%c0_41, %c0_42] : memref<128x1024xbf16, #tpu.memory_space<vmem>>, vector<128x1024xbf16>
        %cst_43 = arith.constant dense<0.000000e+00> : vector<32x1024xf32>
        %91 = tpu.matmul %89, %90, %cst_43 {dimension_numbers = #tpu.dot_dimension_numbers<[1], [0], [0], [1], [0, 0, 1, 1], [], []>} : vector<32x128xbf16>, vector<128x1024xbf16>, vector<32x1024xf32> -> vector<32x1024xf32>
        %c0_44 = arith.constant 0 : index
        %c0_45 = arith.constant 0 : index
        %92 = vector.load %arg12[%c0_44, %c0_45] : memref<1x1024xf32, #tpu.memory_space<vmem>>, vector<1x1024xf32>
        %93 = vector.broadcast %92 : vector<1x1024xf32> to vector<32x1024xf32>
        %94 = arith.addf %91, %93 : vector<32x1024xf32>
        %c0_46 = arith.constant 0 : index
        %c0_47 = arith.constant 0 : index
        %95 = vector.load %arg31[%c0_46, %c0_47] : memref<1x1024xf32, #tpu.memory_space<vmem>>, vector<1x1024xf32>
        %cst_48 = arith.constant dense<0.000000e+00> : vector<1024xf32>
        %96 = vector.multi_reduction <add>, %94, %cst_48 [0] : vector<32x1024xf32> to vector<1024xf32>
        %97 = vector.shape_cast %96 : vector<1024xf32> to vector<1x1024xf32>
        %98 = arith.addf %95, %97 : vector<1x1024xf32>
        %c0_49 = arith.constant 0 : index
        %c0_50 = arith.constant 0 : index
        %99 = vector.load %arg31[%c0_49, %c0_50] : memref<1x1024xf32, #tpu.memory_space<vmem>>, vector<1x1024xf32>
        tpu.vector_store %arg31[%c0_49, %c0_50], %98 {strides = array<i32>} : memref<1x1024xf32, #tpu.memory_space<vmem>>, vector<1x1024xf32>,
        %c0_51 = arith.constant 0 : index
        %c0_52 = arith.constant 0 : index
        %100 = vector.load %arg32[%c0_51, %c0_52] : memref<1x1024xf32, #tpu.memory_space<vmem>>, vector<1x1024xf32>
        %101 = arith.mulf %94, %94 : vector<32x1024xf32>
        %cst_53 = arith.constant dense<0.000000e+00> : vector<1024xf32>
        %102 = vector.multi_reduction <add>, %101, %cst_53 [0] : vector<32x1024xf32> to vector<1024xf32>
        %103 = vector.shape_cast %102 : vector<1024xf32> to vector<1x1024xf32>
        %104 = arith.addf %100, %103 : vector<1x1024xf32>
        %c0_54 = arith.constant 0 : index
        %c0_55 = arith.constant 0 : index
        %105 = vector.load %arg32[%c0_54, %c0_55] : memref<1x1024xf32, #tpu.memory_space<vmem>>, vector<1x1024xf32>
        tpu.vector_store %arg32[%c0_54, %c0_55], %104 {strides = array<i32>} : memref<1x1024xf32, #tpu.memory_space<vmem>>, vector<1x1024xf32>,
        %106 = vector.shape_cast %94 : vector<32x1024xf32> to vector<2x16x1024xf32>
        %c2_i32_56 = arith.constant 2 : i32
        %107 = arith.muli %arg1, %c2_i32_56 : i32
        %108 = tpu.assume_multiple %107, 2 : i32
        %cst_57 = arith.constant dense<0xFF800000> : vector<2x1024xf32>
        %109 = vector.multi_reduction <maximumf>, %106, %cst_57 [1] : vector<2x16x1024xf32> to vector<2x1024xf32>
        %110 = arith.index_cast %108 : i32 to index
        %c0_58 = arith.constant 0 : index
        %111 = vector.load %arg33[%110, %c0_58] : memref<2x1024xf32, #tpu.memory_space<vmem>>, vector<2x1024xf32>
        tpu.vector_store %arg33[%110, %c0_58], %109 {strides = array<i32>} : memref<2x1024xf32, #tpu.memory_space<vmem>>, vector<2x1024xf32>,
        %cst_59 = arith.constant dense<0x7F800000> : vector<2x1024xf32>
        %112 = vector.multi_reduction <minimumf>, %106, %cst_59 [1] : vector<2x16x1024xf32> to vector<2x1024xf32>
        %113 = arith.index_cast %108 : i32 to index
        %c0_60 = arith.constant 0 : index
        %114 = vector.load %arg34[%113, %c0_60] : memref<2x1024xf32, #tpu.memory_space<vmem>>, vector<2x1024xf32>
        tpu.vector_store %arg34[%113, %c0_60], %112 {strides = array<i32>} : memref<2x1024xf32, #tpu.memory_space<vmem>>, vector<2x1024xf32>,
        %c0_i32_61 = arith.constant 0 : i32
        %115 = arith.cmpi eq, %arg1, %c0_i32_61 : i32
        %116 = arith.extui %115 : i1 to i32
        %c0_i32_62 = arith.constant 0 : i32
        %117 = arith.cmpi ne, %116, %c0_i32_62 : i32
        scf.if %117 {
          %c0_63 = arith.constant 0 : index
          %c0_64 = arith.constant 0 : index
          %118 = vector.load %arg31[%c0_63, %c0_64] : memref<1x1024xf32, #tpu.memory_space<vmem>>, vector<1x1024xf32>
          %cst_65 = arith.constant 3.125000e-02 : f32
          %119 = vector.broadcast %cst_65 : f32 to vector<1x1024xf32>
          %120 = arith.mulf %118, %119 : vector<1x1024xf32>
          %c0_66 = arith.constant 0 : index
          %c0_67 = arith.constant 0 : index
          %121 = vector.load %arg32[%c0_66, %c0_67] : memref<1x1024xf32, #tpu.memory_space<vmem>>, vector<1x1024xf32>
          %cst_68 = arith.constant 3.125000e-02 : f32
          %122 = vector.broadcast %cst_68 : f32 to vector<1x1024xf32>
          %123 = arith.mulf %121, %122 : vector<1x1024xf32>
          %124 = arith.mulf %120, %120 : vector<1x1024xf32>
          %125 = arith.subf %123, %124 : vector<1x1024xf32>
          %c0_69 = arith.constant 0 : index
          %c0_70 = arith.constant 0 : index
          %126 = vector.load %arg13[%c0_69, %c0_70] : memref<1x1024xf32, #tpu.memory_space<vmem>>, vector<1x1024xf32>
          %cst_71 = arith.constant 9.99999974E-6 : f32
          %127 = vector.broadcast %cst_71 : f32 to vector<1x1024xf32>
          %128 = arith.addf %125, %127 : vector<1x1024xf32>
          %129 = math.rsqrt %128 : vector<1x1024xf32>
          %130 = arith.mulf %126, %129 : vector<1x1024xf32>
          %c0_72 = arith.constant 0 : index
          %c0_73 = arith.constant 0 : index
          %131 = vector.load %arg14[%c0_72, %c0_73] : memref<1x1024xf32, #tpu.memory_space<vmem>>, vector<1x1024xf32>
          %132 = arith.mulf %120, %130 : vector<1x1024xf32>
          %133 = arith.subf %131, %132 : vector<1x1024xf32>
          %cst_74 = arith.constant 0.000000e+00 : f32
          %134 = vector.broadcast %cst_74 : f32 to vector<1x1024xf32>
          %135 = arith.cmpf oge, %130, %134 : vector<1x1024xf32>
          %c0_75 = arith.constant 0 : index
          %c0_76 = arith.constant 0 : index
          %136 = vector.load %arg33[%c0_75, %c0_76] : memref<2x1024xf32, #tpu.memory_space<vmem>>, vector<2x1024xf32>
          %137 = vector.broadcast %130 : vector<1x1024xf32> to vector<2x1024xf32>
          %138 = arith.mulf %136, %137 : vector<2x1024xf32>
          %139 = vector.broadcast %133 : vector<1x1024xf32> to vector<2x1024xf32>
          %140 = arith.addf %138, %139 : vector<2x1024xf32>
          %c0_77 = arith.constant 0 : index
          %c0_78 = arith.constant 0 : index
          %141 = vector.load %arg34[%c0_77, %c0_78] : memref<2x1024xf32, #tpu.memory_space<vmem>>, vector<2x1024xf32>
          %142 = vector.broadcast %130 : vector<1x1024xf32> to vector<2x1024xf32>
          %143 = arith.mulf %141, %142 : vector<2x1024xf32>
          %144 = vector.broadcast %133 : vector<1x1024xf32> to vector<2x1024xf32>
          %145 = arith.addf %143, %144 : vector<2x1024xf32>
          %146 = vector.shape_cast %135 : vector<1x1024xi1> to vector<1x1024xi1>
          %147 = vector.broadcast %146 : vector<1x1024xi1> to vector<2x1024xi1>
          %148 = arith.select %147, %140, %145 : vector<2x1024xi1>, vector<2x1024xf32>
          %cst_79 = arith.constant 0.000000e+00 : f32
          %149 = vector.broadcast %cst_79 : f32 to vector<2x1024xf32>
          %150 = arith.maximumf %148, %149 : vector<2x1024xf32>
          %c0_80 = arith.constant 0 : index
          %c0_81 = arith.constant 0 : index
          %151 = vector.load %arg15[%c0_80, %c0_81] : memref<1024x512xf32, #tpu.memory_space<vmem>>, vector<1024x512xf32>
          %cst_82 = arith.constant dense<0.000000e+00> : vector<2x512xf32>
          %152 = tpu.matmul %150, %151, %cst_82 {dimension_numbers = #tpu.dot_dimension_numbers<[1], [0], [0], [1], [0, 0, 1, 1], [], []>} : vector<2x1024xf32>, vector<1024x512xf32>, vector<2x512xf32> -> vector<2x512xf32>
          %c0_83 = arith.constant 0 : index
          %c0_84 = arith.constant 0 : index
          %153 = vector.load %arg16[%c0_83, %c0_84] : memref<1x512xf32, #tpu.memory_space<vmem>>, vector<1x512xf32>
          %154 = vector.broadcast %153 : vector<1x512xf32> to vector<2x512xf32>
          %155 = arith.addf %152, %154 : vector<2x512xf32>
          %c0_85 = arith.constant 0 : index
          %c0_86 = arith.constant 0 : index
          %156 = vector.load %arg17[%c0_85, %c0_86] : memref<1x512xf32, #tpu.memory_space<vmem>>, vector<1x512xf32>
          %c0_87 = arith.constant 0 : index
          %c0_88 = arith.constant 0 : index
          %157 = vector.load %arg18[%c0_87, %c0_88] : memref<1x512xf32, #tpu.memory_space<vmem>>, vector<1x512xf32>
          %cst_89 = arith.constant dense<0.000000e+00> : vector<512xf32>
          %158 = vector.multi_reduction <add>, %155, %cst_89 [0] : vector<2x512xf32> to vector<512xf32>
          %159 = vector.shape_cast %158 : vector<512xf32> to vector<1x512xf32>
          %cst_90 = arith.constant 2.000000e+00 : f32
          %160 = vector.broadcast %cst_90 : f32 to vector<1x512xf32>
          %161 = arith.divf %159, %160 : vector<1x512xf32>
          %162 = vector.broadcast %161 : vector<1x512xf32> to vector<2x512xf32>
          %163 = arith.subf %155, %162 : vector<2x512xf32>
          %164 = arith.mulf %163, %163 : vector<2x512xf32>
          %cst_91 = arith.constant dense<0.000000e+00> : vector<512xf32>
          %165 = vector.multi_reduction <add>, %164, %cst_91 [0] : vector<2x512xf32> to vector<512xf32>
          %166 = vector.shape_cast %165 : vector<512xf32> to vector<1x512xf32>
          %cst_92 = arith.constant 2.000000e+00 : f32
          %167 = vector.broadcast %cst_92 : f32 to vector<1x512xf32>
          %168 = arith.divf %166, %167 : vector<1x512xf32>
          %169 = vector.broadcast %161 : vector<1x512xf32> to vector<2x512xf32>
          %170 = arith.subf %155, %169 : vector<2x512xf32>
          %cst_93 = arith.constant 9.99999974E-6 : f32
          %171 = vector.broadcast %cst_93 : f32 to vector<1x512xf32>
          %172 = arith.addf %168, %171 : vector<1x512xf32>
          %173 = math.rsqrt %172 : vector<1x512xf32>
          %174 = vector.broadcast %173 : vector<1x512xf32> to vector<2x512xf32>
          %175 = arith.mulf %170, %174 : vector<2x512xf32>
          %176 = vector.broadcast %156 : vector<1x512xf32> to vector<2x512xf32>
          %177 = arith.mulf %175, %176 : vector<2x512xf32>
          %178 = vector.broadcast %157 : vector<1x512xf32> to vector<2x512xf32>
          %179 = arith.addf %177, %178 : vector<2x512xf32>
          %cst_94 = arith.constant 0.000000e+00 : f32
          %180 = vector.broadcast %cst_94 : f32 to vector<2x512xf32>
          %181 = arith.maximumf %179, %180 : vector<2x512xf32>
          %c0_95 = arith.constant 0 : index
          %c0_96 = arith.constant 0 : index
          %182 = vector.load %arg19[%c0_95, %c0_96] : memref<512x256xf32, #tpu.memory_space<vmem>>, vector<512x256xf32>
          %cst_97 = arith.constant dense<0.000000e+00> : vector<2x256xf32>
          %183 = tpu.matmul %181, %182, %cst_97 {dimension_numbers = #tpu.dot_dimension_numbers<[1], [0], [0], [1], [0, 0, 1, 1], [], []>} : vector<2x512xf32>, vector<512x256xf32>, vector<2x256xf32> -> vector<2x256xf32>
          %c0_98 = arith.constant 0 : index
          %c0_99 = arith.constant 0 : index
          %184 = vector.load %arg20[%c0_98, %c0_99] : memref<1x256xf32, #tpu.memory_space<vmem>>, vector<1x256xf32>
          %185 = vector.broadcast %184 : vector<1x256xf32> to vector<2x256xf32>
          %186 = arith.addf %183, %185 : vector<2x256xf32>
          %c0_100 = arith.constant 0 : index
          %c0_101 = arith.constant 0 : index
          %187 = vector.load %arg21[%c0_100, %c0_101] : memref<1x256xf32, #tpu.memory_space<vmem>>, vector<1x256xf32>
          %c0_102 = arith.constant 0 : index
          %c0_103 = arith.constant 0 : index
          %188 = vector.load %arg22[%c0_102, %c0_103] : memref<1x256xf32, #tpu.memory_space<vmem>>, vector<1x256xf32>
          %cst_104 = arith.constant dense<0.000000e+00> : vector<256xf32>
          %189 = vector.multi_reduction <add>, %186, %cst_104 [0] : vector<2x256xf32> to vector<256xf32>
          %190 = vector.shape_cast %189 : vector<256xf32> to vector<1x256xf32>
          %cst_105 = arith.constant 2.000000e+00 : f32
          %191 = vector.broadcast %cst_105 : f32 to vector<1x256xf32>
          %192 = arith.divf %190, %191 : vector<1x256xf32>
          %193 = vector.broadcast %192 : vector<1x256xf32> to vector<2x256xf32>
          %194 = arith.subf %186, %193 : vector<2x256xf32>
          %195 = arith.mulf %194, %194 : vector<2x256xf32>
          %cst_106 = arith.constant dense<0.000000e+00> : vector<256xf32>
          %196 = vector.multi_reduction <add>, %195, %cst_106 [0] : vector<2x256xf32> to vector<256xf32>
          %197 = vector.shape_cast %196 : vector<256xf32> to vector<1x256xf32>
          %cst_107 = arith.constant 2.000000e+00 : f32
          %198 = vector.broadcast %cst_107 : f32 to vector<1x256xf32>
          %199 = arith.divf %197, %198 : vector<1x256xf32>
          %200 = vector.broadcast %192 : vector<1x256xf32> to vector<2x256xf32>
          %201 = arith.subf %186, %200 : vector<2x256xf32>
          %cst_108 = arith.constant 9.99999974E-6 : f32
          %202 = vector.broadcast %cst_108 : f32 to vector<1x256xf32>
          %203 = arith.addf %199, %202 : vector<1x256xf32>
          %204 = math.rsqrt %203 : vector<1x256xf32>
          %205 = vector.broadcast %204 : vector<1x256xf32> to vector<2x256xf32>
          %206 = arith.mulf %201, %205 : vector<2x256xf32>
          %207 = vector.broadcast %187 : vector<1x256xf32> to vector<2x256xf32>
          %208 = arith.mulf %206, %207 : vector<2x256xf32>
          %209 = vector.broadcast %188 : vector<1x256xf32> to vector<2x256xf32>
          %210 = arith.addf %208, %209 : vector<2x256xf32>
          %cst_109 = arith.constant 0.000000e+00 : f32
          %211 = vector.broadcast %cst_109 : f32 to vector<2x256xf32>
          %212 = arith.maximumf %210, %211 : vector<2x256xf32>
          %c0_110 = arith.constant 0 : index
          %c0_111 = arith.constant 0 : index
          %213 = vector.load %arg23[%c0_110, %c0_111] : memref<256x9xf32, #tpu.memory_space<vmem>>, vector<256x9xf32>
          %cst_112 = arith.constant dense<0.000000e+00> : vector<2x9xf32>
          %214 = tpu.matmul %212, %213, %cst_112 {dimension_numbers = #tpu.dot_dimension_numbers<[1], [0], [0], [1], [0, 0, 1, 1], [], []>} : vector<2x256xf32>, vector<256x9xf32>, vector<2x9xf32> -> vector<2x9xf32>
          %c0_113 = arith.constant 0 : index
          %c0_114 = arith.constant 0 : index
          %215 = vector.load %arg24[%c0_113, %c0_114] : memref<1x9xf32, #tpu.memory_space<vmem>>, vector<1x9xf32>
          %216 = vector.broadcast %215 : vector<1x9xf32> to vector<2x9xf32>
          %217 = arith.addf %214, %216 : vector<2x9xf32>
          %c0_115 = arith.constant 0 : index
          %c0_116 = arith.constant 0 : index
          %218 = vector.load %arg25[%c0_115, %c0_116] : memref<1x9xf32, #tpu.memory_space<vmem>>, vector<1x9xf32>
          %219 = vector.broadcast %218 : vector<1x9xf32> to vector<2x9xf32>
          %220 = arith.addf %217, %219 : vector<2x9xf32>
          %c0_117 = arith.constant 0 : index
          %c0_118 = arith.constant 0 : index
          %221 = vector.load %arg26[%c0_117, %c0_118] : memref<2x9xf32, #tpu.memory_space<vmem>>, vector<2x9xf32>
          tpu.vector_store %arg26[%c0_117, %c0_118], %220 {strides = array<i32>} : memref<2x9xf32, #tpu.memory_space<vmem>>, vector<2x9xf32>,
        } else {
        }
      } else {
      }
    } else {
    }
    return
  }
  func.func @transform_0(%arg0: i32, %arg1: i32) -> (i32, i32) {
    %c0_i32 = arith.constant 0 : i32
    %c0_i32_0 = arith.constant 0 : i32
    return %arg1, %c0_i32 : i32, i32
  }
  func.func @transform_1(%arg0: i32, %arg1: i32) -> (i32, i32) {
    %c0_i32 = arith.constant 0 : i32
    %c0_i32_0 = arith.constant 0 : i32
    %c0_i32_1 = arith.constant 0 : i32
    return %c0_i32, %c0_i32_0 : i32, i32
  }
  func.func @transform_2(%arg0: i32, %arg1: i32) -> (i32, i32) {
    %c0_i32 = arith.constant 0 : i32
    %c0_i32_0 = arith.constant 0 : i32
    %c0_i32_1 = arith.constant 0 : i32
    return %c0_i32, %c0_i32_0 : i32, i32
  }
  func.func @transform_3(%arg0: i32, %arg1: i32) -> (i32, i32) {
    %c0_i32 = arith.constant 0 : i32
    %c0_i32_0 = arith.constant 0 : i32
    %c0_i32_1 = arith.constant 0 : i32
    return %c0_i32, %c0_i32_0 : i32, i32
  }
  func.func @transform_4(%arg0: i32, %arg1: i32) -> (i32, i32) {
    %c0_i32 = arith.constant 0 : i32
    %c0_i32_0 = arith.constant 0 : i32
    %c0_i32_1 = arith.constant 0 : i32
    return %c0_i32, %c0_i32_0 : i32, i32
  }
  func.func @transform_5(%arg0: i32, %arg1: i32) -> (i32, i32) {
    %c0_i32 = arith.constant 0 : i32
    %c0_i32_0 = arith.constant 0 : i32
    %c0_i32_1 = arith.constant 0 : i32
    return %c0_i32, %c0_i32_0 : i32, i32
  }
  func.func @transform_6(%arg0: i32, %arg1: i32) -> (i32, i32) {
    %c0_i32 = arith.constant 0 : i32
    %c0_i32_0 = arith.constant 0 : i32
    %c0_i32_1 = arith.constant 0 : i32
    return %c0_i32, %c0_i32_0 : i32, i32
  }
  func.func @transform_7(%arg0: i32, %arg1: i32) -> (i32, i32) {
    %c0_i32 = arith.constant 0 : i32
    %c0_i32_0 = arith.constant 0 : i32
    %c0_i32_1 = arith.constant 0 : i32
    return %c0_i32, %c0_i32_0 : i32, i32
  }
  func.func @transform_8(%arg0: i32, %arg1: i32) -> (i32, i32) {
    %c0_i32 = arith.constant 0 : i32
    %c0_i32_0 = arith.constant 0 : i32
    %c0_i32_1 = arith.constant 0 : i32
    return %c0_i32, %c0_i32_0 : i32, i32
  }
  func.func @transform_9(%arg0: i32, %arg1: i32) -> (i32, i32) {
    %c0_i32 = arith.constant 0 : i32
    %c0_i32_0 = arith.constant 0 : i32
    %c0_i32_1 = arith.constant 0 : i32
    return %c0_i32, %c0_i32_0 : i32, i32
  }
  func.func @transform_10(%arg0: i32, %arg1: i32) -> (i32, i32) {
    %c0_i32 = arith.constant 0 : i32
    %c0_i32_0 = arith.constant 0 : i32
    %c0_i32_1 = arith.constant 0 : i32
    return %c0_i32, %c0_i32_0 : i32, i32
  }
  func.func @transform_11(%arg0: i32, %arg1: i32) -> (i32, i32) {
    %c0_i32 = arith.constant 0 : i32
    %c0_i32_0 = arith.constant 0 : i32
    %c0_i32_1 = arith.constant 0 : i32
    return %c0_i32, %c0_i32_0 : i32, i32
  }
  func.func @transform_12(%arg0: i32, %arg1: i32) -> (i32, i32) {
    %c0_i32 = arith.constant 0 : i32
    %c0_i32_0 = arith.constant 0 : i32
    %c0_i32_1 = arith.constant 0 : i32
    return %c0_i32, %c0_i32_0 : i32, i32
  }
  func.func @transform_13(%arg0: i32, %arg1: i32) -> (i32, i32) {
    %c0_i32 = arith.constant 0 : i32
    %c0_i32_0 = arith.constant 0 : i32
    %c0_i32_1 = arith.constant 0 : i32
    return %c0_i32, %c0_i32_0 : i32, i32
  }
  func.func @transform_14(%arg0: i32, %arg1: i32) -> (i32, i32) {
    %c0_i32 = arith.constant 0 : i32
    %c0_i32_0 = arith.constant 0 : i32
    %c0_i32_1 = arith.constant 0 : i32
    return %c0_i32, %c0_i32_0 : i32, i32
  }
  func.func @transform_15(%arg0: i32, %arg1: i32) -> (i32, i32) {
    %c0_i32 = arith.constant 0 : i32
    %c0_i32_0 = arith.constant 0 : i32
    %c0_i32_1 = arith.constant 0 : i32
    return %c0_i32, %c0_i32_0 : i32, i32
  }
  func.func @transform_16(%arg0: i32, %arg1: i32) -> (i32, i32) {
    %c0_i32 = arith.constant 0 : i32
    %c0_i32_0 = arith.constant 0 : i32
    %c0_i32_1 = arith.constant 0 : i32
    return %c0_i32, %c0_i32_0 : i32, i32
  }
  func.func @transform_17(%arg0: i32, %arg1: i32) -> (i32, i32) {
    %c0_i32 = arith.constant 0 : i32
    %c0_i32_0 = arith.constant 0 : i32
    %c0_i32_1 = arith.constant 0 : i32
    return %c0_i32, %c0_i32_0 : i32, i32
  }
  func.func @transform_18(%arg0: i32, %arg1: i32) -> (i32, i32) {
    %c0_i32 = arith.constant 0 : i32
    %c0_i32_0 = arith.constant 0 : i32
    %c0_i32_1 = arith.constant 0 : i32
    return %c0_i32, %c0_i32_0 : i32, i32
  }
  func.func @transform_19(%arg0: i32, %arg1: i32) -> (i32, i32) {
    %c0_i32 = arith.constant 0 : i32
    %c0_i32_0 = arith.constant 0 : i32
    %c0_i32_1 = arith.constant 0 : i32
    return %c0_i32, %c0_i32_0 : i32, i32
  }
  func.func @transform_20(%arg0: i32, %arg1: i32) -> (i32, i32) {
    %c0_i32 = arith.constant 0 : i32
    %c0_i32_0 = arith.constant 0 : i32
    %c0_i32_1 = arith.constant 0 : i32
    return %c0_i32, %c0_i32_0 : i32, i32
  }
  func.func @transform_21(%arg0: i32, %arg1: i32) -> (i32, i32) {
    %c0_i32 = arith.constant 0 : i32
    %c0_i32_0 = arith.constant 0 : i32
    %c0_i32_1 = arith.constant 0 : i32
    return %c0_i32, %c0_i32_0 : i32, i32
  }
  func.func @transform_22(%arg0: i32, %arg1: i32) -> (i32, i32) {
    %c0_i32 = arith.constant 0 : i32
    %c0_i32_0 = arith.constant 0 : i32
    %c0_i32_1 = arith.constant 0 : i32
    return %c0_i32, %c0_i32_0 : i32, i32
  }
  func.func @transform_23(%arg0: i32, %arg1: i32) -> (i32, i32) {
    %c0_i32 = arith.constant 0 : i32
    %c0_i32_0 = arith.constant 0 : i32
    %c0_i32_1 = arith.constant 0 : i32
    return %c0_i32, %c0_i32_0 : i32, i32
  }
  func.func @transform_24(%arg0: i32, %arg1: i32) -> (i32, i32) {
    %c0_i32 = arith.constant 0 : i32
    %c0_i32_0 = arith.constant 0 : i32
    %c0_i32_1 = arith.constant 0 : i32
    return %c0_i32, %c0_i32_0 : i32, i32
  }
}

</mosaic_0001>

<bundles_post_ra>
// kernel: tpu_custom_call.1
= control target key start
LH: loop header
LB: loop body
LE: loop exit
PB: predicated region body
PF: predicated region fallthrough
CT: control target
= control target key end

     0   :  { %s7655_s0 = inlined_call_operand.vmem [shape: f32[32,3], index: 0, kind: input, shape index: {}]   ;;  %s7656_s1 = inlined_call_operand.hbm [shape: f32[3,64], index: 1, kind: input, shape index: {}]   ;;  %s7657_s2 = inlined_call_operand.hbm [shape: f32[1,64], index: 2, kind: input, shape index: {}]   ;;  %s7658_s3 = inlined_call_operand.hbm [shape: f32[1,64], index: 3, kind: input, shape index: {}]   ;;  %s7659_s4 = inlined_call_operand.hbm [shape: f32[1,64], index: 4, kind: input, shape index: {}]   ;;  %s7660_s5 = inlined_call_operand.hbm [shape: bf16[64,128], index: 5, kind: input, shape index: {}]   ;;  %s7661_s6 = inlined_call_operand.hbm [shape: f32[1,128], index: 6, kind: input, shape index: {}]   ;;  %s7662_s7 = inlined_call_operand.hbm [shape: f32[1,128], index: 7, kind: input, shape index: {}]   ;;  %s7663_s8 = inlined_call_operand.hbm [shape: f32[1,128], index: 8, kind: input, shape index: {}]   ;;  %s7664_s9 = inlined_call_operand.hbm [shape: bf16[128,1024], index: 9, kind: input, shape index: {}]   ;;  %s7665_s10 = inlined_call_operand.hbm [shape: f32[1,1024], index: 10, kind: input, shape index: {}]   ;;  %s7666_s11 = inlined_call_operand.hbm [shape: f32[1,1024], index: 11, kind: input, shape index: {}]   ;;  %s7667_s12 = inlined_call_operand.hbm [shape: f32[1,1024], index: 12, kind: input, shape index: {}]   ;;  %s7668_s13 = inlined_call_operand.hbm [shape: f32[1024,512], index: 13, kind: input, shape index: {}]   ;;  %s7669_s14 = inlined_call_operand.hbm [shape: f32[1,512], index: 14, kind: input, shape index: {}]   ;;  %s7670_s15 = inlined_call_operand.hbm [shape: f32[1,512], index: 15, kind: input, shape index: {}]   ;;  %s7671_s16 = inlined_call_operand.hbm [shape: f32[1,512], index: 16, kind: input, shape index: {}]   ;;  %s7672_s17 = inlined_call_operand.hbm [shape: f32[512,256], index: 17, kind: input, shape index: {}]   ;;  %s7673_s18 = inlined_call_operand.hbm [shape: f32[1,256], index: 18, kind: input, shape index: {}]   ;;  %s7674_s19 = inlined_call_operand.hbm [shape: f32[1,256], index: 19, kind: input, shape index: {}]   ;;  %s7675_s20 = inlined_call_operand.hbm [shape: f32[1,256], index: 20, kind: input, shape index: {}]   ;;  %s7676_s21 = inlined_call_operand.vmem [shape: f32[256,9], index: 21, kind: input, shape index: {}]   ;;  %s7677_s22 = inlined_call_operand.hbm [shape: f32[1,9], index: 22, kind: input, shape index: {}]   ;;  %s7678_s23 = inlined_call_operand.hbm [shape: f32[1,9], index: 23, kind: input, shape index: {}]   ;;  %s7679_s24 = inlined_call_operand.hbm [shape: f32[2,9], index: 24, kind: output, shape index: {}]  }
   0x1   :  { %7704 = sst [smem:[#allocation69_spill]] %s7655_s0 }
   0x2   :  { %7705 = sst [smem:[#allocation70_spill]] %s7656_s1 }
   0x3   :  { %7706 = sst [smem:[#allocation71_spill]] %s7657_s2 }
   0x4   :  { %7707 = sst [smem:[#allocation72_spill]] %s7658_s3 }
   0x5   :  { %7708 = sst [smem:[#allocation73_spill]] %s7659_s4 }
   0x6   :  { %7709 = sst [smem:[#allocation74_spill]] %s7660_s5 }
   0x7   :  { %7710 = sst [smem:[#allocation75_spill]] %s7661_s6 }
   0x8   :  { %7711 = sst [smem:[#allocation76_spill]] %s7662_s7 }
   0x9   :  { %7712 = sst [smem:[#allocation77_spill]] %s7663_s8 }
   0xa   :  { %7713 = sst [smem:[#allocation78_spill]] %s7665_s10 }
   0xb   :  { %7714 = sst [smem:[#allocation79_spill]] %s7667_s12 }
   0xc   :  { %7715 = sst [smem:[#allocation80_spill]] %s7676_s21 }
   0xd   :  { %7716 = sst [smem:[#allocation81_spill]] %s7679_s24 }
   0xe   :  { %29 = vsyncpa [#allocation11], 0 }
   0xf   :  { %30 = vsyncpa [#allocation14], 0 }
  0x10   :  { %31 = vsyncpa [#allocation17], 0 }
  0x11   :  { %32 = vsyncpa [#allocation20], 0 }
  0x12   :  { %33 = vsyncpa [#allocation23], 0 }
  0x13   :  { %34 = vsyncpa [#allocation26], 0 }
  0x14   :  { %35 = vsyncpa [#allocation29], 0 }
  0x15   :  { %36 = vsyncpa [#allocation32], 0 }
  0x16   :  { %37 = vsyncpa [#allocation35], 0 }
  0x17   :  { %38 = vsyncpa [#allocation38], 0 }
  0x18   :  { %39 = vsyncpa [#allocation41], 0 }
  0x19   :  { %40 = vsyncpa [#allocation44], 0 }
  0x1a   :  { %41 = vsyncpa [#allocation12], 0  ;;  %s6382_s5 = smov 0   ;;  %s6384_s26 = smov 0  }
  0x1b   :  { %s6386_s27 = smov 0  }
  0x1c LB: > { %7717 = sst [smem:[#allocation59_spill]] %s6219_s27  ;;  %s6221_s28 = smov [#allocation13]   ;;  %s6219_s27 = sphi %s6386_s27, %s47_s27   ;;  %s6215_s26 = sphi %s6384_s26, %s7782_s26   ;;  %s6211_s5 = sphi %s6382_s5, %s7781_s5  }
  0x1d   : > { %s627_s6 = sshll.u32 %s6221_s28, 4  ;;  %s7681_s2 = sadd.s32 4294967295, %s6219_s27   ;;  %s628_s6 = int_to_ptr.vmem [resolvable:$true] %s627_s6 }
  0x1e   : > { %p5072_p0 = scmp.ge.s32.totalorder %s6219_s27, 1  ;;  %p594_p1 = scmp.lt.s32.totalorder %s6219_s27, 4 }
  0x1f   : > { %p6402_p2 = scmp.eq.s32.totalorder %s7681_s2, 0  ;;  %s6222_s7 = smov [#allocation16]  }
  0x20   : > { %p6406_p3 = pnand %p5072_p0, %p594_p1  ;;  %s649_s30 = sshll.u32 %s6222_s7, 4  ;;  %s6412_s30 = int_to_ptr.vmem [resolvable:$true] %s649_s30 }
  0x21   : > { %s7718_s29 = scalar_select %p6402_p2, 1, 0 }
  0x22   : > { %s7719_s0 = scalar_select %p6406_p3, 1, 0 }
  0x23   : > { %p5348_p4 = pneg %p6406_p3  ;;  %s6223_s3 = smov [#allocation19]  }
  0x24   : > { %s673_s25 = sshll.u32 %s6223_s3, 4  ;;  %s6224_s4 = smov [#allocation22]   ;;  %s6420_s25 = int_to_ptr.vmem [resolvable:$true] %s673_s25 }
  0x25   : > { %p6416_p5 = pnand %p6402_p2, %p5348_p4  ;;  %s695_s1 = sshll.u32 %s6224_s4, 4  ;;  %s6422_s1 = int_to_ptr.vmem [resolvable:$true] %s695_s1 }
  0x26   : > { %s5560_s7 = scalar_lea.vmem %s628_s6, 16  ;;  %s5567_s3 = scalar_lea.vmem %s628_s6, 32 }
  0x27   : > { %p6426_p6 = pneg %p6416_p5  ;;  %p5561_p7 = scmp.ne.s32.totalorder %s628_s6, %s5560_s7 }
  0x28   : > { %p5568_p10 = scmp.lt.s32.totalorder %s628_s6, %s628_s6  ;;  %p5569_p11 = scmp.lt.s32.totalorder %s5567_s3, %s5560_s7 }
  0x29   : > { %p5563_p8 = pnand %p5561_p7, %p6426_p6 }
  0x2a   : > { %p5570_p12 = por %p5569_p11, %p5568_p10 }
  0x2b   : > { %p5564_p9 = pneg %p5563_p8 }
  0x2d   : > { %p5571_p13 = pnand %p5570_p12, %p5564_p9 }
  0x2f   : > { %5574 = shalt.err (!%p5571_p13)
}
  0x30   : > { %s7722_s24 = sld [smem:[#allocation71_spill]]  ;;  %s5586_s27 = scalar_lea.vmem %s6412_s30, 16 }
  0x31   : > { %p5587_p0 = scmp.ne.s32.totalorder %s6412_s30, %s5586_s27  ;;  %s5593_s7 = scalar_lea.vmem %s6412_s30, 32 }
  0x32   : > { %p5594_p7 = scmp.lt.s32.totalorder %s6412_s30, %s6412_s30  ;;  %p5595_p8 = scmp.lt.s32.totalorder %s5593_s7, %s5586_s27 }
  0x33   : > { %p5589_p1 = pnand %p5587_p0, %p6426_p6 }
  0x34   : > { %p5596_p9 = por %p5595_p8, %p5594_p7 }
  0x35   : > { %p5590_p4 = pneg %p5589_p1 }
  0x36   : > { %5354 = dma.hbm_to_vmem [thread:$0]  (!%p6416_p5), %s7722_s24, 16, %s628_s6, [#allocation14]  }
  0x37   : > { %p5597_p10 = pnand %p5596_p9, %p5590_p4 }
  0x39   : > { %5600 = shalt.err (!%p5597_p10)
}
  0x3a   : > { %s7723_s4 = sld [smem:[#allocation73_spill]]  ;;  %s5612_s24 = scalar_lea.vmem %s6420_s25, 16 }
  0x3b   : > { %p5613_p11 = scmp.ne.s32.totalorder %s6420_s25, %s5612_s24  ;;  %s5619_s27 = scalar_lea.vmem %s6420_s25, 32 }
  0x3c   : > { %p5620_p0 = scmp.lt.s32.totalorder %s6420_s25, %s6420_s25  ;;  %p5621_p1 = scmp.lt.s32.totalorder %s5619_s27, %s5612_s24 }
  0x3d   : > { %p5615_p12 = pnand %p5613_p11, %p6426_p6 }
  0x3e   : > { %p5622_p4 = por %p5621_p1, %p5620_p0 }
  0x3f   : > { %p5616_p13 = pneg %p5615_p12 }
  0x40   : > { %5360 = dma.hbm_to_vmem [thread:$0]  (!%p6416_p5), %s7723_s4, 16, %s6412_s30, [#allocation17]  }
  0x41   : > { %p5623_p7 = pnand %p5622_p4, %p5616_p13 }
  0x43   : > { %5626 = shalt.err (!%p5623_p7)
}
  0x44   : > { %s7724_s2 = sld [smem:[#allocation75_spill]]  ;;  %s5638_s30 = scalar_lea.vmem %s6422_s1, 16 }
  0x45   : > { %p5639_p8 = scmp.ne.s32.totalorder %s6422_s1, %s5638_s30  ;;  %s5645_s3 = scalar_lea.vmem %s6422_s1, 32 }
  0x46   : > { %p5646_p11 = scmp.lt.s32.totalorder %s6422_s1, %s6422_s1  ;;  %p5647_p12 = scmp.lt.s32.totalorder %s5645_s3, %s5638_s30 }
  0x47   : > { %p5641_p9 = pnand %p5639_p8, %p6426_p6 }
  0x48   : > { %p5648_p13 = por %p5647_p12, %p5646_p11 }
  0x49   : > { %p5642_p10 = pneg %p5641_p9 }
  0x4a   : > { %5366 = dma.hbm_to_vmem [thread:$0]  (!%p6416_p5), %s7724_s2, 16, %s6420_s25, [#allocation20]  }
  0x4b   : > { %p5649_p0 = pnand %p5648_p13, %p5642_p10 }
  0x4d   : > { %5652 = shalt.err (!%p5649_p0)
}
  0x4e   : > { %s7725_s27 = sld [smem:[#allocation77_spill]]  ;;  %s6225_s25 = smov [#allocation25]  }
  0x4f   : > { %s719_s6 = sshll.u32 %s6225_s25, 4  ;;  %s6226_s7 = smov [#allocation28]   ;;  %s720_s6 = int_to_ptr.vmem [resolvable:$true] %s719_s6 }
  0x50   : > { %s741_s2 = sshll.u32 %s6226_s7, 4  ;;  %s5664_s21 = scalar_lea.vmem %s720_s6, 128  ;;  %s742_s2 = int_to_ptr.vmem [resolvable:$true] %s741_s2 }
  0x51   : > { %p5665_p1 = scmp.ne.s32.totalorder %s720_s6, %s5664_s21  ;;  %p5672_p8 = scmp.lt.s32.totalorder %s720_s6, %s720_s6 }
  0x52   : > { %p5673_p9 = scmp.lt.s32.totalorder %s5664_s21, %s5664_s21 }
  0x53   : > { %p5667_p4 = pnand %p5665_p1, %p6426_p6 }
  0x54   : > { %5372 = dma.hbm_to_vmem [thread:$0]  (!%p6416_p5), %s7725_s27, 16, %s6422_s1, [#allocation23]  }
  0x55   : > { %p5668_p7 = pneg %p5667_p4  ;;  %p5674_p10 = por %p5673_p9, %p5672_p8 }
  0x57   : > { %p5675_p11 = pnand %p5674_p10, %p5668_p7 }
  0x59   : > { %5678 = shalt.err (!%p5675_p11)
}
  0x5a   : > { %s7726_s10 = sld [smem:[#allocation78_spill]]  ;;  %s5690_s1 = scalar_lea.vmem %s742_s2, 128 }
  0x5b   : > { %p5691_p12 = scmp.ne.s32.totalorder %s742_s2, %s5690_s1  ;;  %p5698_p1 = scmp.lt.s32.totalorder %s742_s2, %s742_s2 }
  0x5c   : > { %p5699_p4 = scmp.lt.s32.totalorder %s5690_s1, %s5690_s1 }
  0x5d   : > { %p5693_p13 = pnand %p5691_p12, %p6426_p6 }
  0x5e   : > { %p5700_p2 = por %p5699_p4, %p5698_p1 }
  0x5f   : > { %p5694_p0 = pneg %p5693_p13 }
  0x60   : > { %5378 = dma.hbm_to_vmem [thread:$0]  (!%p6416_p5), %s7726_s10, 128, %s720_s6, [#allocation26]  }
  0x61   : > { %p5701_p3 = pnand %p5700_p2, %p5694_p0 }
  0x63   : > { %5704 = shalt.err (!%p5701_p3)
}
  0x64   : > { %s7727_s12 = sld [smem:[#allocation79_spill]]  ;;  %s6227_s24 = smov [#allocation31]  }
  0x65   : > { %s765_s27 = sshll.u32 %s6227_s24, 4  ;;  %s6228_s25 = smov [#allocation34]   ;;  %s766_s27 = int_to_ptr.vmem [resolvable:$true] %s765_s27 }
  0x66   : > { %s787_s6 = sshll.u32 %s6228_s25, 4  ;;  %s5716_s7 = scalar_lea.vmem %s766_s27, 64  ;;  %s788_s6 = int_to_ptr.vmem [resolvable:$true] %s787_s6 }
  0x67   : > { %p5717_p7 = scmp.ne.s32.totalorder %s766_s27, %s5716_s7  ;;  %p5724_p10 = scmp.lt.s32.totalorder %s766_s27, %s766_s27 }
  0x68   : > { %p5725_p2 = scmp.lt.s32.totalorder %s5716_s7, %s5716_s7 }
  0x69   : > { %p5719_p8 = pnand %p5717_p7, %p6426_p6 }
  0x6a   : > { %5384 = dma.hbm_to_vmem [thread:$0]  (!%p6416_p5), %s7727_s12, 128, %s742_s2, [#allocation29]  }
  0x6b   : > { %p5720_p9 = pneg %p5719_p8  ;;  %p5726_p3 = por %p5725_p2, %p5724_p10 }
  0x6d   : > { %p5727_p11 = pnand %p5726_p3, %p5720_p9 }
  0x6f   : > { %5730 = shalt.err (!%p5727_p11)
}
  0x70   : > { %5390 = dma.hbm_to_vmem [thread:$0]  (!%p6416_p5), %s7669_s14, 64, %s766_s27, [#allocation32]  }
  0x71   : > { %s5742_s2 = scalar_lea.vmem %s788_s6, 64  ;;  %p5750_p1 = scmp.lt.s32.totalorder %s788_s6, %s788_s6 }
  0x72   : > { %p5743_p12 = scmp.ne.s32.totalorder %s788_s6, %s5742_s2  ;;  %p5751_p4 = scmp.lt.s32.totalorder %s5742_s2, %s5742_s2 }
  0x74   : > { %p5745_p13 = pnand %p5743_p12, %p6426_p6  ;;  %p5752_p7 = por %p5751_p4, %p5750_p1 }
  0x76   : > { %p5746_p0 = pneg %p5745_p13 }
  0x78   : > { %p5753_p8 = pnand %p5752_p7, %p5746_p0 }
  0x7a   : > { %5756 = shalt.err (!%p5753_p8)
}
  0x7b   : > { %5396 = dma.hbm_to_vmem [thread:$0]  (!%p6416_p5), %s7671_s16, 64, %s788_s6, [#allocation35]  }
  0x7c   : > { %s6229_s4 = smov [#allocation37]   ;;  %s6230_s27 = smov [#allocation40]  }
  0x7d   : > { %s811_s24 = sshll.u32 %s6229_s4, 4  ;;  %s833_s25 = sshll.u32 %s6230_s27, 4  ;;  %s812_s24 = int_to_ptr.vmem [resolvable:$true] %s811_s24  ;;  %s834_s25 = int_to_ptr.vmem [resolvable:$true] %s833_s25 }
  0x7e   : > { %s5768_s7 = scalar_lea.vmem %s812_s24, 32  ;;  %p5776_p3 = scmp.lt.s32.totalorder %s812_s24, %s812_s24 }
  0x7f   : > { %p5769_p9 = scmp.ne.s32.totalorder %s812_s24, %s5768_s7  ;;  %p5777_p11 = scmp.lt.s32.totalorder %s5768_s7, %s5768_s7 }
  0x81   : > { %p5771_p10 = pnand %p5769_p9, %p6426_p6  ;;  %p5778_p12 = por %p5777_p11, %p5776_p3 }
  0x83   : > { %p5772_p2 = pneg %p5771_p10 }
  0x85   : > { %p5779_p13 = pnand %p5778_p12, %p5772_p2 }
  0x87   : > { %5782 = shalt.err (!%p5779_p13)
}
  0x88   : > { %5402 = dma.hbm_to_vmem [thread:$0]  (!%p6416_p5), %s7673_s18, 32, %s812_s24, [#allocation38]  }
  0x89   : > { %s5794_s6 = scalar_lea.vmem %s834_s25, 32  ;;  %p5802_p7 = scmp.lt.s32.totalorder %s834_s25, %s834_s25 }
  0x8a   : > { %p5795_p0 = scmp.ne.s32.totalorder %s834_s25, %s5794_s6  ;;  %p5803_p8 = scmp.lt.s32.totalorder %s5794_s6, %s5794_s6 }
  0x8c   : > { %p5797_p1 = pnand %p5795_p0, %p6426_p6  ;;  %p5804_p9 = por %p5803_p8, %p5802_p7 }
  0x8e   : > { %p5798_p4 = pneg %p5797_p1 }
  0x90   : > { %p5805_p10 = pnand %p5804_p9, %p5798_p4 }
  0x92   : > { %5808 = shalt.err (!%p5805_p10)
}
  0x93   : > { %5408 = dma.hbm_to_vmem [thread:$0]  (!%p6416_p5), %s7675_s20, 32, %s834_s25, [#allocation41]  }
  0x94   : > { %s59_s21 = sadd.s32 1, %s6215_s26  ;;  %s6231_s4 = smov [#allocation10]  }
  0x95   : > { %s616_s24 = sshll.u32 %s6231_s4, 4  ;;  %p61_p2 = scmp.ge.s32.totalorder %s59_s21, 3  ;;  %s617_s24 = int_to_ptr.vmem [resolvable:$true] %s616_s24 }
  0x96   : > { %s5820_s27 = scalar_lea.vmem %s617_s24, 64  ;;  %p5828_p13 = scmp.lt.s32.totalorder %s617_s24, %s617_s24 }
  0x97   : > { %p5821_p3 = scmp.ne.s32.totalorder %s617_s24, %s5820_s27  ;;  %p5829_p0 = scmp.lt.s32.totalorder %s5820_s27, %s5820_s27 }
  0x99   : > { %p5823_p11 = pnand %p5821_p3, %p6426_p6  ;;  %p5830_p1 = por %p5829_p0, %p5828_p13 }
  0x9b   : > { %p5824_p12 = pneg %p5823_p11 }
  0x9d   : > { %p5831_p4 = pnand %p5830_p1, %p5824_p12 }
  0x9f   : > { %5834 = shalt.err (!%p5831_p4)
}
  0xa0   : > { %s7728_s25 = sld [smem:[#allocation70_spill]]  ;;  %s7784_s21 = smov (%p61_p2, %s59_s21), 0 }
  0xa1   : > { %s6232_s3 = smov [#allocation15]   ;;  %s6233_s2 = smov [#allocation18]  }
  0xa2   : > { %s638_s6 = sshll.u32 %s6232_s3, 4  ;;  %s659_s1 = sshll.u32 %s6233_s2, 4  ;;  %s639_s6 = int_to_ptr.vmem [resolvable:$true] %s638_s6  ;;  %s660_s1 = int_to_ptr.vmem [resolvable:$true] %s659_s1 }
  0xa3   : > { %s5846_s4 = scalar_lea.vmem %s639_s6, 16  ;;  %s5853_s27 = scalar_lea.vmem %s639_s6, 32 }
  0xa4   : > { %p5847_p7 = scmp.ne.s32.totalorder %s639_s6, %s5846_s4  ;;  %p5854_p10 = scmp.lt.s32.totalorder %s639_s6, %s639_s6 }
  0xa5   : > { %p5855_p3 = scmp.lt.s32.totalorder %s5853_s27, %s5846_s4 }
  0xa6   : > { %5351 = dma.hbm_to_vmem [thread:$0]  (!%p6416_p5), %s7728_s25, 64, %s617_s24, [#allocation11]  }
  0xa7   : > { %p5849_p8 = pnand %p5847_p7, %p6426_p6  ;;  %p5856_p11 = por %p5855_p3, %p5854_p10 }
  0xa9   : > { %p5850_p9 = pneg %p5849_p8 }
  0xab   : > { %p5857_p12 = pnand %p5856_p11, %p5850_p9 }
  0xad   : > { %5860 = shalt.err (!%p5857_p12)
}
  0xae   : > { %s7729_s30 = sld [smem:[#allocation72_spill]]  ;;  %s5872_s25 = scalar_lea.vmem %s660_s1, 512 }
  0xaf   : > { %p5873_p2 = scmp.ne.s32.totalorder %s660_s1, %s5872_s25  ;;  %p5880_p1 = scmp.lt.s32.totalorder %s660_s1, %s660_s1 }
  0xb0   : > { %p5881_p4 = scmp.lt.s32.totalorder %s5872_s25, %s5872_s25 }
  0xb1   : > { %p5875_p13 = pnand %p5873_p2, %p6426_p6 }
  0xb2   : > { %p5882_p7 = por %p5881_p4, %p5880_p1 }
  0xb3   : > { %p5876_p0 = pneg %p5875_p13 }
  0xb4   : > { %5357 = dma.hbm_to_vmem [thread:$0]  (!%p6416_p5), %s7729_s30, 16, %s639_s6, [#allocation14]  }
  0xb5   : > { %p5883_p8 = pnand %p5882_p7, %p5876_p0 }
  0xb7   : > { %5886 = shalt.err (!%p5883_p8)
}
  0xb8   : > { %s6234_s3 = smov 64   ;;  %s6235_s2 = smov 4  }
  0xb9   : > { %s7730_s24 = sld [smem:[#allocation74_spill]]  ;;  %s6236_s6 = smov [#allocation21]  }
  0xba   : > { %s684_s7 = sshll.u32 %s6236_s6, 4  ;;  %s6237_s30 = smov [#allocation24]   ;;  %s685_s7 = int_to_ptr.vmem [resolvable:$true] %s684_s7 }
  0xbb   : > { %s705_s10 = sshll.u32 %s6237_s30, 4  ;;  %s5898_s12 = scalar_lea.vmem %s685_s7, 16  ;;  %s706_s10 = int_to_ptr.vmem [resolvable:$true] %s705_s10 }
  0xbc   : > { %p5899_p9 = scmp.ne.s32.totalorder %s685_s7, %s5898_s12  ;;  %s5905_s25 = scalar_lea.vmem %s685_s7, 32 }
  0xbd   : > { %p5906_p11 = scmp.lt.s32.totalorder %s685_s7, %s685_s7  ;;  %p5907_p12 = scmp.lt.s32.totalorder %s5905_s25, %s5898_s12 }
  0xbe   : > { %p5901_p10 = pnand %p5899_p9, %p6426_p6 }
  0xbf   : > { %5363 = dma.hbm_to_vmem [thread:$0]  (!%p6416_p5), %s7730_s24, 512, %s660_s1, [#allocation17], %s6234_s3, %s6234_s3, %s6235_s2  }
  0xc0   : > { %p5902_p3 = pneg %p5901_p10  ;;  %p5908_p2 = por %p5907_p12, %p5906_p11 }
  0xc2   : > { %p5909_p13 = pnand %p5908_p2, %p5902_p3 }
  0xc4   : > { %5912 = shalt.err (!%p5909_p13)
}
  0xc5   : > { %s7731_s2 = sld [smem:[#allocation76_spill]]  ;;  %s5924_s4 = scalar_lea.vmem %s706_s10, 8192 }
  0xc6   : > { %p5925_p0 = scmp.ne.s32.totalorder %s706_s10, %s5924_s4  ;;  %p5932_p7 = scmp.lt.s32.totalorder %s706_s10, %s706_s10 }
  0xc7   : > { %p5933_p8 = scmp.lt.s32.totalorder %s5924_s4, %s5924_s4 }
  0xc8   : > { %p5927_p1 = pnand %p5925_p0, %p6426_p6 }
  0xc9   : > { %p5934_p9 = por %p5933_p8, %p5932_p7 }
  0xca   : > { %p5928_p4 = pneg %p5927_p1 }
  0xcb   : > { %5369 = dma.hbm_to_vmem [thread:$0]  (!%p6416_p5), %s7731_s2, 16, %s685_s7, [#allocation20]  }
  0xcc   : > { %p5935_p10 = pnand %p5934_p9, %p5928_p4 }
  0xce   : > { %5938 = shalt.err (!%p5935_p10)
}
  0xcf   : > { %s6238_s12 = smov 512   ;;  %s6239_s27 = smov 32  }
  0xd0   : > { %5375 = dma.hbm_to_vmem [thread:$0]  (!%p6416_p5), %s7664_s9, 8192, %s706_s10, [#allocation23], %s6238_s12, %s6238_s12, %s6239_s27  }
  0xd1   : > { %s6240_s7 = smov [#allocation27]   ;;  %s6241_s25 = smov [#allocation30]  }
  0xd2   : > { %s730_s30 = sshll.u32 %s6240_s7, 4  ;;  %s751_s1 = sshll.u32 %s6241_s25, 4  ;;  %s731_s30 = int_to_ptr.vmem [resolvable:$true] %s730_s30  ;;  %s752_s1 = int_to_ptr.vmem [resolvable:$true] %s751_s1 }
  0xd3   : > { %s5950_s3 = scalar_lea.vmem %s731_s30, 128  ;;  %p5958_p2 = scmp.lt.s32.totalorder %s731_s30, %s731_s30 }
  0xd4   : > { %p5951_p3 = scmp.ne.s32.totalorder %s731_s30, %s5950_s3  ;;  %p5959_p13 = scmp.lt.s32.totalorder %s5950_s3, %s5950_s3 }
  0xd6   : > { %p5953_p11 = pnand %p5951_p3, %p6426_p6  ;;  %p5960_p0 = por %p5959_p13, %p5958_p2 }
  0xd8   : > { %p5954_p12 = pneg %p5953_p11 }
  0xda   : > { %p5961_p1 = pnand %p5960_p0, %p5954_p12 }
  0xdc   : > { %5964 = shalt.err (!%p5961_p1)
}
  0xdd   : > { %5381 = dma.hbm_to_vmem [thread:$0]  (!%p6416_p5), %s7666_s11, 128, %s731_s30, [#allocation26]  }
  0xde   : > { %s5976_s4 = scalar_lea.vmem %s752_s1, 65536  ;;  %p5984_p9 = scmp.lt.s32.totalorder %s752_s1, %s752_s1 }
  0xdf   : > { %p5977_p4 = scmp.ne.s32.totalorder %s752_s1, %s5976_s4  ;;  %p5985_p10 = scmp.lt.s32.totalorder %s5976_s4, %s5976_s4 }
  0xe1   : > { %p5979_p7 = pnand %p5977_p4, %p6426_p6  ;;  %p5986_p3 = por %p5985_p10, %p5984_p9 }
  0xe3   : > { %p5980_p8 = pneg %p5979_p7 }
  0xe5   : > { %p5987_p11 = pnand %p5986_p3, %p5980_p8 }
  0xe7   : > { %5990 = shalt.err (!%p5987_p11)
}
  0xe8   : > { %5387 = dma.hbm_to_vmem [thread:$0]  (!%p6416_p5), %s7668_s13, 65536, %s752_s1, [#allocation29], %s6238_s12, %s6238_s12, %s6239_s27  }
  0xe9   : > { %s6242_s7 = smov [#allocation33]   ;;  %s6243_s25 = smov [#allocation36]  }
  0xea   : > { %s776_s30 = sshll.u32 %s6242_s7, 4  ;;  %s797_s3 = sshll.u32 %s6243_s25, 4  ;;  %s777_s30 = int_to_ptr.vmem [resolvable:$true] %s776_s30  ;;  %s798_s3 = int_to_ptr.vmem [resolvable:$true] %s797_s3 }
  0xeb   : > { %s6002_s2 = scalar_lea.vmem %s777_s30, 64  ;;  %p6010_p0 = scmp.lt.s32.totalorder %s777_s30, %s777_s30 }
  0xec   : > { %p6003_p12 = scmp.ne.s32.totalorder %s777_s30, %s6002_s2  ;;  %p6011_p1 = scmp.lt.s32.totalorder %s6002_s2, %s6002_s2 }
  0xee   : > { %p6005_p2 = pnand %p6003_p12, %p6426_p6  ;;  %p6012_p4 = por %p6011_p1, %p6010_p0 }
  0xf0   : > { %p6006_p13 = pneg %p6005_p2 }
  0xf2   : > { %p6013_p7 = pnand %p6012_p4, %p6006_p13 }
  0xf4   : > { %6016 = shalt.err (!%p6013_p7)
}
  0xf5   : > { %5393 = dma.hbm_to_vmem [thread:$0]  (!%p6416_p5), %s7670_s15, 64, %s777_s30, [#allocation32]  }
  0xf6   : > { %s6028_s27 = scalar_lea.vmem %s798_s3, 16384  ;;  %p6036_p3 = scmp.lt.s32.totalorder %s798_s3, %s798_s3 }
  0xf7   : > { %p6029_p8 = scmp.ne.s32.totalorder %s798_s3, %s6028_s27  ;;  %p6037_p11 = scmp.lt.s32.totalorder %s6028_s27, %s6028_s27 }
  0xf9   : > { %p6031_p9 = pnand %p6029_p8, %p6426_p6  ;;  %p6038_p12 = por %p6037_p11, %p6036_p3 }
  0xfb   : > { %p6032_p10 = pneg %p6031_p9 }
  0xfd   : > { %p6039_p2 = pnand %p6038_p12, %p6032_p10 }
  0xff   : > { %6042 = shalt.err (!%p6039_p2)
}
 0x100   : > { %s6244_s1 = smov 256   ;;  %s6245_s4 = smov 16  }
 0x101   : > { %5399 = dma.hbm_to_vmem [thread:$0]  (!%p6416_p5), %s7672_s17, 16384, %s798_s3, [#allocation35], %s6244_s1, %s6244_s1, %s6245_s4  }
 0x102   : > { %s6246_s7 = smov [#allocation39]   ;;  %s6247_s25 = smov [#allocation42]  }
 0x103   : > { %s822_s30 = sshll.u32 %s6246_s7, 4  ;;  %s847_s2 = sshll.u32 %s6247_s25, 4  ;;  %s823_s30 = int_to_ptr.vmem [resolvable:$true] %s822_s30  ;;  %s848_s2 = int_to_ptr.vmem [resolvable:$true] %s847_s2 }
 0x104   : > { %s6054_s10 = scalar_lea.vmem %s823_s30, 32  ;;  %p6062_p4 = scmp.lt.s32.totalorder %s823_s30, %s823_s30 }
 0x105   : > { %p6055_p13 = scmp.ne.s32.totalorder %s823_s30, %s6054_s10  ;;  %p6063_p7 = scmp.lt.s32.totalorder %s6054_s10, %s6054_s10 }
 0x107   : > { %p6057_p0 = pnand %p6055_p13, %p6426_p6  ;;  %p6064_p8 = por %p6063_p7, %p6062_p4 }
 0x109   : > { %p6058_p1 = pneg %p6057_p0 }
 0x10b   : > { %p6065_p9 = pnand %p6064_p8, %p6058_p1 }
 0x10d   : > { %6068 = shalt.err (!%p6065_p9)
}
 0x10e   : > { %5405 = dma.hbm_to_vmem [thread:$0]  (!%p6416_p5), %s7674_s19, 32, %s823_s30, [#allocation38]  }
 0x10f   : > { %s6080_s27 = scalar_lea.vmem %s848_s2, 16  ;;  %s6087_s1 = scalar_lea.vmem %s848_s2, 32 }
 0x110   : > { %p6081_p10 = scmp.ne.s32.totalorder %s848_s2, %s6080_s27  ;;  %p6088_p12 = scmp.lt.s32.totalorder %s848_s2, %s848_s2 }
 0x111   : > { %p6089_p2 = scmp.lt.s32.totalorder %s6087_s1, %s6080_s27 }
 0x112   : > { %p6083_p3 = pnand %p6081_p10, %p6426_p6 }
 0x113   : > { %p6090_p13 = por %p6089_p2, %p6088_p12 }
 0x114   : > { %p6084_p11 = pneg %p6083_p3 }
 0x116   : > { %p6091_p0 = pnand %p6090_p13, %p6084_p11 }
 0x118   : > { %6094 = shalt.err (!%p6091_p0)
}
 0x119   : > { %5411 = dma.hbm_to_vmem [thread:$0]  (!%p6416_p5), %s7677_s22, 16, %s848_s2, [#allocation41]  }
 0x11a   : > { %s6248_s6 = smov [#allocation43]  }
 0x11b   : > { %s858_s7 = sshll.u32 %s6248_s6, 4  ;;  %s859_s7 = int_to_ptr.vmem [resolvable:$true] %s858_s7 }
 0x11c   : > { %s6106_s30 = scalar_lea.vmem %s859_s7, 16  ;;  %s6113_s25 = scalar_lea.vmem %s859_s7, 32 }
 0x11d   : > { %p6107_p1 = scmp.ne.s32.totalorder %s859_s7, %s6106_s30  ;;  %p6114_p8 = scmp.lt.s32.totalorder %s859_s7, %s859_s7 }
 0x11e   : > { %p6115_p9 = scmp.lt.s32.totalorder %s6113_s25, %s6106_s30 }
 0x11f   : > { %p6109_p4 = pnand %p6107_p1, %p6426_p6 }
 0x120   : > { %p6116_p10 = por %p6115_p9, %p6114_p8 }
 0x121   : > { %p6110_p7 = pneg %p6109_p4 }
 0x123   : > { %p6117_p3 = pnand %p6116_p10, %p6110_p7 }
 0x125   : > { %6120 = shalt.err (!%p6117_p3)
}
 0x126   : > { %5414 = dma.hbm_to_vmem [thread:$0]  (!%p6416_p5), %s7678_s23, 16, %s859_s7, [#allocation44]  }
 0x127   : > { %p7732_p11 = scmp.ne.s32.totalorder %s7719_s0, 0 }
 0x129   : > { %871 = sbr.rel (%p7732_p11) target bundleno = 2129 (0x851), region = 116 }
 0x12e   : > { %p7733_p12 = scmp.ne.s32.totalorder %s7718_s29, 0 }
 0x130   : > { %6158 = dma.done.wait (%p7733_p12), [#allocation11], 64  }
 0x131   : > { %6160 = vsyncadd (%p7733_p12), [#allocation11], 4294967232 }
 0x132   : > { %6162 = dma.done.wait (%p7733_p12), [#allocation14], 32  }
 0x133   : > { %6164 = vsyncadd (%p7733_p12), [#allocation14], 4294967264 }
 0x134   : > { %6166 = dma.done.wait (%p7733_p12), [#allocation17], 528  }
 0x135   : > { %6168 = vsyncadd (%p7733_p12), [#allocation17], 4294966768 }
 0x136   : > { %6170 = dma.done.wait (%p7733_p12), [#allocation20], 32  }
 0x137   : > { %6172 = vsyncadd (%p7733_p12), [#allocation20], 4294967264 }
 0x138   : > { %6174 = dma.done.wait (%p7733_p12), [#allocation23], 8208  }
 0x139   : > { %6176 = vsyncadd (%p7733_p12), [#allocation23], 4294959088 }
 0x13a   : > { %6178 = dma.done.wait (%p7733_p12), [#allocation26], 256  }
 0x13b   : > { %6180 = vsyncadd (%p7733_p12), [#allocation26], 4294967040 }
 0x13c   : > { %6182 = dma.done.wait (%p7733_p12), [#allocation29], 65664  }
 0x13d   : > { %6184 = vsyncadd (%p7733_p12), [#allocation29], 4294901632 }
 0x13e   : > { %6186 = dma.done.wait (%p7733_p12), [#allocation32], 128  }
 0x13f   : > { %6188 = vsyncadd (%p7733_p12), [#allocation32], 4294967168 }
 0x140   : > { %6190 = dma.done.wait (%p7733_p12), [#allocation35], 16448  }
 0x141   : > { %6192 = vsyncadd (%p7733_p12), [#allocation35], 4294950848 }
 0x142   : > { %6194 = dma.done.wait (%p7733_p12), [#allocation38], 64  }
 0x143   : > { %6196 = vsyncadd (%p7733_p12), [#allocation38], 4294967232 }
 0x144   : > { %6198 = dma.done.wait (%p7733_p12), [#allocation41], 48  }
 0x145   : > { %6200 = vsyncadd (%p7733_p12), [#allocation41], 4294967248 }
 0x146   : > { %6202 = dma.done.wait (%p7733_p12), [#allocation44], 16  }
 0x147   : > { %6204 = vsyncadd (%p7733_p12), [#allocation44], 4294967280  ;;  %p1023_p5 = scmp.eq.s32.totalorder %s6211_s5, 0 }
 0x148   : > { %vm1029_vm0 = vcmask (%p1023_p5), 516096   ;;  %v6249_v0 = vmov (%p1023_p5), 0.0  }
 0x149   : > { %1028 = sbr.rel (!%p1023_p5) target bundleno = 334 (0x14e), region = 208  ;;  %1030 = vst.msk [vmem:[#allocation2] sm:$0x1] (%p1023_p5), %vm1029_vm0, %v6249_v0  ;;  %1031 = vst.msk [vmem:[#allocation3] sm:$0x1] (%p1023_p5), %vm1029_vm0, %v6249_v0 }
 0x14a   : > { %1032 = vst [vmem:[#allocation4] sm:$0x1] (%p1023_p5), %v6249_v0  ;;  %1033 = vst [vmem:[#allocation5] sm:$0x1] (%p1023_p5), %v6249_v0 }
 0x14b   : > { %1034 = vst [vmem:[#allocation6] sm:$0xff] (%p1023_p5), %v6249_v0  ;;  %1035 = vst [vmem:[#allocation7] sm:$0xff] (%p1023_p5), %v6249_v0 }
 0x14e PF: > { %s7734_s28 = sld [smem:[#allocation69_spill]]  ;;  %v6250_v3 = vmov 0   ;;  %v6251_v6 = vmov 1   ;;  %v6252_v7 = vmov 2   ;;  %v1061_v8 = vlaneseq  ;;  %v1040_v16 = vld [vmem:[#allocation10] sm:$0x7] }
 0x14f   : > { %5522 = vset.pattern.permute.xlu1 %v6250_v3  ;;  %5521 = vset.pattern.permute.xlu0 %v6250_v3  ;;  %v5120_v36 = vld [vmem:[#allocation13] ss:$0 sm:$0xff]  ;;  %p5121_p6 = scmp.ne.s32.totalorder %s6211_s5, 0 }
 0x150   : > { %v6674_v11 = vshrl.u32 %v1061_v8, 7 }
 0x152   : > { %v6677_v14 = vsub.s32 1, %v6674_v11  ;;  %v6680_v15 = vsub.s32 0, %v6674_v11  ;;  %v6684_v20 = vsub.s32 2, %v6674_v11 }
 0x154   : > { %v1038_v1 = vld [vmem:[%s7734_s28 + $0x10] sm:$0xff]  ;;  %v1036_v2 = vld [vmem:[%s7734_s28] sm:$0xff]  ;;  %v1039_v4 = vld [vmem:[%s7734_s28 + $0x18] sm:$0xff]  ;;  %7735 = vst [vmem:[#allocation60_spill] sm:$0xff] %v6677_v14  ;;  %v1088_v19 = vrot.slane %v1040_v16, %v6677_v14  ;;  %v1064_v21 = vrot.slane %v1040_v16, %v6680_v15  ;;  %v1116_v28 = vrot.slane %v1040_v16, %v6684_v20 }
 0x155   : > { %1053 = vperm.xlu1 %5522, %v1038_v1   ;;  %1043 = vperm.xlu0 %5521, %v1036_v2   ;;  %v1037_v5 = vld [vmem:[%s7734_s28 + $0x8] sm:$0xff]  ;;  %7736 = vst [vmem:[#allocation61_spill] sm:$0xff] %v6680_v15  ;;  %7737 = vst [vmem:[#allocation62_spill] sm:$0xff] %v6684_v20 }
 0x159   : > { %1058 = vperm.xlu1 %5522, %v1039_v4   ;;  %1048 = vperm.xlu0 %5521, %v1037_v5  }
 0x15d   : > { %5524 = vset.pattern.permute.xlu1 %v6251_v6  ;;  %5523 = vset.pattern.permute.xlu0 %v6251_v6 }
 0x15e   : > { %1074 = vperm.xlu1 %5524, %v1037_v5   ;;  %1070 = vperm.xlu0 %5523, %v1036_v2  }
 0x162   : > { %1078 = vperm.xlu1 %5524, %v1038_v1   ;;  %1082 = vperm.xlu0 %5523, %v1039_v4  }
 0x166   : > { %5525 = vset.pattern.permute.xlu1 %v6252_v7  ;;  %5526 = vset.pattern.permute.xlu0 %v6252_v7 }
 0x167   : > { %1098 = vperm.xlu1 %5525, %v1036_v2   ;;  %1102 = vperm.xlu0 %5526, %v1037_v5  }
 0x16b   : > { %1106 = vperm.xlu1 %5525, %v1038_v1  }
 0x16f   : > { %1110 = vperm.xlu1 %5525, %v1039_v4  }
 0x1d0   : > { %v1054_v9 = vpop.permute.xlu1 %1053  ;;  %v1044_v10 = vpop.permute.xlu0 %1043 }
 0x1d1   : > { %v1065_v26 = vmul.f32 %v1064_v21, %v1044_v10  ;;  %v1067_v37 = vmul.f32 %v1064_v21, %v1054_v9 }
 0x1d4   : > { %v1059_v12 = vpop.permute.xlu1 %1058  ;;  %v1049_v13 = vpop.permute.xlu0 %1048 }
 0x1d5   : > { %v1066_v24 = vmul.f32 %v1064_v21, %v1049_v13  ;;  %v1068_v46 = vmul.f32 %v1064_v21, %v1059_v12 }
 0x1d9   : > { %v1075_v17 = vpop.permute.xlu1 %1074  ;;  %v1071_v18 = vpop.permute.xlu0 %1070 }
 0x1da   : > { %v1090_v25 = vmul.f32 %v1088_v19, %v1075_v17  ;;  %v1089_v27 = vmul.f32 %v1088_v19, %v1071_v18 }
 0x1dc   : > { %v1094_v29 = vadd.f32 %v1090_v25, %v1066_v24  ;;  %v1093_v32 = vadd.f32 %v1089_v27, %v1065_v26 }
 0x1dd   : > { %v1079_v22 = vpop.permute.xlu1 %1078  ;;  %v1083_v23 = vpop.permute.xlu0 %1082 }
 0x1de   : > { %v1091_v33 = vmul.f32 %v1088_v19, %v1079_v22  ;;  %v1092_v40 = vmul.f32 %v1088_v19, %v1083_v23 }
 0x1e0   : > { %v1095_v42 = vadd.f32 %v1091_v33, %v1067_v37  ;;  %v1096_v49 = vadd.f32 %v1092_v40, %v1068_v46 }
 0x1e2   : > { %v1099_v30 = vpop.permute.xlu1 %1098  ;;  %v1103_v31 = vpop.permute.xlu0 %1102 }
 0x1e3   : > { %v1117_v34 = vmul.f32 %v1116_v28, %v1099_v30  ;;  %v1118_v35 = vmul.f32 %v1116_v28, %v1103_v31 }
 0x1e5   : > { %v1121_v38 = vadd.f32 %v1117_v34, %v1093_v32  ;;  %v1122_v39 = vadd.f32 %v1118_v35, %v1094_v29 }
 0x1e6   : > { %v1107_v41 = vpop.permute.xlu1 %1106 }
 0x1e7   : > { %v6688_v43 = vadd.f32 %v5120_v36, %v1121_v38  ;;  %v6690_v44 = vadd.f32 %v5120_v36, %v1122_v39  ;;  %v1119_v45 = vmul.f32 %v1116_v28, %v1107_v41 }
 0x1e9   : > { %v1123_v47 = vadd.f32 %v1119_v45, %v1095_v42 }
 0x1ea   : > { %v1111_v48 = vpop.permute.xlu1 %1110 }
 0x1eb   : > { %v6692_v50 = vadd.f32 %v5120_v36, %v1123_v47  ;;  %v1120_v51 = vmul.f32 %v1116_v28, %v1111_v48  ;;  %1138 = sbr.rel (%p5121_p6) target bundleno = 520 (0x208), region = 212 }
 0x1ed   : > { %v1124_v52 = vadd.f32 %v1120_v51, %v1096_v49 }
 0x1ef   : > { %v6694_v53 = vadd.f32 %v5120_v36, %v1124_v52 }
 0x1f0   : > { %vm1140_vm1 = vcmask 523264   ;;  %v1158_v54 = vmul.f32 %v6688_v43, %v6688_v43  ;;  %v1159_v55 = vmul.f32 %v6690_v44, %v6690_v44  ;;  %v1160_v60 = vmul.f32 %v6692_v50, %v6692_v50  ;;  %v1139_v21 = vld [vmem:[#allocation2] sm:$0x1]  ;;  %v1157_v24 = vld [vmem:[#allocation3] sm:$0x1] }
 0x1f1   : > { %v1141_v56 = vsel %vm1140_vm1, %v6688_v43, 0.0  ;;  %v1142_v57 = vsel %vm1140_vm1, %v6690_v44, 0.0  ;;  %v1144_v58 = vsel %vm1140_vm1, %v6692_v50, 0.0  ;;  %v1161_v61 = vmul.f32 %v6694_v53, %v6694_v53 }
 0x1f2   : > { %v1143_v59 = vadd.f32 %v1142_v57, %v1141_v56  ;;  %v1162_v62 = vsel %vm1140_vm1, %v1158_v54, 0.0  ;;  %v1146_v63 = vsel %vm1140_vm1, %v6694_v53, 0.0  ;;  %v1163_v0 = vsel %vm1140_vm1, %v1159_v55, 0.0 }
 0x1f3   : > { %v1164_v2 = vadd.f32 %v1163_v0, %v1162_v62  ;;  %v1165_v3 = vsel %vm1140_vm1, %v1160_v60, 0.0  ;;  %v1167_v4 = vsel %vm1140_vm1, %v1161_v61, 0.0  ;;  %vm1155_vm2 = vcmask 516096  }
 0x1f4   : > { %v1145_v1 = vadd.f32 %v1144_v58, %v1143_v59 }
 0x1f5   : > { %v1166_v6 = vadd.f32 %v1165_v3, %v1164_v2 }
 0x1f6   : > { %v1147_v5 = vadd.f32 %v1146_v63, %v1145_v1 }
 0x1f7   : > { %v1168_v8 = vadd.f32 %v1167_v4, %v1166_v6 }
 0x1f8   : > { %v1148_v7 = vrot.slane %v1147_v5, 4 }
 0x1f9   : > { %v1169_v10 = vrot.slane %v1168_v8, 4 }
 0x1fa   : > { %v1149_v9 = vadd.f32 %v1148_v7, %v1147_v5 }
 0x1fb   : > { %v1170_v13 = vadd.f32 %v1169_v10, %v1168_v8 }
 0x1fc   : > { %v1150_v12 = vrot.slane %v1149_v9, 2 }
 0x1fd   : > { %v1171_v17 = vrot.slane %v1170_v13, 2 }
 0x1fe   : > { %v1151_v16 = vadd.f32 %v1150_v12, %v1149_v9 }
 0x1ff   : > { %v1172_v19 = vadd.f32 %v1171_v17, %v1170_v13 }
 0x200   : > { %v1152_v18 = vrot.slane %v1151_v16, 1 }
 0x201   : > { %v1173_v23 = vrot.slane %v1172_v19, 1 }
 0x202   : > { %v1153_v22 = vadd.f32 %v1152_v18, %v1151_v16 }
 0x203   : > { %v1174_v26 = vadd.f32 %v1173_v23, %v1172_v19 }
 0x204   : > { %v1154_v25 = vadd.f32 %v1153_v22, %v1139_v21 }
 0x205   : > { %v1175_v27 = vadd.f32 %v1174_v26, %v1157_v24 }
 0x206   : > { %1156 = vst.msk [vmem:[#allocation2] sm:$0x1] %vm1155_vm2, %v1154_v25 }
 0x207   : > { %1176 = vst.msk [vmem:[#allocation3] sm:$0x1] %vm1155_vm2, %v1175_v27 }
 0x208 PF: > { %p5122_p2 = scmp.lt.s32.totalorder %s6211_s5, 1 }
 0x209   : > { %p5130_p13 = scmp.ne.s32.totalorder (!%p5122_p2), %s6211_s5, 1 }
 0x20a   : > { %1180 = sbr.rel (%p5122_p2) target bundleno = 2104 (0x838), region = 216 }
 0x20f   : > { %v5527_v28 = vld [vmem:[#allocation18 + $0x18] sm:$0xff]   ;;  %v5528_v29 = vld [vmem:[#allocation18 + $0x10] sm:$0xff]   ;;  %v5529_v30 = vld [vmem:[#allocation18 + $0x8] sm:$0xff]   ;;  %vm1259_vm3 = vcmask 523264  }
 0x210   : > { %5244 = vmatprep.subr.bf16.mxu0 %v5527_v28  ;;  %v1181_v31 = vld [vmem:[#allocation2] sm:$0x1]  ;;  %v1182_v32 = vld [vmem:[#allocation3] sm:$0x1]  ;;  %v1183_v39 = vld [vmem:[#allocation15] sm:$0x1] }
 0x211   : > { %5245 = vmatpush3.bf16.msra.mxu0 %v5527_v28  ;;  %v1185_v33 = vmul.f32 0.03125, %v1181_v31  ;;  %v1186_v34 = vmul.f32 0.03125, %v1182_v32  ;;  %v5530_v36 = vld [vmem:[#allocation18] sm:$0xff]   ;;  %v1184_v42 = vld [vmem:[#allocation16] sm:$0x1] }
 0x212   : > { %5246 = vmatprep.subr.bf16.mxu0 %v5528_v29 }
 0x213   : > { %v1187_v35 = vmul.f32 %v1185_v33, %v1185_v33 }
 0x215   : > { %5247 = vmatpush3.bf16.msra.mxu0 %v5528_v29  ;;  %v1188_v37 = vsub.f32 %v1186_v34, %v1187_v35 }
 0x216   : > { %5248 = vmatprep.subr.bf16.mxu0 %v5529_v30 }
 0x217   : > { %v1189_v38 = vadd.f32 1e-05, %v1188_v37 }
 0x219   : > { %5249 = vmatpush3.bf16.msra.mxu0 %v5529_v30  ;;  %5531 = vrsqrt.f32 %v1189_v38 }
 0x21a   : > { %5250 = vmatprep.subr.bf16.mxu0 %v5530_v36 }
 0x21d   : > { %5251 = vmatpush3.bf16.msra.mxu0 %v5530_v36 }
 0x226   : > { %v5532_v40 = vpop.eup %5531 }
 0x227   : > { %v1191_v41 = vmul.f32 %v5532_v40, %v1183_v39 }
 0x229   : > { %v1192_v45 = vmul.f32 %v1191_v41, %v1185_v33  ;;  %v1198_v46 = vrot.slane %v1191_v41, %v6680_v15 }
 0x22b   : > { %v1193_v47 = vsub.f32 %v1184_v42, %v1192_v45  ;;  %v1200_v48 = vmul.f32 %v1198_v46, %v6688_v43  ;;  %v1201_v49 = vmul.f32 %v1198_v46, %v6690_v44  ;;  %v1202_v51 = vmul.f32 %v1198_v46, %v6692_v50  ;;  %v5123_v43 = vld [vmem:[#allocation19] ss:$0 sm:$0xff] }
 0x22c   : > { %v1203_v52 = vmul.f32 %v1198_v46, %v6694_v53 }
 0x22d   : > { %v1208_v54 = vrot.slane %v1193_v47, %v6680_v15 }
 0x22f   : > { %v1210_v55 = vadd.f32 %v1208_v54, %v1200_v48  ;;  %v1211_v56 = vadd.f32 %v1208_v54, %v1201_v49  ;;  %v1212_v57 = vadd.f32 %v1208_v54, %v1202_v51  ;;  %v1213_v58 = vadd.f32 %v1208_v54, %v1203_v52 }
 0x231   : > { %v1214_v59 = vmax.f32 %v1210_v55, 0.0  ;;  %v1215_v60 = vmax.f32 %v1211_v56, 0.0  ;;  %v1216_v61 = vmax.f32 %v1212_v57, 0.0  ;;  %v1217_v62 = vmax.f32 %v1213_v58, 0.0 }
 0x233   : > { %v1218_v63 = vpack.c.bf16 %v1215_v60, %v1214_v59  ;;  %v1219_v0 = vpack.c.bf16 %v1217_v62, %v1216_v61 }
 0x235   : > { %5252 = vmatprep.mubr.msk.bf16.mxu0 %vm1259_vm3, %v1218_v63 }
 0x236   : > { %5253 = vmatmul.mubr.msk.bf16.vlgmr.msra.gmra.mxu0 %vm1259_vm3, %v1219_v0 }
 0x2f6   : > { %v5254_v44 = vpop.f32.mrf.mxu0 }
 0x2f7   : > { %v6716_v50 = vadd.f32 %v5254_v44, %v5123_v43 }
 0x2f8   : > { %v1300_v53 = vpop.f32.mrf.mxu0 }
 0x2f9   : > { %v6718_v1 = vadd.f32 %v5123_v43, %v1300_v53  ;;  %1318 = sbr.rel (%p5130_p13) target bundleno = 790 (0x316), region = 220 }
 0x2fa   : > { %v5255_v2 = vpop.f32.mrf.mxu0 }
 0x2fb   : > { %v6720_v3 = vadd.f32 %v5255_v2, %v5123_v43 }
 0x2fc   : > { %v1303_v4 = vpop.f32.mrf.mxu0 }
 0x2fd   : > { %v6722_v5 = vadd.f32 %v5123_v43, %v1303_v4 }
 0x2fe   : > { %v1332_v7 = vmul.f32 %v6718_v1, %v6718_v1  ;;  %v1334_v9 = vmul.f32 %v6716_v50, %v6716_v50  ;;  %v1335_v12 = vmul.f32 %v6720_v3, %v6720_v3  ;;  %v1319_v29 = vld [vmem:[#allocation4] sm:$0x1]  ;;  %v1331_v32 = vld [vmem:[#allocation5] sm:$0x1] }
 0x2ff   : > { %v1320_v6 = vadd.f32 %v6722_v5, %v6718_v1  ;;  %v1333_v8 = vmul.f32 %v6722_v5, %v6722_v5 }
 0x301   : > { %v1321_v10 = vadd.f32 %v1320_v6, %v6716_v50  ;;  %v1336_v13 = vadd.f32 %v1333_v8, %v1332_v7 }
 0x303   : > { %v1322_v16 = vadd.f32 %v1321_v10, %v6720_v3  ;;  %v1337_v17 = vadd.f32 %v1336_v13, %v1334_v9 }
 0x305   : > { %v1323_v18 = vrot.slane %v1322_v16, 4  ;;  %v1338_v19 = vadd.f32 %v1337_v17, %v1335_v12 }
 0x307   : > { %v1324_v21 = vadd.f32 %v1323_v18, %v1322_v16  ;;  %v1339_v22 = vrot.slane %v1338_v19, 4 }
 0x309   : > { %v1325_v23 = vrot.slane %v1324_v21, 2  ;;  %v1340_v24 = vadd.f32 %v1339_v22, %v1338_v19 }
 0x30b   : > { %v1326_v25 = vadd.f32 %v1325_v23, %v1324_v21  ;;  %v1341_v26 = vrot.slane %v1340_v24, 2 }
 0x30d   : > { %v1327_v27 = vrot.slane %v1326_v25, 1  ;;  %v1342_v28 = vadd.f32 %v1341_v26, %v1340_v24 }
 0x30f   : > { %v1328_v30 = vadd.f32 %v1327_v27, %v1326_v25  ;;  %v1343_v31 = vrot.slane %v1342_v28, 1 }
 0x311   : > { %v1329_v33 = vadd.f32 %v1328_v30, %v1319_v29  ;;  %v1344_v34 = vadd.f32 %v1343_v31, %v1342_v28 }
 0x313   : > { %1330 = vst [vmem:[#allocation4] sm:$0x1] %v1329_v33  ;;  %v1345_v35 = vadd.f32 %v1344_v34, %v1331_v32 }
 0x315   : > { %1346 = vst [vmem:[#allocation5] sm:$0x1] %v1345_v35 }
 0x316 PF: > { %p5131_p0 = scmp.ne.s32.totalorder %s6211_s5, 2 }
 0x318   : > { %1350 = sbr.rel (%p5131_p0) target bundleno = 2104 (0x838), region = 224 }
 0x31d   : > { %v1446_v36 = vld [vmem:[#allocation24 + $0x1c0] sm:$0xff]  ;;  %v1447_v38 = vld [vmem:[#allocation24 + $0x1c8] sm:$0xff]  ;;  %v7687_v46 = vmov 0   ;;  %v1351_v13 = vld [vmem:[#allocation4] sm:$0x1]  ;;  %vm2528_vm4 = vcmask 1041409  }
 0x31e   : > { %v1450_v37 = vld [vmem:[#allocation24 + $0x1e0] sm:$0xff]  ;;  %v1451_v40 = vld [vmem:[#allocation24 + $0x1e8] sm:$0xff]  ;;  %1848 = vmatprep.mubr.bf16.mxu0 %v7687_v46  ;;  %1901 = vmatprep.mubr.bf16.mxu1 %v7687_v46  ;;  %v1352_v16 = vld [vmem:[#allocation5] sm:$0x1]  ;;  %v6740_v19 = vmul.f32 0.03125, %v1351_v13  ;;  %vm2530_vm5 = vcmask 1043459  }
 0x31f   : > { %v5189_v39 = vcombine.high %v1446_v36, %v1450_v37  ;;  %v5188_v41 = vcombine.low %v1446_v36, %v1450_v37  ;;  %v1438_v42 = vld [vmem:[#allocation24 + $0x180] sm:$0xff]  ;;  %v5191_v47 = vcombine.high %v1447_v38, %v1451_v40  ;;  %v5190_v48 = vcombine.low %v1447_v38, %v1451_v40  ;;  %v1439_v51 = vld [vmem:[#allocation24 + $0x188] sm:$0xff]  ;;  %s7775_s6 = sld [smem:[#allocation80_spill]] }
 0x320   : > { %v1442_v45 = vld [vmem:[#allocation24 + $0x1a0] sm:$0xff]  ;;  %v1443_v52 = vld [vmem:[#allocation24 + $0x1a8] sm:$0xff]  ;;  %v1356_v21 = vmul.f32 0.03125, %v1352_v16  ;;  %v1357_v27 = vmul.f32 %v6740_v19, %v6740_v19  ;;  %v1440_v16 = vld [vmem:[#allocation24 + $0x190] sm:$0xff]  ;;  %vm2532_vm6 = vcmask 1045509   ;;  %vm2534_vm7 = vcmask 1047559  }
 0x321   : > { %v5181_v49 = vcombine.high %v1438_v42, %v1442_v45  ;;  %v1430_v54 = vld [vmem:[#allocation24 + $0x140] sm:$0xff]  ;;  %1816 = vmatprep.subr.bf16.mxu0 %v5189_v39  ;;  %v5183_v55 = vcombine.high %v1439_v51, %v1443_v52  ;;  %v1431_v57 = vld [vmem:[#allocation24 + $0x148] sm:$0xff]  ;;  %1869 = vmatprep.subr.bf16.mxu1 %v5191_v47  ;;  %v5180_v59 = vcombine.low %v1438_v42, %v1442_v45  ;;  %vm4184_vm1 = vcmask 1041408  }
 0x322   : > { %v1434_v56 = vld [vmem:[#allocation24 + $0x160] sm:$0xff]  ;;  %v1435_v58 = vld [vmem:[#allocation24 + $0x168] sm:$0xff]  ;;  %1817 = vmatpush1.bf16.msra.mxu0 %v5188_v41  ;;  %1870 = vmatpush1.bf16.msra.mxu1 %v5190_v48  ;;  %v5182_v60 = vcombine.low %v1439_v51, %v1443_v52  ;;  %v1358_v31 = vsub.f32 %v1356_v21, %v1357_v27  ;;  %v1445_v21 = vld [vmem:[#allocation24 + $0x1b8] sm:$0xff]  ;;  %vm4795_vm2 = vcmask 66560  }
 0x323   : > { %1818 = vmatprep.subr.bf16.mxu0 %v5181_v49  ;;  %v5173_v61 = vcombine.high %v1430_v54, %v1434_v56  ;;  %1871 = vmatprep.subr.bf16.mxu1 %v5183_v55  ;;  %v5175_v62 = vcombine.high %v1431_v57, %v1435_v58  ;;  %v1422_v63 = vld [vmem:[#allocation24 + $0x100] sm:$0xff]  ;;  %v1423_v43 = vld [vmem:[#allocation24 + $0x108] sm:$0xff]  ;;  %v5172_v53 = vcombine.low %v1430_v54, %v1434_v56  ;;  %v1448_v55 = vld [vmem:[#allocation24 + $0x1d0] sm:$0xff] }
 0x324   : > { %v1426_v0 = vld [vmem:[#allocation24 + $0x120] sm:$0xff]  ;;  %v1427_v44 = vld [vmem:[#allocation24 + $0x128] sm:$0xff]  ;;  %v5174_v2 = vcombine.low %v1431_v57, %v1435_v58  ;;  %v1359_v37 = vadd.f32 1e-05, %v1358_v31  ;;  %v1452_v56 = vld [vmem:[#allocation24 + $0x1f0] sm:$0xff] }
 0x325   : > { %v5165_v4 = vcombine.high %v1422_v63, %v1426_v0  ;;  %v5167_v6 = vcombine.high %v1423_v43, %v1427_v44  ;;  %v1414_v7 = vld [vmem:[#allocation24 + $0xc0] sm:$0xff]  ;;  %v1415_v9 = vld [vmem:[#allocation24 + $0xc8] sm:$0xff]  ;;  %v5164_v12 = vcombine.low %v1422_v63, %v1426_v0  ;;  %v5166_v17 = vcombine.low %v1423_v43, %v1427_v44  ;;  %v1449_v57 = vld [vmem:[#allocation24 + $0x1d8] sm:$0xff] }
 0x326   : > { %1819 = vmatpush1.bf16.msra.mxu0 %v5180_v59  ;;  %1872 = vmatpush1.bf16.msra.mxu1 %v5182_v60  ;;  %v1418_v8 = vld [vmem:[#allocation24 + $0xe0] sm:$0xff]  ;;  %v1419_v10 = vld [vmem:[#allocation24 + $0xe8] sm:$0xff]  ;;  %5533 = vrsqrt.f32 %v1359_v37  ;;  %v1453_v58 = vld [vmem:[#allocation24 + $0x1f8] sm:$0xff] }
 0x327   : > { %1820 = vmatprep.subr.bf16.mxu0 %v5173_v61  ;;  %1873 = vmatprep.subr.bf16.mxu1 %v5175_v62  ;;  %v5157_v18 = vcombine.high %v1414_v7, %v1418_v8  ;;  %v5159_v22 = vcombine.high %v1415_v9, %v1419_v10  ;;  %v1406_v23 = vld [vmem:[#allocation24 + $0x80] sm:$0xff]  ;;  %v1407_v25 = vld [vmem:[#allocation24 + $0x88] sm:$0xff]  ;;  %v5156_v28 = vcombine.low %v1414_v7, %v1418_v8  ;;  %v1353_v63 = vld [vmem:[#allocation21] sm:$0x1] }
 0x328   : > { %v1410_v24 = vld [vmem:[#allocation24 + $0xa0] sm:$0xff]  ;;  %v1411_v26 = vld [vmem:[#allocation24 + $0xa8] sm:$0xff]  ;;  %v5158_v29 = vcombine.low %v1415_v9, %v1419_v10  ;;  %v5193_v61 = vcombine.high %v1448_v55, %v1452_v56  ;;  %v5195_v62 = vcombine.high %v1449_v57, %v1453_v58  ;;  %v1354_v44 = vld [vmem:[#allocation22] sm:$0x1] }
 0x329   : > { %v5149_v30 = vcombine.high %v1406_v23, %v1410_v24  ;;  %v5151_v32 = vcombine.high %v1407_v25, %v1411_v26  ;;  %v1398_v33 = vld [vmem:[#allocation24 + $0x40] sm:$0xff]  ;;  %v1399_v35 = vld [vmem:[#allocation24 + $0x48] sm:$0xff]  ;;  %v5148_v38 = vcombine.low %v1406_v23, %v1410_v24  ;;  %v5150_v39 = vcombine.low %v1407_v25, %v1411_v26  ;;  %v1428_v37 = vld [vmem:[#allocation24 + $0x130] sm:$0xff] }
 0x32a   : > { %1821 = vmatpush1.bf16.msra.mxu0 %v5172_v53  ;;  %1874 = vmatpush1.bf16.msra.mxu1 %v5174_v2  ;;  %v1402_v34 = vld [vmem:[#allocation24 + $0x60] sm:$0xff]  ;;  %v1403_v36 = vld [vmem:[#allocation24 + $0x68] sm:$0xff]  ;;  %v5192_v25 = vcombine.low %v1448_v55, %v1452_v56 }
 0x32b   : > { %1822 = vmatprep.subr.bf16.mxu0 %v5165_v4  ;;  %1875 = vmatprep.subr.bf16.mxu1 %v5167_v6  ;;  %v5141_v40 = vcombine.high %v1398_v33, %v1402_v34  ;;  %v5143_v41 = vcombine.high %v1399_v35, %v1403_v36  ;;  %v1390_v42 = vld [vmem:[#allocation24] sm:$0xff]  ;;  %v1391_v47 = vld [vmem:[#allocation24 + $0x8] sm:$0xff]  ;;  %v5140_v49 = vcombine.low %v1398_v33, %v1402_v34 }
 0x32c   : > { %v1394_v45 = vld [vmem:[#allocation24 + $0x20] sm:$0xff]  ;;  %v1395_v48 = vld [vmem:[#allocation24 + $0x28] sm:$0xff]  ;;  %v5142_v51 = vcombine.low %v1399_v35, %v1403_v36  ;;  %v1424_v36 = vld [vmem:[#allocation24 + $0x110] sm:$0xff] }
 0x32d   : > { %v5133_v52 = vcombine.high %v1390_v42, %v1394_v45  ;;  %v5135_v54 = vcombine.high %v1391_v47, %v1395_v48  ;;  %v5132_v59 = vcombine.low %v1390_v42, %v1394_v45  ;;  %v5134_v60 = vcombine.low %v1391_v47, %v1395_v48  ;;  %v1416_v48 = vld [vmem:[#allocation24 + $0xd0] sm:$0xff] }
 0x32e   : > { %1823 = vmatpush1.bf16.msra.mxu0 %v5164_v12  ;;  %1876 = vmatpush1.bf16.msra.mxu1 %v5166_v17  ;;  %v1444_v17 = vld [vmem:[#allocation24 + $0x1b0] sm:$0xff]  ;;  %v5169_v45 = vcombine.high %v1424_v36, %v1428_v37 }
 0x32f   : > { %1824 = vmatprep.subr.bf16.mxu0 %v5157_v18  ;;  %1877 = vmatprep.subr.bf16.mxu1 %v5159_v22  ;;  %v1441_v18 = vld [vmem:[#allocation24 + $0x198] sm:$0xff] }
 0x330   : > { %v5187_v27 = vcombine.high %v1441_v18, %v1445_v21  ;;  %v5186_v33 = vcombine.low %v1441_v18, %v1445_v21 }
 0x332   : > { %1825 = vmatpush1.bf16.msra.mxu0 %v5156_v28  ;;  %1878 = vmatpush1.bf16.msra.mxu1 %v5158_v29  ;;  %v1432_v28 = vld [vmem:[#allocation24 + $0x150] sm:$0xff]  ;;  %v1433_v29 = vld [vmem:[#allocation24 + $0x158] sm:$0xff] }
 0x333   : > { %1826 = vmatprep.subr.bf16.mxu0 %v5149_v30  ;;  %1879 = vmatprep.subr.bf16.mxu1 %v5151_v32  ;;  %v5534_v0 = vpop.eup %5533  ;;  %v5184_v32 = vcombine.low %v1440_v16, %v1444_v17 }
 0x334   : > { %v1361_v43 = vmul.f32 %v5534_v0, %v1353_v63 }
 0x336   : > { %1827 = vmatpush1.bf16.msra.mxu0 %v5148_v38  ;;  %1880 = vmatpush1.bf16.msra.mxu1 %v5150_v39  ;;  %v1362_v53 = vmul.f32 %v1361_v43, %v6740_v19  ;;  %v1368_v2 = vrot.slane %v1361_v43, %v6680_v15  ;;  %v1425_v38 = vld [vmem:[#allocation24 + $0x118] sm:$0xff] }
 0x337   : > { %1828 = vmatprep.subr.bf16.mxu0 %v5141_v40  ;;  %1881 = vmatprep.subr.bf16.mxu1 %v5143_v41  ;;  %v1429_v39 = vld [vmem:[#allocation24 + $0x138] sm:$0xff] }
 0x338   : > { %v1363_v4 = vsub.f32 %v1354_v44, %v1362_v53  ;;  %v1370_v6 = vmul.f32 %v1368_v2, %v6718_v1  ;;  %v1371_v7 = vmul.f32 %v1368_v2, %v6722_v5  ;;  %v1372_v9 = vmul.f32 %v1368_v2, %v6716_v50  ;;  %v1436_v50 = vld [vmem:[#allocation24 + $0x170] sm:$0xff] }
 0x339   : > { %v1373_v10 = vmul.f32 %v1368_v2, %v6720_v3  ;;  %v5194_v1 = vcombine.low %v1449_v57, %v1453_v58  ;;  %v5185_v5 = vcombine.high %v1440_v16, %v1444_v17  ;;  %v1437_v3 = vld [vmem:[#allocation24 + $0x178] sm:$0xff]  ;;  %v5177_v34 = vcombine.high %v1432_v28, %v1436_v50  ;;  %v1408_v58 = vld [vmem:[#allocation24 + $0x90] sm:$0xff] }
 0x33a   : > { %1829 = vmatpush1.bf16.msra.mxu0 %v5140_v49  ;;  %1882 = vmatpush1.bf16.msra.mxu1 %v5142_v51  ;;  %v1378_v8 = vrot.slane %v1363_v4, %v6680_v15  ;;  %v5179_v35 = vcombine.high %v1433_v29, %v1437_v3  ;;  %v5176_v41 = vcombine.low %v1432_v28, %v1436_v50  ;;  %v1420_v49 = vld [vmem:[#allocation24 + $0xf0] sm:$0xff]  ;;  %v1417_v51 = vld [vmem:[#allocation24 + $0xd8] sm:$0xff]  ;;  %v3265_v50 = vld [vmem:[#allocation30 + $0x5c8] sm:$0xff] }
 0x33b   : > { %1830 = vmatprep.subr.bf16.mxu0 %v5133_v52  ;;  %1883 = vmatprep.subr.bf16.mxu1 %v5135_v54  ;;  %v5178_v42 = vcombine.low %v1433_v29, %v1437_v3  ;;  %v5171_v47 = vcombine.high %v1425_v38, %v1429_v39  ;;  %v1421_v52 = vld [vmem:[#allocation24 + $0xf8] sm:$0xff]  ;;  %v5168_v54 = vcombine.low %v1424_v36, %v1428_v37  ;;  %v1400_v44 = vld [vmem:[#allocation24 + $0x50] sm:$0xff]  ;;  %v3125_v36 = vld [vmem:[#allocation30 + $0x168] sm:$0xff] }
 0x33c   : > { %v1380_v12 = vadd.f32 %v1378_v8, %v1370_v6  ;;  %v1381_v13 = vadd.f32 %v1378_v8, %v1371_v7  ;;  %v1382_v23 = vadd.f32 %v1378_v8, %v1372_v9  ;;  %v1383_v24 = vadd.f32 %v1378_v8, %v1373_v10  ;;  %v1404_v53 = vld [vmem:[#allocation24 + $0x70] sm:$0xff]  ;;  %v1401_v2 = vld [vmem:[#allocation24 + $0x58] sm:$0xff]  ;;  %v3257_v37 = vld [vmem:[#allocation30 + $0x588] sm:$0xff] }
 0x33d   : > { %v5170_v55 = vcombine.low %v1425_v38, %v1429_v39  ;;  %v5161_v56 = vcombine.high %v1416_v48, %v1420_v49  ;;  %v5163_v57 = vcombine.high %v1417_v51, %v1421_v52  ;;  %v5162_v63 = vcombine.low %v1417_v51, %v1421_v52  ;;  %v1405_v4 = vld [vmem:[#allocation24 + $0x78] sm:$0xff]  ;;  %v1392_v10 = vld [vmem:[#allocation24 + $0x10] sm:$0xff]  ;;  %v3117_v51 = vld [vmem:[#allocation30 + $0x128] sm:$0xff] }
 0x33e   : > { %1831 = vmatpush1.bf16.msra.mxu0 %v5132_v59  ;;  %1884 = vmatpush1.bf16.msra.mxu1 %v5134_v60  ;;  %v1384_v19 = vmax.f32 %v1380_v12, 0.0  ;;  %v1385_v22 = vmax.f32 %v1381_v13, 0.0  ;;  %v1386_v30 = vmax.f32 %v1382_v23, 0.0  ;;  %v1387_v31 = vmax.f32 %v1383_v24, 0.0  ;;  %v1412_v59 = vld [vmem:[#allocation24 + $0xb0] sm:$0xff]  ;;  %v1409_v60 = vld [vmem:[#allocation24 + $0x98] sm:$0xff] }
 0x33f   : > { %1922 = vmatprep.subr.bf16.mxu0 %v5193_v61  ;;  %1975 = vmatprep.subr.bf16.mxu1 %v5195_v62  ;;  %v1413_v61 = vld [vmem:[#allocation24 + $0xb8] sm:$0xff]  ;;  %v5160_v62 = vcombine.low %v1416_v48, %v1420_v49  ;;  %v5153_v0 = vcombine.high %v1408_v58, %v1412_v59  ;;  %v5152_v6 = vcombine.low %v1408_v58, %v1412_v59  ;;  %v1396_v12 = vld [vmem:[#allocation24 + $0x30] sm:$0xff]  ;;  %v3141_v24 = vld [vmem:[#allocation30 + $0x1e8] sm:$0xff] }
 0x340   : > { %v6751_v26 = vpack.c.bf16 %v1385_v22, %v1384_v19  ;;  %v6757_v40 = vpack.c.bf16 %v1387_v31, %v1386_v30  ;;  %v5155_v43 = vcombine.high %v1409_v60, %v1413_v61  ;;  %v5154_v7 = vcombine.low %v1409_v60, %v1413_v61  ;;  %v1393_v13 = vld [vmem:[#allocation24 + $0x18] sm:$0xff]  ;;  %v3129_v31 = vld [vmem:[#allocation30 + $0x188] sm:$0xff] }
 0x341   : > { %v5145_v8 = vcombine.high %v1400_v44, %v1404_v53  ;;  %v5147_v9 = vcombine.high %v1401_v2, %v1405_v4  ;;  %v1397_v16 = vld [vmem:[#allocation24 + $0x38] sm:$0xff]  ;;  %v5144_v17 = vcombine.low %v1400_v44, %v1404_v53  ;;  %v5146_v18 = vcombine.low %v1401_v2, %v1405_v4  ;;  %v3249_v52 = vld [vmem:[#allocation30 + $0x548] sm:$0xff] }
 0x342   : > { %1849 = vmatmul.mubr.bf16.vlgmr.msra.gmra.mxu0 %v6751_v26  ;;  %1902 = vmatmul.mubr.bf16.vlgmr.msra.gmra.mxu1 %v6751_v26  ;;  %v5137_v21 = vcombine.high %v1392_v10, %v1396_v12  ;;  %v5139_v19 = vcombine.high %v1393_v13, %v1397_v16  ;;  %v5136_v22 = vcombine.low %v1392_v10, %v1396_v12  ;;  %v3268_v28 = vld [vmem:[#allocation30 + $0x5e0] sm:$0xff]  ;;  %v3113_v58 = vld [vmem:[#allocation30 + $0x108] sm:$0xff] }
 0x343   : > { %1923 = vmatpush1.bf16.msra.mxu0 %v5192_v25  ;;  %1976 = vmatpush1.bf16.msra.mxu1 %v5194_v1  ;;  %v5138_v23 = vcombine.low %v1393_v13, %v1397_v16  ;;  %v3140_v25 = vld [vmem:[#allocation30 + $0x1e0] sm:$0xff]  ;;  %v3137_v1 = vld [vmem:[#allocation30 + $0x1c8] sm:$0xff] }
 0x344   : > { %1924 = vmatprep.subr.bf16.mxu0 %v5185_v5  ;;  %1977 = vmatprep.subr.bf16.mxu1 %v5187_v27  ;;  %v3269_v5 = vld [vmem:[#allocation30 + $0x5e8] sm:$0xff]  ;;  %v3136_v27 = vld [vmem:[#allocation30 + $0x1c0] sm:$0xff] }
 0x345   : > { %1858 = vmatprep.mubr.bf16.mxu0 %v7687_v46  ;;  %1911 = vmatprep.mubr.bf16.mxu1 %v7687_v46  ;;  %v3132_v29 = vld [vmem:[#allocation30 + $0x1a0] sm:$0xff]  ;;  %v3245_v60 = vld [vmem:[#allocation30 + $0x528] sm:$0xff] }
 0x346   : > { %v3264_v3 = vld [vmem:[#allocation30 + $0x5c0] sm:$0xff]  ;;  %v3241_v44 = vld [vmem:[#allocation30 + $0x508] sm:$0xff] }
 0x347   : > { %1925 = vmatpush1.bf16.msra.mxu0 %v5184_v32  ;;  %1978 = vmatpush1.bf16.msra.mxu1 %v5186_v33  ;;  %v3261_v32 = vld [vmem:[#allocation30 + $0x5a8] sm:$0xff]  ;;  %v3124_v39 = vld [vmem:[#allocation30 + $0x160] sm:$0xff] }
 0x348   : > { %1926 = vmatprep.subr.bf16.mxu0 %v5177_v34  ;;  %1979 = vmatprep.subr.bf16.mxu1 %v5179_v35  ;;  %v3128_v34 = vld [vmem:[#allocation30 + $0x180] sm:$0xff]  ;;  %v3105_v10 = vld [vmem:[#allocation30 + $0xc8] sm:$0xff] }
 0x349   : > { %v3260_v35 = vld [vmem:[#allocation30 + $0x5a0] sm:$0xff]  ;;  %v3237_v12 = vld [vmem:[#allocation30 + $0x4e8] sm:$0xff] }
 0x34a   : > { %1859 = vmatmul.mubr.bf16.gmra.mxu0 %v6757_v40  ;;  %1912 = vmatmul.mubr.bf16.gmra.mxu1 %v6757_v40  ;;  %v3120_v48 = vld [vmem:[#allocation30 + $0x140] sm:$0xff] }
 0x34b   : > { %1927 = vmatpush1.bf16.msra.mxu0 %v5176_v41  ;;  %1980 = vmatpush1.bf16.msra.mxu1 %v5178_v42  ;;  %v3121_v41 = vld [vmem:[#allocation30 + $0x148] sm:$0xff]  ;;  %v3252_v49 = vld [vmem:[#allocation30 + $0x560] sm:$0xff] }
 0x34c   : > { %1928 = vmatprep.subr.bf16.mxu0 %v5169_v45  ;;  %1981 = vmatprep.subr.bf16.mxu1 %v5171_v47  ;;  %v3253_v42 = vld [vmem:[#allocation30 + $0x568] sm:$0xff]  ;;  %v3108_v4 = vld [vmem:[#allocation30 + $0xe0] sm:$0xff] }
 0x34d   : > { %1954 = vmatprep.mubr.bf16.mxu0 %v7687_v46  ;;  %2007 = vmatprep.mubr.bf16.mxu1 %v7687_v46  ;;  %v6771_v45 = vld [vmem:[#allocation25] sm:$0xff]  ;;  %v3104_v13 = vld [vmem:[#allocation30 + $0xc0] sm:$0xff] }
 0x34e   : > { %v6781_v61 = vrot.slane %v6771_v45, %v6684_v20  ;;  %v3236_v16 = vld [vmem:[#allocation30 + $0x4e0] sm:$0xff] }
 0x34f   : > { %1929 = vmatpush1.bf16.msra.mxu0 %v5168_v54  ;;  %1982 = vmatpush1.bf16.msra.mxu1 %v5170_v55  ;;  %v3116_v55 = vld [vmem:[#allocation30 + $0x120] sm:$0xff] }
 0x350   : > { %1930 = vmatprep.subr.bf16.mxu0 %v5161_v56  ;;  %1983 = vmatprep.subr.bf16.mxu1 %v5163_v57  ;;  %v3248_v56 = vld [vmem:[#allocation30 + $0x540] sm:$0xff]  ;;  %v6777_v57 = vrot.slane %v6771_v45, %v6680_v15 }
 0x353   : > { %1931 = vmatpush1.bf16.msra.mxu0 %v5160_v62  ;;  %1984 = vmatpush1.bf16.msra.mxu1 %v5162_v63  ;;  %v3112_v63 = vld [vmem:[#allocation30 + $0x100] sm:$0xff] }
 0x354   : > { %1932 = vmatprep.subr.bf16.mxu0 %v5153_v0  ;;  %1985 = vmatprep.subr.bf16.mxu1 %v5155_v43  ;;  %v3244_v0 = vld [vmem:[#allocation30 + $0x520] sm:$0xff]  ;;  %v3109_v43 = vld [vmem:[#allocation30 + $0xe8] sm:$0xff] }
 0x357   : > { %1933 = vmatpush1.bf16.msra.mxu0 %v5152_v6  ;;  %1986 = vmatpush1.bf16.msra.mxu1 %v5154_v7  ;;  %v3240_v6 = vld [vmem:[#allocation30 + $0x500] sm:$0xff] }
 0x358   : > { %1934 = vmatprep.subr.bf16.mxu0 %v5145_v8  ;;  %1987 = vmatprep.subr.bf16.mxu1 %v5147_v9 }
 0x35b   : > { %1935 = vmatpush1.bf16.msra.mxu0 %v5144_v17  ;;  %1988 = vmatpush1.bf16.msra.mxu1 %v5146_v18  ;;  %v3101_v18 = vld [vmem:[#allocation30 + $0xa8] sm:$0xff] }
 0x35c   : > { %1936 = vmatprep.subr.bf16.mxu0 %v5137_v21  ;;  %1989 = vmatprep.subr.bf16.mxu1 %v5139_v19  ;;  %v6254_v19 = vmov 1983009808  }
 0x35f   : > { %1937 = vmatpush1.bf16.msra.mxu0 %v5136_v22  ;;  %1990 = vmatpush1.bf16.msra.mxu1 %v5138_v23  ;;  %v2458_v22 = vunpack.c.l.s4 %v6254_v19  ;;  %v6255_v23 = vmov 1966171168  }
 0x360   : > { %3614 = vmatprep.subr.mxu0 %v3141_v24  ;;  %3685 = vmatprep.subr.mxu1 %v3269_v5  ;;  %v2114_v24 = vunpack.c.l.s4 %v6255_v23  ;;  %v3085_v23 = vld [vmem:[#allocation30 + $0x28] sm:$0xff] }
 0x362   : > { %1955 = vmatmul.mubr.bf16.vlgmr.msra.gmra.mxu0 %v6751_v26  ;;  %2008 = vmatmul.mubr.bf16.vlgmr.msra.gmra.mxu1 %v6751_v26  ;;  %v3133_v26 = vld [vmem:[#allocation30 + $0x1a8] sm:$0xff] }
 0x363   : > { %1964 = vmatprep.mubr.bf16.mxu0 %v7687_v46  ;;  %2017 = vmatprep.mubr.bf16.mxu1 %v7687_v46 }
 0x364   : > { %3615 = vmatpush1.msra.mxu0 %v3140_v25  ;;  %3686 = vmatpush1.msra.mxu1 %v3268_v28  ;;  %v3233_v25 = vld [vmem:[#allocation30 + $0x4c8] sm:$0xff]  ;;  %v3100_v28 = vld [vmem:[#allocation30 + $0xa0] sm:$0xff] }
 0x365   : > { %3616 = vmatprep.subr.mxu0 %v3137_v1  ;;  %3687 = vmatprep.subr.mxu1 %v3265_v50  ;;  %v6803_v1 = vrot.slane %v6771_v45, %v6677_v14  ;;  %v6806_v50 = vsub.s32 3, %v6674_v11 }
 0x366   : > { %3617 = vmatpush1.msra.mxu0 %v3136_v27  ;;  %3688 = vmatpush1.msra.mxu1 %v3264_v3  ;;  %v3229_v3 = vld [vmem:[#allocation30 + $0x4a8] sm:$0xff] }
 0x367   : > { %3618 = vmatprep.subr.mxu0 %v3133_v26  ;;  %3689 = vmatprep.subr.mxu1 %v3261_v32  ;;  %v3232_v26 = vld [vmem:[#allocation30 + $0x4c0] sm:$0xff]  ;;  %7738 = vst [vmem:[#allocation63_spill] sm:$0xff] %v6806_v50 }
 0x368   : > { %3619 = vmatpush1.msra.mxu0 %v3132_v29  ;;  %3690 = vmatpush1.msra.mxu1 %v3260_v35  ;;  %v3097_v29 = vld [vmem:[#allocation30 + $0x88] sm:$0xff]  ;;  %v3096_v32 = vld [vmem:[#allocation30 + $0x80] sm:$0xff]  ;;  %v2115_v35 = vunpack.c.0.s8 %v2114_v24 }
 0x369   : > { %3620 = vmatprep.subr.mxu0 %v3129_v31  ;;  %3691 = vmatprep.subr.mxu1 %v3257_v37  ;;  %v3228_v37 = vld [vmem:[#allocation30 + $0x4a0] sm:$0xff] }
 0x36a   : > { %1965 = vmatmul.mubr.bf16.gmra.mxu0 %v6757_v40  ;;  %2018 = vmatmul.mubr.bf16.gmra.mxu1 %v6757_v40  ;;  %v3256_v40 = vld [vmem:[#allocation30 + $0x580] sm:$0xff] }
 0x36b   : > { %3621 = vmatpush1.msra.mxu0 %v3128_v34  ;;  %3692 = vmatpush1.msra.mxu1 %v3256_v40  ;;  %v2459_v34 = vunpack.c.0.s8 %v2458_v22 }
 0x36c   : > { %3622 = vmatprep.subr.mxu0 %v3125_v36  ;;  %3693 = vmatprep.subr.mxu1 %v3253_v42  ;;  %v6814_v36 = vsub.s32 4, %v6674_v11  ;;  %v6821_v42 = vsub.s32 6, %v6674_v11 }
 0x36d   : > { %3623 = vmatpush1.msra.mxu0 %v3124_v39  ;;  %3694 = vmatpush1.msra.mxu1 %v3252_v49  ;;  %v3225_v49 = vld [vmem:[#allocation30 + $0x488] sm:$0xff] }
 0x36e   : > { %3624 = vmatprep.subr.mxu0 %v3121_v41  ;;  %3695 = vmatprep.subr.mxu1 %v3249_v52  ;;  %7739 = vst [vmem:[#allocation64_spill] sm:$0xff] %v6814_v36  ;;  %7740 = vst [vmem:[#allocation65_spill] sm:$0xff] %v6821_v42  ;;  %v6828_v52 = vsub.s32 5, %v6674_v11 }
 0x36f   : > { %3625 = vmatpush1.msra.mxu0 %v3120_v48  ;;  %3696 = vmatpush1.msra.mxu1 %v3248_v56  ;;  %v3093_v48 = vld [vmem:[#allocation30 + $0x68] sm:$0xff] }
 0x370   : > { %3626 = vmatprep.subr.mxu0 %v3117_v51  ;;  %3697 = vmatprep.subr.mxu1 %v3245_v60  ;;  %v6825_v51 = vrot.slane %v6771_v45, %v6806_v50  ;;  %7741 = vst [vmem:[#allocation66_spill] sm:$0xff] %v6828_v52  ;;  %v3224_v60 = vld [vmem:[#allocation30 + $0x480] sm:$0xff] }
 0x371   : > { %3627 = vmatpush1.msra.mxu0 %v3116_v55  ;;  %3698 = vmatpush1.msra.mxu1 %v3244_v0  ;;  %v6838_v0 = vsub.s32 %v2459_v34, %v6674_v11  ;;  %v3216_v34 = vld [vmem:[#allocation30 + $0x440] sm:$0xff] }
 0x372   : > { %3628 = vmatprep.subr.mxu0 %v3113_v58  ;;  %3699 = vmatprep.subr.mxu1 %v3241_v44  ;;  %v3089_v44 = vld [vmem:[#allocation30 + $0x48] sm:$0xff] }
 0x373   : > { %3629 = vmatpush1.msra.mxu0 %v3112_v63  ;;  %3700 = vmatpush1.msra.mxu1 %v3240_v6 }
 0x374   : > { %3630 = vmatprep.subr.mxu0 %v3109_v43  ;;  %3701 = vmatprep.subr.mxu1 %v3237_v12  ;;  %v6841_v43 = vsub.s32 %v2115_v35, %v6674_v11  ;;  %v3088_v12 = vld [vmem:[#allocation30 + $0x40] sm:$0xff]  ;;  %v3081_v35 = vld [vmem:[#allocation30 + $0x8] sm:$0xff] }
 0x375   : > { %3631 = vmatpush1.msra.mxu0 %v3108_v4  ;;  %3702 = vmatpush1.msra.mxu1 %v3236_v16  ;;  %v6860_v16 = vrot.slane %v6771_v45, %v6828_v52 }
 0x376   : > { %3632 = vmatprep.subr.mxu0 %v3105_v10  ;;  %3703 = vmatprep.subr.mxu1 %v3233_v25  ;;  %v3221_v10 = vld [vmem:[#allocation30 + $0x468] sm:$0xff] }
 0x377   : > { %3633 = vmatpush1.msra.mxu0 %v3104_v13  ;;  %3704 = vmatpush1.msra.mxu1 %v3232_v26  ;;  %v3084_v26 = vld [vmem:[#allocation30 + $0x20] sm:$0xff] }
 0x378   : > { %3634 = vmatprep.subr.mxu0 %v3101_v18  ;;  %3705 = vmatprep.subr.mxu1 %v3229_v3  ;;  %v3220_v18 = vld [vmem:[#allocation30 + $0x460] sm:$0xff] }
 0x379   : > { %3635 = vmatpush1.msra.mxu0 %v3100_v28  ;;  %3706 = vmatpush1.msra.mxu1 %v3228_v37  ;;  %v3217_v28 = vld [vmem:[#allocation30 + $0x448] sm:$0xff] }
 0x37a   : > { %3636 = vmatprep.subr.mxu0 %v3097_v29  ;;  %3707 = vmatprep.subr.mxu1 %v3225_v49 }
 0x37b   : > { %3637 = vmatpush1.msra.mxu0 %v3096_v32  ;;  %3708 = vmatpush1.msra.mxu1 %v3224_v60 }
 0x37c   : > { %3638 = vmatprep.subr.mxu0 %v3093_v48  ;;  %3709 = vmatprep.subr.mxu1 %v3221_v10 }
 0x37d   : > { %3710 = vmatpush1.msra.mxu1 %v3220_v18 }
 0x37e   : > { %3711 = vmatprep.subr.mxu1 %v3217_v28  ;;  %v3200_v28 = vld [vmem:[#allocation30 + $0x3c0] sm:$0xff] }
 0x37f   : > { %3712 = vmatpush1.msra.mxu1 %v3216_v34 }
 0x402   : > { %v1850_v30 = vpop.f32.mrf.mxu0  ;;  %v1903_v33 = vpop.f32.mrf.mxu1 }
 0x403   : > { %v6787_v53 = vadd.f32 %v1850_v30, %v6777_v57  ;;  %v6793_v7 = vadd.f32 %v1903_v33, %v6781_v61 }
 0x404   : > { %v6769_v38 = vpop.f32.mrf.mxu0  ;;  %v6773_v47 = vpop.f32.mrf.mxu1 }
 0x405   : > { %v6818_v39 = vadd.f32 %v6769_v38, %v6803_v1  ;;  %v3092_v38 = vld [vmem:[#allocation30 + $0x60] sm:$0xff]  ;;  %v2164_v29 = vmul.f32 %v6793_v7, %v6793_v7 }
 0x406   : > { %v1854_v54 = vpop.f32.mrf.mxu0  ;;  %v1907_v59 = vpop.f32.mrf.mxu1  ;;  %3639 = vmatpush1.msra.mxu0 %v3092_v38  ;;  %v3213_v38 = vld [vmem:[#allocation30 + $0x428] sm:$0xff] }
 0x407   : > { %v6784_v62 = vadd.f32 %v1854_v54, %v6777_v57  ;;  %v6790_v2 = vadd.f32 %v1907_v59, %v6781_v61  ;;  %v6831_v54 = vsub.s32 7, %v6674_v11  ;;  %v6853_v11 = vadd.f32 %v6773_v47, %v6825_v51  ;;  %3640 = vmatprep.subr.mxu0 %v3089_v44  ;;  %3713 = vmatprep.subr.mxu1 %v3213_v38 }
 0x408   : > { %v1856_v21 = vpop.f32.mrf.mxu0  ;;  %v1909_v59 = vpop.f32.mrf.mxu1  ;;  %3641 = vmatpush1.msra.mxu0 %v3088_v12  ;;  %v2163_v3 = vmul.f32 %v6818_v39, %v6818_v39 }
 0x409   : > { %v2327_v8 = vmax.f32 %v6787_v53, %v6784_v62  ;;  %v2552_v9 = vmin.f32 %v6787_v53, %v6784_v62  ;;  %v2341_v17 = vmax.f32 %v6793_v7, %v6790_v2  ;;  %v6809_v31 = vadd.f32 %v1856_v21, %v6803_v1  ;;  %7742 = vst [vmem:[#allocation67_spill] sm:$0xff] %v6831_v54 }
 0x40a   : > { %v2566_v33 = vmin.f32 %v6793_v7, %v6790_v2  ;;  %v6856_v13 = vadd.f32 %v1909_v59, %v6825_v51  ;;  %v2162_v21 = vmul.f32 %v6787_v53, %v6787_v53  ;;  %v2170_v24 = vmul.f32 %v6784_v62, %v6784_v62  ;;  %3642 = vmatprep.subr.mxu0 %v3085_v23 }
 0x40b   : > { %v2328_v5 = vrot.slane %v2327_v8, 4  ;;  %v2553_v27 = vrot.slane %v2552_v9, 4  ;;  %v2342_v30 = vrot.slane %v2341_v17, 4  ;;  %v2334_v56 = vmax.f32 %v6818_v39, %v6809_v31  ;;  %3643 = vmatpush1.msra.mxu0 %v3084_v26 }
 0x40c   : > { %v2559_v58 = vmin.f32 %v6818_v39, %v6809_v31  ;;  %v2567_v63 = vrot.slane %v2566_v33, 4  ;;  %v2172_v25 = vmul.f32 %v6790_v2, %v6790_v2  ;;  %v6882_v37 = vadd.f32 %v6784_v62, %v6787_v53  ;;  %v3205_v62 = vld [vmem:[#allocation30 + $0x3e8] sm:$0xff]  ;;  %3644 = vmatprep.subr.mxu0 %v3081_v35 }
 0x40d   : > { %v2329_v40 = vmax.f32 %v2327_v8, %v2328_v5  ;;  %v2554_v41 = vmin.f32 %v2552_v9, %v2553_v27  ;;  %v2343_v55 = vmax.f32 %v2341_v17, %v2342_v30  ;;  %v6845_v8 = vrot.slane %v6771_v45, %v6814_v36  ;;  %v1860_v27 = vpop.f32.mrf.mxu0 }
 0x40e   : > { %v6849_v9 = vrot.slane %v6771_v45, %v6821_v42  ;;  %v6864_v17 = vrot.slane %v6771_v45, %v6831_v54  ;;  %v2335_v22 = vrot.slane %v2334_v56, 4  ;;  %v2560_v47 = vrot.slane %v2559_v58, 4  ;;  %v6872_v45 = vpop.f32.mrf.mxu1 }
 0x40f   : > { %v2330_v4 = vrot.slane %v2329_v40, 2  ;;  %v2555_v6 = vrot.slane %v2554_v41, 2  ;;  %v2344_v19 = vrot.slane %v2343_v55, 2  ;;  %v2568_v5 = vmin.f32 %v2566_v33, %v2567_v63  ;;  %v3212_v63 = vld [vmem:[#allocation30 + $0x420] sm:$0xff]  ;;  %v1862_v10 = vpop.f32.mrf.mxu0 }
 0x410   : > { %v2165_v33 = vmul.f32 %v6853_v11, %v6853_v11  ;;  %v2171_v48 = vmul.f32 %v6809_v31, %v6809_v31  ;;  %v2348_v49 = vmax.f32 %v6853_v11, %v6856_v13  ;;  %v6890_v59 = vmax.f32 %v2334_v56, %v2335_v22  ;;  %v3209_v56 = vld [vmem:[#allocation30 + $0x408] sm:$0xff]  ;;  %3714 = vmatpush1.msra.mxu1 %v3212_v63 }
 0x411   : > { %v2331_v30 = vmax.f32 %v2329_v40, %v2330_v4  ;;  %v2556_v32 = vmin.f32 %v2554_v41, %v2555_v6  ;;  %v3080_v40 = vld [vmem:[#allocation30] sm:$0xff]  ;;  %v6888_v41 = vmax.f32 %v2343_v55, %v2344_v19  ;;  %v6892_v60 = vmin.f32 %v2559_v58, %v2560_v47  ;;  %v1915_v55 = vpop.f32.mrf.mxu1  ;;  %3715 = vmatprep.subr.mxu1 %v3209_v56  ;;  %v1864_v38 = vpop.f32.mrf.mxu0  ;;  %v3329_v63 = vld [vmem:[#allocation30 + $0x7c8] sm:$0xff] }
 0x412   : > { %v6894_v53 = vadd.f32 %v2170_v24, %v2162_v21  ;;  %v6898_v44 = vadd.f32 %v6790_v2, %v6793_v7  ;;  %v6900_v4 = vadd.f32 %v2172_v25, %v2164_v29  ;;  %v2569_v6 = vrot.slane %v2568_v5, 2  ;;  %v3204_v58 = vld [vmem:[#allocation30 + $0x3e0] sm:$0xff]  ;;  %3645 = vmatpush1.msra.mxu0 %v3080_v40  ;;  %v3201_v7 = vld [vmem:[#allocation30 + $0x3c8] sm:$0xff] }
 0x413   : > { %v2332_v12 = vrot.slane %v2331_v30, 1  ;;  %v2557_v18 = vrot.slane %v2556_v32, 1  ;;  %v2173_v19 = vmul.f32 %v6856_v13, %v6856_v13  ;;  %v2573_v21 = vmin.f32 %v6853_v11, %v6856_v13  ;;  %v3208_v2 = vld [vmem:[#allocation30 + $0x400] sm:$0xff]  ;;  %3646 = vmatprep.subr.mxu0 %v3205_v62  ;;  %v3333_v25 = vld [vmem:[#allocation30 + $0x7e8] sm:$0xff]  ;;  %v1917_v40 = vpop.f32.mrf.mxu1 }
 0x414   : > { %v6908_v22 = vadd.f32 %v6809_v31, %v6818_v39  ;;  %v6910_v47 = vadd.f32 %v2171_v48, %v2163_v3  ;;  %v2349_v23 = vrot.slane %v2348_v49, 4  ;;  %v6913_v24 = vadd.f32 %v1860_v27, %v6777_v57  ;;  %3647 = vmatpush2.msra.mxu0 %v3204_v58  ;;  %v3332_v39 = vld [vmem:[#allocation30 + $0x7e0] sm:$0xff]  ;;  %v3197_v3 = vld [vmem:[#allocation30 + $0x3a8] sm:$0xff]  ;;  %3716 = vmatpush1.msra.mxu1 %v3208_v2 }
 0x415   : > { %v2346_v26 = vrot.slane %v6888_v41, 1  ;;  %v2337_v29 = vrot.slane %v6890_v59, 2  ;;  %v2562_v34 = vrot.slane %v6892_v60, 2  ;;  %v2056_v31 = vadd.f32 %v6856_v13, %v6853_v11  ;;  %3648 = vmatprep.subr.mxu0 %v3201_v7  ;;  %v3196_v62 = vld [vmem:[#allocation30 + $0x3a0] sm:$0xff]  ;;  %3717 = vmatprep.subr.mxu1 %v3333_v25 }
 0x416   : > { %v6920_v35 = vmin.f32 %v2568_v5, %v2569_v6  ;;  %v6923_v27 = vadd.f32 %v1862_v10, %v6803_v1  ;;  %v6926_v48 = vadd.f32 %v1915_v55, %v6825_v51  ;;  %v6928_v46 = vmax.f32 %v2331_v30, %v2332_v12  ;;  %3649 = vmatpush2.msra.mxu0 %v3200_v28  ;;  %v3328_v5 = vld [vmem:[#allocation30 + $0x7c0] sm:$0xff]  ;;  %v3193_v6 = vld [vmem:[#allocation30 + $0x388] sm:$0xff] }
 0x417   : > { %v6930_v11 = vmin.f32 %v2556_v32, %v2557_v18  ;;  %v2221_v13 = vadd.f32 %v2173_v19, %v2165_v33  ;;  %v2574_v56 = vrot.slane %v2573_v21, 4  ;;  %v6932_v10 = vmax.f32 %v2348_v49, %v2349_v23  ;;  %3718 = vmatpush2.msra.mxu1 %v3332_v39  ;;  %3650 = vmatprep.subr.mxu0 %v3197_v3  ;;  %v3325_v30 = vld [vmem:[#allocation30 + $0x7a8] sm:$0xff]  ;;  %v3192_v32 = vld [vmem:[#allocation30 + $0x380] sm:$0xff]  ;;  %v1919_v23 = vpop.f32.mrf.mxu1 }
 0x418   : > { %v2178_v55 = vmul.f32 %v6913_v24, %v6913_v24  ;;  %v6938_v58 = vadd.f32 %v6872_v45, %v6781_v61  ;;  %v6941_v33 = vmax.f32 %v6888_v41, %v2346_v26  ;;  %v6944_v12 = vmax.f32 %v6890_v59, %v2337_v29  ;;  %3719 = vmatprep.subr.mxu1 %v3329_v63  ;;  %v3324_v18 = vld [vmem:[#allocation30 + $0x7a0] sm:$0xff]  ;;  %v3189_v19 = vld [vmem:[#allocation30 + $0x368] sm:$0xff]  ;;  %v1866_v41 = vpop.f32.mrf.mxu0 }
 0x419   : > { %v6947_v49 = vmin.f32 %v6892_v60, %v2562_v34  ;;  %3651 = vmatpush2.msra.mxu0 %v3196_v62  ;;  %v2179_v45 = vmul.f32 %v6923_v27, %v6923_v27  ;;  %v2181_v2 = vmul.f32 %v6926_v48, %v6926_v48  ;;  %v6954_v7 = vadd.f32 %v1864_v38, %v6777_v57  ;;  %v3321_v59 = vld [vmem:[#allocation30 + $0x788] sm:$0xff]  ;;  %v3188_v29 = vld [vmem:[#allocation30 + $0x360] sm:$0xff] }
 0x41a   : > { %3720 = vmatpush2.msra.mxu1 %v3328_v5  ;;  %3652 = vmatprep.subr.mxu0 %v3193_v6  ;;  %v6957_v25 = vmin.f32 %v2573_v21, %v2574_v56  ;;  %v2030_v28 = vadd.f32 %v6882_v37, %v6913_v24  ;;  %v6962_v26 = vadd.f32 %v1917_v40, %v6781_v61  ;;  %v3320_v57 = vld [vmem:[#allocation30 + $0x780] sm:$0xff]  ;;  %v2351_v34 = vrot.slane %v6932_v10, 2  ;;  %v3185_v37 = vld [vmem:[#allocation30 + $0x348] sm:$0xff] }
 0x41b   : > { %3721 = vmatprep.subr.mxu1 %v3325_v30  ;;  %3653 = vmatpush2.msra.mxu0 %v3192_v32  ;;  %v2195_v39 = vadd.f32 %v6894_v53, %v2178_v55  ;;  %v2048_v3 = vadd.f32 %v6898_v44, %v6938_v58  ;;  %v2180_v21 = vmul.f32 %v6938_v58, %v6938_v58  ;;  %v3317_v53 = vld [vmem:[#allocation30 + $0x768] sm:$0xff]  ;;  %v2339_v44 = vrot.slane %v6944_v12, 1 }
 0x41c   : > { %3722 = vmatpush2.msra.mxu1 %v3324_v18  ;;  %3654 = vmatprep.subr.mxu0 %v3189_v19  ;;  %v2039_v61 = vadd.f32 %v6908_v22, %v6923_v27  ;;  %v2057_v38 = vadd.f32 %v2056_v31, %v6926_v48  ;;  %v6974_v40 = vadd.f32 %v1866_v41, %v6803_v1  ;;  %v3184_v22 = vld [vmem:[#allocation30 + $0x340] sm:$0xff]  ;;  %v3313_v55 = vld [vmem:[#allocation30 + $0x748] sm:$0xff]  ;;  %v2576_v41 = vrot.slane %v6957_v25, 2 }
 0x41d   : > { %v6977_v63 = vadd.f32 %v1919_v23, %v6825_v51  ;;  %3723 = vmatprep.subr.mxu1 %v3321_v59  ;;  %v2204_v62 = vadd.f32 %v6910_v47, %v2179_v45  ;;  %v2222_v56 = vadd.f32 %v2221_v13, %v2181_v2  ;;  %v6982_v5 = vadd.f32 %v2030_v28, %v6954_v7  ;;  %v3316_v31 = vld [vmem:[#allocation30 + $0x760] sm:$0xff]  ;;  %v3181_v13 = vld [vmem:[#allocation30 + $0x328] sm:$0xff] }
 0x41e   : > { %3655 = vmatpush2.msra.mxu0 %v3188_v29  ;;  %3724 = vmatpush2.msra.mxu1 %v3320_v57  ;;  %v2186_v1 = vmul.f32 %v6954_v7, %v6954_v7  ;;  %v6988_v51 = vmax.f32 %v6913_v24, %v6954_v7  ;;  %v6991_v6 = vadd.f32 %v2048_v3, %v6962_v26  ;;  %v3180_v45 = vld [vmem:[#allocation30 + $0x320] sm:$0xff]  ;;  %v3177_v29 = vld [vmem:[#allocation30 + $0x308] sm:$0xff] }
 0x41f   : > { %v2187_v47 = vmul.f32 %v6974_v40, %v6974_v40  ;;  %3656 = vmatprep.subr.mxu0 %v3185_v37  ;;  %v2188_v30 = vmul.f32 %v6962_v26, %v6962_v26  ;;  %v6998_v32 = vadd.f32 %v2039_v61, %v6974_v40  ;;  %v7001_v18 = vadd.f32 %v2057_v38, %v6977_v63  ;;  %v3312_v2 = vld [vmem:[#allocation30 + $0x740] sm:$0xff]  ;;  %v3309_v57 = vld [vmem:[#allocation30 + $0x728] sm:$0xff] }
 0x420   : > { %v2189_v19 = vmul.f32 %v6977_v63, %v6977_v63  ;;  %3725 = vmatprep.subr.mxu1 %v3317_v53  ;;  %v2213_v23 = vadd.f32 %v6900_v4, %v2180_v21  ;;  %v7009_v59 = vmax.f32 %v6938_v58, %v6962_v26  ;;  %v7013_v28 = vmax.f32 %v6923_v27, %v6974_v40  ;;  %v3176_v21 = vld [vmem:[#allocation30 + $0x300] sm:$0xff] }
 0x421   : > { %3657 = vmatpush2.msra.mxu0 %v3184_v22  ;;  %3726 = vmatpush2.msra.mxu1 %v3316_v31  ;;  %v7016_v37 = vadd.f32 %v2204_v62, %v2187_v47  ;;  %v7022_v4 = vmax.f32 %v6926_v48, %v6977_v63  ;;  %v3308_v38 = vld [vmem:[#allocation30 + $0x720] sm:$0xff]  ;;  %v7025_v53 = vmax.f32 %v6932_v10, %v2351_v34  ;;  %v2032_v22 = vrot.slane %v6982_v5, 4  ;;  %v3173_v62 = vld [vmem:[#allocation30 + $0x2e8] sm:$0xff] }
 0x422   : > { %v7018_v61 = vadd.f32 %v2222_v56, %v2189_v19  ;;  %3658 = vmatprep.subr.mxu0 %v3181_v13  ;;  %3727 = vmatprep.subr.mxu1 %v3313_v55  ;;  %v2196_v31 = vadd.f32 %v2195_v39, %v2186_v1  ;;  %v2384_v60 = vrot.slane %v6988_v51, 4  ;;  %v3305_v56 = vld [vmem:[#allocation30 + $0x708] sm:$0xff]  ;;  %v2050_v47 = vrot.slane %v6991_v6, 4  ;;  %v3172_v10 = vld [vmem:[#allocation30 + $0x2e0] sm:$0xff]  ;;  %v7065_v50 = vpop.f32.mrf.mxu1 }
 0x423   : > { %3659 = vmatpush2.msra.mxu0 %v3180_v45  ;;  %3728 = vmatpush2.msra.mxu1 %v3312_v2  ;;  %v2214_v19 = vadd.f32 %v2213_v23, %v2188_v30  ;;  %v2041_v13 = vrot.slane %v6998_v32, 4  ;;  %v2059_v55 = vrot.slane %v7001_v18, 4  ;;  %v3304_v34 = vld [vmem:[#allocation30 + $0x700] sm:$0xff]  ;;  %v7033_v3 = vmax.f32 %v6944_v12, %v2339_v44  ;;  %v3169_v30 = vld [vmem:[#allocation30 + $0x2c8] sm:$0xff] }
 0x424   : > { %3660 = vmatprep.subr.mxu0 %v3177_v29  ;;  %3729 = vmatprep.subr.mxu1 %v3309_v57  ;;  %v7036_v39 = vmin.f32 %v6957_v25, %v2576_v41  ;;  %v2398_v1 = vrot.slane %v7009_v59, 4  ;;  %v2391_v45 = vrot.slane %v7013_v28, 4  ;;  %v3301_v2 = vld [vmem:[#allocation30 + $0x6e8] sm:$0xff]  ;;  %v2608_v23 = vmin.f32 %v6913_v24, %v6954_v7  ;;  %v3168_v25 = vld [vmem:[#allocation30 + $0x2c0] sm:$0xff] }
 0x425   : > { %3661 = vmatpush2.msra.mxu0 %v3176_v21  ;;  %3730 = vmatpush2.msra.mxu1 %v3308_v38  ;;  %v2206_v29 = vrot.slane %v7016_v37, 4  ;;  %v2224_v57 = vrot.slane %v7018_v61, 4  ;;  %v2405_v12 = vrot.slane %v7022_v4, 4  ;;  %v3300_v44 = vld [vmem:[#allocation30 + $0x6e0] sm:$0xff]  ;;  %v2033_v41 = vadd.f32 %v2032_v22, %v6982_v5  ;;  %v3165_v24 = vld [vmem:[#allocation30 + $0x2a8] sm:$0xff] }
 0x426   : > { %3662 = vmatprep.subr.mxu0 %v3173_v62  ;;  %3731 = vmatprep.subr.mxu1 %v3305_v56  ;;  %v2197_v54 = vrot.slane %v2196_v31, 4  ;;  %v2385_v21 = vmax.f32 %v6988_v51, %v2384_v60  ;;  %v2615_v38 = vmin.f32 %v6923_v27, %v6974_v40  ;;  %v3297_v7 = vld [vmem:[#allocation30 + $0x6c8] sm:$0xff]  ;;  %v2051_v42 = vadd.f32 %v2050_v47, %v6991_v6  ;;  %v3164_v5 = vld [vmem:[#allocation30 + $0x2a0] sm:$0xff] }
 0x427   : > { %3663 = vmatpush2.msra.mxu0 %v3172_v10  ;;  %3732 = vmatpush2.msra.mxu1 %v3304_v34  ;;  %v2215_v52 = vrot.slane %v2214_v19, 4  ;;  %v2042_v62 = vadd.f32 %v2041_v13, %v6998_v32  ;;  %v2060_v56 = vadd.f32 %v2059_v55, %v7001_v18  ;;  %v3296_v22 = vld [vmem:[#allocation30 + $0x6c0] sm:$0xff]  ;;  %v2399_v27 = vmax.f32 %v7009_v59, %v2398_v1  ;;  %v3161_v6 = vld [vmem:[#allocation30 + $0x288] sm:$0xff] }
 0x428   : > { %3664 = vmatprep.subr.mxu0 %v3169_v30  ;;  %3733 = vmatprep.subr.mxu1 %v3301_v2  ;;  %v2392_v40 = vmax.f32 %v7013_v28, %v2391_v45  ;;  %v3293_v47 = vld [vmem:[#allocation30 + $0x6a8] sm:$0xff]  ;;  %v2609_v10 = vrot.slane %v2608_v23, 4  ;;  %v2207_v32 = vadd.f32 %v2206_v29, %v7016_v37  ;;  %v2225_v18 = vadd.f32 %v2224_v57, %v7018_v61  ;;  %v3160_v55 = vld [vmem:[#allocation30 + $0x280] sm:$0xff] }
 0x429   : > { %3665 = vmatpush2.msra.mxu0 %v3168_v25  ;;  %3734 = vmatpush2.msra.mxu1 %v3300_v44  ;;  %v2406_v13 = vmax.f32 %v7022_v4, %v2405_v12  ;;  %v2034_v34 = vrot.slane %v2033_v41, 2  ;;  %v2198_v30 = vadd.f32 %v2197_v54, %v2196_v31  ;;  %v2386_v2 = vrot.slane %v2385_v21, 2  ;;  %v3292_v28 = vld [vmem:[#allocation30 + $0x6a0] sm:$0xff]  ;;  %v3157_v37 = vld [vmem:[#allocation30 + $0x268] sm:$0xff] }
 0x42a   : > { %3666 = vmatprep.subr.mxu0 %v3165_v24  ;;  %3735 = vmatprep.subr.mxu1 %v3297_v7  ;;  %v2616_v59 = vrot.slane %v2615_v38, 4  ;;  %v2052_v1 = vrot.slane %v2051_v42, 2  ;;  %v2216_v45 = vadd.f32 %v2215_v52, %v2214_v19  ;;  %v2043_v25 = vrot.slane %v2042_v62, 2  ;;  %v3289_v31 = vld [vmem:[#allocation30 + $0x688] sm:$0xff]  ;;  %v3156_v57 = vld [vmem:[#allocation30 + $0x260] sm:$0xff] }
 0x42b   : > { %3667 = vmatpush2.msra.mxu0 %v3164_v5  ;;  %3736 = vmatpush2.msra.mxu1 %v3296_v22  ;;  %v2061_v44 = vrot.slane %v2060_v56, 2  ;;  %v2400_v61 = vrot.slane %v2399_v27, 2  ;;  %v2622_v4 = vmin.f32 %v6938_v58, %v6962_v26  ;;  %v2393_v29 = vrot.slane %v2392_v40, 2  ;;  %v3288_v19 = vld [vmem:[#allocation30 + $0x680] sm:$0xff]  ;;  %v3153_v51 = vld [vmem:[#allocation30 + $0x248] sm:$0xff] }
 0x42c   : > { %3668 = vmatprep.subr.mxu0 %v3161_v6  ;;  %3737 = vmatprep.subr.mxu1 %v3293_v47  ;;  %v2629_v54 = vmin.f32 %v6926_v48, %v6977_v63  ;;  %v2610_v12 = vmin.f32 %v2608_v23, %v2609_v10  ;;  %v2208_v24 = vrot.slane %v2207_v32, 2  ;;  %v2226_v7 = vrot.slane %v2225_v18, 2  ;;  %v7063_v48 = vpop.f32.mrf.mxu0  ;;  %v3285_v63 = vld [vmem:[#allocation30 + $0x668] sm:$0xff] }
 0x42d   : > { %3669 = vmatpush2.msra.mxu0 %v3160_v55  ;;  %v2407_v52 = vrot.slane %v2406_v13, 2  ;;  %3738 = vmatpush2.msra.mxu1 %v3292_v28  ;;  %v2035_v5 = vadd.f32 %v2034_v34, %v2033_v41  ;;  %v2199_v22 = vrot.slane %v2198_v30, 2  ;;  %v2387_v6 = vmax.f32 %v2385_v21, %v2386_v2  ;;  %v3152_v41 = vld [vmem:[#allocation30 + $0x240] sm:$0xff] }
 0x42e   : > { %v2617_v47 = vmin.f32 %v2615_v38, %v2616_v59  ;;  %3670 = vmatprep.subr.mxu0 %v3157_v37  ;;  %v2053_v58 = vadd.f32 %v2052_v1, %v2051_v42  ;;  %v2217_v26 = vrot.slane %v2216_v45, 2  ;;  %v2044_v60 = vadd.f32 %v2043_v25, %v2042_v62  ;;  %3739 = vmatprep.subr.mxu1 %v3289_v31  ;;  %v3284_v62 = vld [vmem:[#allocation30 + $0x660] sm:$0xff]  ;;  %v3281_v25 = vld [vmem:[#allocation30 + $0x648] sm:$0xff] }
 0x42f   : > { %v2062_v36 = vadd.f32 %v2061_v44, %v2060_v56  ;;  %3671 = vmatpush2.msra.mxu0 %v3156_v57  ;;  %v2401_v23 = vmax.f32 %v2399_v27, %v2400_v61  ;;  %v2623_v10 = vrot.slane %v2622_v4, 4  ;;  %v2394_v55 = vmax.f32 %v2392_v40, %v2393_v29  ;;  %3740 = vmatpush2.msra.mxu1 %v3288_v19  ;;  %v3149_v27 = vld [vmem:[#allocation30 + $0x228] sm:$0xff]  ;;  %v7069_v29 = vpop.f32.mrf.mxu0 }
 0x430   : > { %v2630_v28 = vrot.slane %v2629_v54, 4  ;;  %v2611_v21 = vrot.slane %v2610_v12, 2  ;;  %v2209_v38 = vadd.f32 %v2208_v24, %v2207_v32  ;;  %v2227_v34 = vadd.f32 %v2226_v7, %v2225_v18  ;;  %3672 = vmatprep.subr.mxu0 %v3153_v51  ;;  %3741 = vmatprep.subr.mxu1 %v3285_v63  ;;  %v3148_v32 = vld [vmem:[#allocation30 + $0x220] sm:$0xff]  ;;  %v3145_v24 = vld [vmem:[#allocation30 + $0x208] sm:$0xff] }
 0x431   : > { %v2408_v42 = vmax.f32 %v2406_v13, %v2407_v52  ;;  %v2036_v56 = vrot.slane %v2035_v5, 1  ;;  %v7067_v2 = vadd.f32 %v2199_v22, %v2198_v30  ;;  %v2388_v59 = vrot.slane %v2387_v6, 1  ;;  %3673 = vmatpush2.msra.mxu0 %v3152_v41  ;;  %v3280_v18 = vld [vmem:[#allocation30 + $0x640] sm:$0xff]  ;;  %v7071_v30 = vpop.f32.mrf.mxu1  ;;  %3742 = vmatpush2.msra.mxu1 %v3284_v62  ;;  %v3277_v7 = vld [vmem:[#allocation30 + $0x628] sm:$0xff] }
 0x432   : > { %v2618_v1 = vrot.slane %v2617_v47, 2  ;;  %v2054_v40 = vrot.slane %v2053_v58, 1  ;;  %v2218_v44 = vadd.f32 %v2217_v26, %v2216_v45  ;;  %v2045_v37 = vrot.slane %v2044_v60, 1  ;;  %7743 = vst [vmem:[#allocation68_spill] sm:$0xff] %v7071_v30  ;;  %3674 = vmatprep.subr.mxu0 %v3149_v27  ;;  %3743 = vmatprep.subr.mxu1 %v3281_v25  ;;  %v3144_v26 = vld [vmem:[#allocation30 + $0x200] sm:$0xff]  ;;  %v3273_v27 = vld [vmem:[#allocation30 + $0x608] sm:$0xff] }
 0x433   : > { %v2063_v61 = vrot.slane %v2062_v36, 1  ;;  %v2402_v13 = vrot.slane %v2401_v23, 1  ;;  %v2624_v51 = vmin.f32 %v2622_v4, %v2623_v10  ;;  %v2395_v31 = vrot.slane %v2394_v55, 1  ;;  %3675 = vmatpush2.msra.mxu0 %v3148_v32  ;;  %3744 = vmatpush2.msra.mxu1 %v3280_v18  ;;  %v3397_v10 = vld [vmem:[#allocation30 + $0x9e8] sm:$0xff]  ;;  %v7076_v30 = vpop.f32.mrf.mxu1 }
 0x434   : > { %v2631_v57 = vmin.f32 %v2629_v54, %v2630_v28  ;;  %v2612_v52 = vmin.f32 %v2610_v12, %v2611_v21  ;;  %v2210_v19 = vrot.slane %v2209_v38, 1  ;;  %v2228_v22 = vrot.slane %v2227_v34, 1  ;;  %v3276_v54 = vld [vmem:[#allocation30 + $0x620] sm:$0xff]  ;;  %v1960_v21 = vpop.f32.mrf.mxu0  ;;  %3676 = vmatprep.subr.mxu0 %v3145_v24  ;;  %3745 = vmatprep.subr.mxu1 %v3277_v7 }
 0x435   : > { %v2409_v45 = vrot.slane %v2408_v42, 1  ;;  %v2037_v63 = vadd.f32 %v2036_v56, %v2035_v5  ;;  %v2201_v41 = vrot.slane %v7067_v2, 1  ;;  %v7074_v20 = vmax.f32 %v2387_v6, %v2388_v59  ;;  %3677 = vmatpush2.msra.mxu0 %v3144_v26  ;;  %v3272_v6 = vld [vmem:[#allocation30 + $0x600] sm:$0xff]  ;;  %3746 = vmatpush2.msra.mxu1 %v3276_v54  ;;  %v7093_v7 = vpop.f32.mrf.mxu1 }
 0x436   : > { %v2619_v4 = vmin.f32 %v2617_v47, %v2618_v1  ;;  %v2055_v28 = vadd.f32 %v2054_v40, %v2053_v58  ;;  %v2219_v62 = vrot.slane %v2218_v44, 1  ;;  %v2046_v14 = vadd.f32 %v2045_v37, %v2044_v60  ;;  %3756 = vmatprep.subr.mxu0 %v3397_v10  ;;  %v3525_v58 = vld [vmem:[#allocation30 + $0xde8] sm:$0xff]  ;;  %3747 = vmatprep.subr.mxu1 %v3273_v27 }
 0x437   : > { %v2064_v12 = vadd.f32 %v2063_v61, %v2062_v36  ;;  %v2403_v25 = vmax.f32 %v2401_v23, %v2402_v13  ;;  %v2625_v15 = vrot.slane %v2624_v51, 2  ;;  %v2396_v5 = vmax.f32 %v2394_v55, %v2395_v31  ;;  %3748 = vmatpush2.msra.mxu1 %v3272_v6 }
 0x438   : > { %v2632_v56 = vrot.slane %v2631_v57, 2  ;;  %v2211_v47 = vadd.f32 %v2210_v19, %v2209_v38  ;;  %v2229_v59 = vadd.f32 %v2228_v22, %v2227_v34  ;;  %v2410_v1 = vmax.f32 %v2408_v42, %v2409_v45  ;;  %v7085_v42 = vpop.f32.mrf.mxu0  ;;  %3827 = vmatprep.subr.mxu1 %v3525_v58 }
 0x439   : > { %v7744_v36 = vrot.slane %v6947_v49, 1  ;;  %v7745_v40 = vrot.slane %v7025_v53, 1  ;;  %v2613_v55 = vrot.slane %v2612_v52, 1  ;;  %v2620_v37 = vrot.slane %v2619_v4, 1 }
 0x43a   : > { %v2202_v61 = vadd.f32 %v2201_v41, %v7067_v2  ;;  %v2220_v32 = vadd.f32 %v2219_v62, %v2218_v44  ;;  %v2109_v38 = vcombine.low %v2037_v63, %v2046_v14  ;;  %v2110_v34 = vcombine.low %v2055_v28, %v2064_v12 }
 0x43b   : > { %v2565_v60 = vmin.f32 %v6947_v49, %v7744_v36  ;;  %v2354_v23 = vmax.f32 %v7025_v53, %v7745_v40  ;;  %v7746_v18 = vrot.slane %v6920_v35, 1  ;;  %v7747_v49 = vrot.slane %v7036_v39, 1 }
 0x43c   : > { %v2626_v53 = vmin.f32 %v2624_v51, %v2625_v15  ;;  %v2633_v24 = vmin.f32 %v2631_v57, %v2632_v56  ;;  %v2274_v2 = vcombine.low %v2202_v61, %v2211_v47  ;;  %v2489_v14 = vcombine.low %v7074_v20, %v2396_v5  ;;  %v1966_v57 = vpop.f32.mrf.mxu0  ;;  %v7748_v47 = vld [vmem:[#allocation68_spill] sm:$0xff] }
 0x43d   : > { %v2572_v13 = vmin.f32 %v6920_v35, %v7746_v18  ;;  %v2579_v31 = vmin.f32 %v7036_v39, %v7747_v49  ;;  %v2275_v44 = vcombine.low %v2220_v32, %v2229_v59  ;;  %v2490_v19 = vcombine.low %v2403_v25, %v2410_v1 }
 0x43e   : > { %v2455_v22 = vcombine.low %v6928_v46, %v7033_v3  ;;  %v2680_v45 = vcombine.low %v6930_v11, %v2565_v60  ;;  %v2614_v35 = vmin.f32 %v2612_v52, %v2613_v55  ;;  %v2621_v26 = vmin.f32 %v2619_v4, %v2620_v37  ;;  %v2019_v46 = vpop.f32.mrf.mxu1  ;;  %v7121_v25 = vpop.f32.mrf.mxu0 }
 0x43f   : > { %v2456_v63 = vcombine.low %v6941_v33, %v2354_v23  ;;  %v2119_v15 = vrot.slane %v2109_v38, %v6841_v43  ;;  %v2126_v39 = vrot.slane %v2110_v34, %v6841_v43  ;;  %v1961_v51 = vadd.f32 %v1960_v21, %v6845_v8 }
 0x440   : > { %v2681_v41 = vcombine.low %v2572_v13, %v2579_v31  ;;  %v2627_v20 = vrot.slane %v2626_v53, 1  ;;  %v2634_v54 = vrot.slane %v2633_v24, 1  ;;  %v1957_v10 = vadd.f32 %v7063_v48, %v6845_v8  ;;  %v1970_v34 = vpop.f32.mrf.mxu0 }
 0x441   : > { %v2284_v11 = vrot.slane %v2274_v2, %v6841_v43  ;;  %v2497_v3 = vrot.slane %v2489_v14, %v6838_v0  ;;  %v2291_v33 = vrot.slane %v2275_v44, %v6841_v43  ;;  %v2504_v52 = vrot.slane %v2490_v19, %v6838_v0 }
 0x442   : > { %v7110_v4 = vrot.slane %v2455_v22, %v6838_v0  ;;  %v2714_v28 = vcombine.low %v2614_v35, %v2621_v26  ;;  %v2010_v62 = vadd.f32 %v7065_v50, %v6849_v9  ;;  %v7115_v12 = vrot.slane %v2680_v45, %v6838_v0  ;;  %v7130_v50 = vpop.f32.mrf.mxu1 }
 0x443   : > { %v2141_v48 = vcombine.low %v2119_v15, %v2126_v39  ;;  %v7119_v21 = vadd.f32 %v7069_v29, %v6860_v16  ;;  %v2355_v27 = vmax.f32 %v1957_v10, %v1961_v51  ;;  %v7124_v5 = vrot.slane %v2456_v63, %v6838_v0 }
 0x444   : > { %v2628_v56 = vmin.f32 %v2626_v53, %v2627_v20  ;;  %v2635_v6 = vmin.f32 %v2633_v24, %v2634_v54  ;;  %v7128_v59 = vadd.f32 %v7748_v47, %v6864_v17  ;;  %v7133_v1 = vrot.slane %v2681_v41, %v6838_v0  ;;  %v2023_v53 = vpop.f32.mrf.mxu1 }
 0x445   : > { %v2306_v58 = vcombine.low %v2284_v11, %v2291_v33  ;;  %v2505_v29 = vcombine.low %v2497_v3, %v2504_v52  ;;  %v2580_v36 = vmin.f32 %v1957_v10, %v1961_v51  ;;  %v7136_v60 = vrot.slane %v2714_v28, %v6838_v0 }
 0x446   : > { %v2166_v40 = vmul.f32 %v1957_v10, %v1957_v10  ;;  %v2168_v23 = vmul.f32 %v2010_v62, %v2010_v62  ;;  %v2014_v55 = vadd.f32 %v7076_v30, %v6849_v9  ;;  %v7141_v37 = vrot.slane %v2141_v48, %v6841_v43 }
 0x447   : > { %v2167_v61 = vmul.f32 %v7119_v21, %v7119_v21  ;;  %v2356_v32 = vrot.slane %v2355_v27, 4  ;;  %v7146_v38 = vadd.f32 %v1966_v57, %v6845_v8  ;;  %v2715_v18 = vcombine.low %v2628_v56, %v2635_v6 }
 0x448   : > { %v7150_v13 = vmul.f32 %v7128_v59, %v7128_v59  ;;  %v2065_v49 = vadd.f32 %v1961_v51, %v1957_v10  ;;  %v2174_v31 = vmul.f32 %v1961_v51, %v1961_v51  ;;  %v7153_v30 = vrot.slane %v2306_v58, %v6841_v43 }
 0x449   : > { %v7155_v24 = vrot.slane %v2505_v29, 7  ;;  %v2581_v2 = vrot.slane %v2580_v36, 4  ;;  %v7158_v14 = vadd.f32 %v2019_v46, %v6849_v9  ;;  %v2083_v44 = vadd.f32 %v2014_v55, %v2010_v62 }
 0x44a   : > { %v2369_v19 = vmax.f32 %v2010_v62, %v2014_v55  ;;  %v2594_v22 = vmin.f32 %v2010_v62, %v2014_v55  ;;  %v1971_v45 = vadd.f32 %v1970_v34, %v6845_v8  ;;  %v2357_v35 = vmax.f32 %v2355_v27, %v2356_v32 }
 0x44b   : > { %v2176_v26 = vmul.f32 %v2014_v55, %v2014_v55  ;;  %v2066_v63 = vadd.f32 %v2065_v49, %v7146_v38  ;;  %v7163_v15 = vadd.f32 %v2023_v53, %v6849_v9  ;;  %v7166_v39 = vrot.slane %v2715_v18, %v6838_v0 }
 0x44c   : > { %v1963_v51 = vadd.f32 %v7085_v42, %v6860_v16  ;;  %v2016_v57 = vadd.f32 %v7093_v7, %v6864_v17  ;;  %v2182_v41 = vmul.f32 %v7146_v38, %v7146_v38  ;;  %v2582_v8 = vmin.f32 %v2580_v36, %v2581_v2 }
 0x44d   : > { %v2084_v20 = vadd.f32 %v2083_v44, %v7158_v14  ;;  %v2184_v54 = vmul.f32 %v7158_v14, %v7158_v14  ;;  %v2067_v9 = vadd.f32 %v2066_v63, %v1971_v45  ;;  %v2230_v10 = vadd.f32 %v2174_v31, %v2166_v40 }
 0x44e   : > { %v2370_v46 = vrot.slane %v2369_v19, 4  ;;  %v2595_v11 = vrot.slane %v2594_v22, 4  ;;  %v2190_v3 = vmul.f32 %v1971_v45, %v1971_v45  ;;  %v2358_v33 = vrot.slane %v2357_v35, 2 }
 0x44f   : > { %v2248_v52 = vadd.f32 %v2176_v26, %v2168_v23  ;;  %v2085_v42 = vadd.f32 %v2084_v20, %v7163_v15  ;;  %v2192_v7 = vmul.f32 %v7163_v15, %v7163_v15  ;;  %v2074_v28 = vadd.f32 %v1963_v51, %v7119_v21 }
 0x450   : > { %v2362_v62 = vmax.f32 %v7119_v21, %v1963_v51  ;;  %v2376_v48 = vmax.f32 %v7128_v59, %v2016_v57  ;;  %v2231_v27 = vadd.f32 %v2230_v10, %v2182_v41  ;;  %v2583_v56 = vrot.slane %v2582_v8, 2 }
 0x451   : > { %v2175_v6 = vmul.f32 %v1963_v51, %v1963_v51  ;;  %v2249_v47 = vadd.f32 %v2248_v52, %v2184_v54  ;;  %v2068_v58 = vrot.slane %v2067_v9, 4  ;;  %v7183_v29 = vmax.f32 %v2369_v19, %v2370_v46  ;;  %v2025_v46 = vpop.f32.mrf.mxu1 }
 0x452   : > { %v7185_v36 = vmin.f32 %v2594_v22, %v2595_v11  ;;  %v7188_v40 = vmin.f32 %v7119_v21, %v1963_v51  ;;  %v2232_v23 = vadd.f32 %v2231_v27, %v2190_v3  ;;  %v7190_v55 = vmax.f32 %v2357_v35, %v2358_v33 }
 0x453   : > { %v7194_v32 = vadd.f32 %v7121_v25, %v6860_v16  ;;  %v2086_v34 = vrot.slane %v2085_v42, 4  ;;  %v2250_v18 = vadd.f32 %v2249_v47, %v2192_v7  ;;  %v2363_v49 = vrot.slane %v2362_v62, 4 }
 0x454   : > { %v2177_v31 = vmul.f32 %v2016_v57, %v2016_v57  ;;  %v2377_v53 = vrot.slane %v2376_v48, 4  ;;  %v7198_v2 = vadd.f32 %v7130_v50, %v6864_v17  ;;  %v7200_v44 = vmin.f32 %v2582_v8, %v2583_v56  ;;  %v1972_v8 = vpop.f32.mrf.mxu0 }
 0x455   : > { %v2239_v21 = vadd.f32 %v2175_v6, %v2167_v61  ;;  %v2092_v19 = vadd.f32 %v2016_v57, %v7128_v59  ;;  %v2069_v22 = vadd.f32 %v2068_v58, %v2067_v9  ;;  %v2233_v26 = vrot.slane %v2232_v23, 4 }
 0x456   : > { %v2411_v63 = vmax.f32 %v7146_v38, %v1971_v45  ;;  %v2183_v41 = vmul.f32 %v7194_v32, %v7194_v32  ;;  %v2087_v50 = vadd.f32 %v2086_v34, %v2085_v42  ;;  %v2251_v20 = vrot.slane %v2250_v18, 4 }
 0x457   : > { %v7209_v54 = vmax.f32 %v2362_v62, %v2363_v49  ;;  %v2257_v61 = vadd.f32 %v2177_v31, %v7150_v13  ;;  %v7212_v9 = vmax.f32 %v2376_v48, %v2377_v53  ;;  %v2185_v10 = vmul.f32 %v7198_v2, %v7198_v2 }
 0x458   : > { %v7217_v11 = vmin.f32 %v7128_v59, %v2016_v57  ;;  %v2075_v3 = vadd.f32 %v2074_v28, %v7194_v32  ;;  %v2070_v33 = vrot.slane %v2069_v22, 2  ;;  %v7221_v52 = vmin.f32 %v7146_v38, %v1971_v45 }
 0x459   : > { %v2093_v42 = vadd.f32 %v2092_v19, %v7198_v2  ;;  %v2234_v7 = vadd.f32 %v2233_v26, %v2232_v23  ;;  %v2412_v62 = vrot.slane %v2411_v63, 4  ;;  %v1973_v13 = vadd.f32 %v1972_v8, %v6860_v16 }
 0x45a   : > { %v2240_v48 = vadd.f32 %v2239_v21, %v2183_v41  ;;  %v2088_v27 = vrot.slane %v2087_v50, 2  ;;  %v2252_v56 = vadd.f32 %v2251_v20, %v2250_v18  ;;  %v2026_v6 = vadd.f32 %v2025_v46, %v6864_v17 }
 0x45b   : > { %v2258_v47 = vadd.f32 %v2257_v61, %v2185_v10  ;;  %v2425_v59 = vmax.f32 %v7158_v14, %v7163_v15  ;;  %v2076_v57 = vadd.f32 %v2075_v3, %v1973_v13  ;;  %v2191_v28 = vmul.f32 %v1973_v13, %v1973_v13 }
 0x45c   : > { %v2071_v58 = vadd.f32 %v2070_v33, %v2069_v22  ;;  %v2637_v38 = vrot.slane %v7221_v52, 4  ;;  %v2094_v45 = vadd.f32 %v2093_v42, %v2026_v6  ;;  %v2193_v34 = vmul.f32 %v2026_v6, %v2026_v6 }
 0x45d   : > { %v2235_v23 = vrot.slane %v2234_v7, 2  ;;  %v7229_v49 = vmax.f32 %v2411_v63, %v2412_v62  ;;  %v2077_v16 = vrot.slane %v2076_v57, 4  ;;  %v2241_v31 = vadd.f32 %v2240_v48, %v2191_v28 }
 0x45e   : > { %v2089_v53 = vadd.f32 %v2088_v27, %v2087_v50  ;;  %v2253_v18 = vrot.slane %v2252_v56, 2  ;;  %v2095_v21 = vrot.slane %v2094_v45, 4  ;;  %v2259_v17 = vadd.f32 %v2258_v47, %v2193_v34 }
 0x45f   : > { %v2426_v19 = vrot.slane %v2425_v59, 4  ;;  %v2078_v26 = vadd.f32 %v2077_v16, %v2076_v57  ;;  %v2242_v41 = vrot.slane %v2241_v31, 4  ;;  %v2418_v20 = vmax.f32 %v7194_v32, %v1973_v13 }
 0x460   : > { %v2072_v8 = vrot.slane %v2071_v58, 1  ;;  %v2096_v22 = vadd.f32 %v2095_v21, %v2094_v45  ;;  %v2260_v61 = vrot.slane %v2259_v17, 4  ;;  %v2432_v10 = vmax.f32 %v7198_v2, %v2026_v6 }
 0x461   : > { %v2236_v46 = vadd.f32 %v2235_v23, %v2234_v7  ;;  %v2650_v63 = vmin.f32 %v7158_v14, %v7163_v15  ;;  %v2079_v3 = vrot.slane %v2078_v26, 2  ;;  %v2243_v33 = vadd.f32 %v2242_v41, %v2241_v31 }
 0x462   : > { %v2090_v50 = vrot.slane %v2089_v53, 1  ;;  %v2254_v42 = vadd.f32 %v2253_v18, %v2252_v56  ;;  %v2097_v62 = vrot.slane %v2096_v22, 2  ;;  %v2261_v48 = vadd.f32 %v2260_v61, %v2259_v17 }
 0x463   : > { %v2080_v27 = vadd.f32 %v2079_v3, %v2078_v26  ;;  %v2244_v47 = vrot.slane %v2243_v33, 2  ;;  %v2419_v57 = vrot.slane %v2418_v20, 4  ;;  %v2643_v28 = vmin.f32 %v7194_v32, %v1973_v13 }
 0x464   : > { %v2098_v34 = vadd.f32 %v2097_v62, %v2096_v22  ;;  %v2262_v45 = vrot.slane %v2261_v48, 2  ;;  %v2433_v16 = vrot.slane %v2432_v10, 4  ;;  %v2657_v21 = vmin.f32 %v7198_v2, %v2026_v6 }
 0x465   : > { %v2073_v7 = vadd.f32 %v2072_v8, %v2071_v58  ;;  %v2237_v23 = vrot.slane %v2236_v46, 1  ;;  %v2081_v25 = vrot.slane %v2080_v27, 1  ;;  %v2245_v14 = vadd.f32 %v2244_v47, %v2243_v33 }
 0x466   : > { %v2091_v15 = vadd.f32 %v2090_v50, %v2089_v53  ;;  %v2255_v31 = vrot.slane %v2254_v42, 1  ;;  %v2099_v41 = vrot.slane %v2098_v34, 1  ;;  %v2263_v56 = vadd.f32 %v2262_v45, %v2261_v48 }
 0x467   : > { %v2082_v18 = vadd.f32 %v2081_v25, %v2080_v27  ;;  %v2246_v17 = vrot.slane %v2245_v14, 1  ;;  %v2420_v26 = vmax.f32 %v2418_v20, %v2419_v57  ;;  %v2644_v61 = vrot.slane %v2643_v28, 4 }
 0x468   : > { %v2100_v3 = vadd.f32 %v2099_v41, %v2098_v34  ;;  %v2264_v35 = vrot.slane %v2263_v56, 1  ;;  %v2434_v32 = vmax.f32 %v2432_v10, %v2433_v16  ;;  %v2658_v13 = vrot.slane %v2657_v21, 4 }
 0x469   : > { %v2238_v22 = vadd.f32 %v2237_v23, %v2236_v46  ;;  %v2427_v62 = vmax.f32 %v2425_v59, %v2426_v19  ;;  %v2111_v51 = vcombine.low %v2073_v7, %v2082_v18  ;;  %v2247_v2 = vadd.f32 %v2246_v17, %v2245_v14 }
 0x46a   : > { %v2256_v6 = vadd.f32 %v2255_v31, %v2254_v42  ;;  %v2651_v58 = vrot.slane %v2650_v63, 4  ;;  %v2112_v8 = vcombine.low %v2091_v15, %v2100_v3  ;;  %v2265_v33 = vadd.f32 %v2264_v35, %v2263_v56  ;;  %v2028_v56 = vld [vmem:[#allocation6] sm:$0xff] }
 0x46b   : > { %v2133_v53 = vrot.slane %v2111_v51, %v6841_v43  ;;  %v2276_v50 = vcombine.low %v2238_v22, %v2247_v2  ;;  %v2421_v48 = vrot.slane %v2420_v26, 2  ;;  %v2645_v25 = vmin.f32 %v2643_v28, %v2644_v61  ;;  %v2161_v22 = vld [vmem:[#allocation7] sm:$0xff] }
 0x46c   : > { %v2140_v20 = vrot.slane %v2112_v8, %v6841_v43  ;;  %v2277_v27 = vcombine.low %v2256_v6, %v2265_v33  ;;  %v2435_v47 = vrot.slane %v2434_v32, 2  ;;  %v2659_v57 = vmin.f32 %v2657_v21, %v2658_v13 }
 0x46d   : > { %v2602_v10 = vrot.slane %v7217_v11, 4  ;;  %v2414_v59 = vrot.slane %v7229_v49, 2  ;;  %v2638_v19 = vmin.f32 %v7221_v52, %v2637_v38  ;;  %v2298_v35 = vrot.slane %v2276_v50, %v6841_v43 }
 0x46e   : > { %v2428_v46 = vrot.slane %v2427_v62, 2  ;;  %v2652_v51 = vmin.f32 %v2650_v63, %v2651_v58  ;;  %v2142_v42 = vcombine.low %v2133_v53, %v2140_v20  ;;  %v2305_v28 = vrot.slane %v2277_v27, %v6841_v43 }
 0x46f   : > { %v2365_v34 = vrot.slane %v7209_v54, 2  ;;  %v7749_v45 = vrot.slane %v7188_v40, 4  ;;  %v2422_v21 = vmax.f32 %v2420_v26, %v2421_v48  ;;  %v2646_v7 = vrot.slane %v2645_v25, 2 }
 0x470   : > { %v2156_v23 = vrot.slane %v2142_v42, %v6841_v43  ;;  %v2307_v14 = vcombine.low %v2298_v35, %v2305_v28  ;;  %v2436_v15 = vmax.f32 %v2434_v32, %v2435_v47  ;;  %v2660_v52 = vrot.slane %v2659_v57, 2 }
 0x471   : > { %v2589_v16 = vmin.f32 %v7188_v40, %v7749_v45  ;;  %v2379_v38 = vrot.slane %v7212_v9, 2  ;;  %v2603_v63 = vmin.f32 %v7217_v11, %v2602_v10  ;;  %v2415_v31 = vmax.f32 %v7229_v49, %v2414_v59 }
 0x472   : > { %v2639_v41 = vrot.slane %v2638_v19, 2  ;;  %v2429_v18 = vmax.f32 %v2427_v62, %v2428_v46  ;;  %v2653_v17 = vrot.slane %v2652_v51, 2  ;;  %v2157_v61 = vcombine.low %v7141_v37, %v2156_v23 }
 0x473   : > { %v2321_v40 = vrot.slane %v2307_v14, %v6841_v43  ;;  %v2366_v26 = vmax.f32 %v7209_v54, %v2365_v34  ;;  %v2590_v3 = vrot.slane %v2589_v16, 2  ;;  %v2423_v13 = vrot.slane %v2422_v21, 1 }
 0x474   : > { %v2647_v32 = vmin.f32 %v2645_v25, %v2646_v7  ;;  %v2159_v2 = vadd.f32 %v2157_v61, %v2028_v56  ;;  %v2437_v11 = vrot.slane %v2436_v15, 1  ;;  %v2661_v58 = vmin.f32 %v2659_v57, %v2660_v52 }
 0x475   : > { %v2322_v6 = vcombine.low %v7153_v30, %v2321_v40  ;;  %v2380_v49 = vmax.f32 %v7212_v9, %v2379_v38  ;;  %v2604_v8 = vrot.slane %v2603_v63, 2  ;;  %v2416_v62 = vrot.slane %v2415_v31, 1 }
 0x476   : > { %v2640_v33 = vmin.f32 %v2638_v19, %v2639_v41  ;;  %v2430_v53 = vrot.slane %v2429_v18, 1  ;;  %v2654_v37 = vmin.f32 %v2652_v51, %v2653_v17  ;;  %2160 = vst [vmem:[#allocation6] sm:$0xff] %v2159_v2  ;;  %v7259_v50 = vmul.f32 0.03125, %v2159_v2 }
 0x477   : > { %v2324_v43 = vadd.f32 %v2322_v6, %v2161_v22  ;;  %v7750_v54 = vrot.slane %v7183_v29, 2  ;;  %v2591_v25 = vmin.f32 %v2589_v16, %v2590_v3  ;;  %v2424_v20 = vmax.f32 %v2422_v21, %v2423_v13 }
 0x478   : > { %v2648_v30 = vrot.slane %v2647_v32, 1  ;;  %v2438_v27 = vmax.f32 %v2436_v15, %v2437_v11  ;;  %v2662_v47 = vrot.slane %v2661_v58, 1  ;;  %v2775_v57 = vmul.f32 %v7259_v50, %v7259_v50 }
 0x479   : > { %v2373_v48 = vmax.f32 %v7183_v29, %v7750_v54  ;;  %2325 = vst [vmem:[#allocation7] sm:$0xff] %v2324_v43  ;;  %v2774_v9 = vmul.f32 0.03125, %v2324_v43  ;;  %v2367_v10 = vrot.slane %v2366_v26, 1  ;;  %v2381_v59 = vrot.slane %v2380_v49, 1 }
 0x47a   : > { %v2605_v19 = vmin.f32 %v2603_v63, %v2604_v8  ;;  %v2641_v35 = vrot.slane %v2640_v33, 1  ;;  %v2417_v46 = vmax.f32 %v2415_v31, %v2416_v62  ;;  %v2431_v51 = vmax.f32 %v2429_v18, %v2430_v53 }
 0x47b   : > { %v2655_v42 = vrot.slane %v2654_v37, 1  ;;  %v2776_v28 = vsub.f32 %v2774_v9, %v2775_v57  ;;  %v2360_v29 = vrot.slane %v7190_v55, 1  ;;  %v2374_v34 = vrot.slane %v2373_v48, 1 }
 0x47c   : > { %v7751_v45 = vrot.slane %v7185_v36, 2  ;;  %v2649_v21 = vmin.f32 %v2647_v32, %v2648_v30  ;;  %v2506_v7 = vcombine.low %v2417_v46, %v2424_v20  ;;  %v2507_v23 = vcombine.low %v2431_v51, %v2438_v27  ;;  %v2777_v30 = vld [vmem:[#allocation27] sm:$0xff]  ;;  %v2781_v51 = vld [vmem:[#allocation28] sm:$0xff] }
 0x47d   : > { %v2663_v14 = vmin.f32 %v2661_v58, %v2662_v47  ;;  %v2778_v15 = vadd.f32 1e-05, %v2776_v28  ;;  %v2730_v52 = vcombine.low %v7136_v60, %v7166_v39  ;;  %v2368_v38 = vmax.f32 %v2366_v26, %v2367_v10  ;;  %v7752_v28 = vld [vmem:[#allocation61_spill] sm:$0xff] }
 0x47e   : > { %v2598_v16 = vmin.f32 %v7185_v36, %v7751_v45  ;;  %v2592_v63 = vrot.slane %v2591_v25, 1  ;;  %v2606_v31 = vrot.slane %v2605_v19, 1  ;;  %v2382_v41 = vmax.f32 %v2380_v49, %v2381_v59 }
 0x47f   : > { %v2642_v56 = vmin.f32 %v2640_v33, %v2641_v35  ;;  %v2656_v18 = vmin.f32 %v2654_v37, %v2655_v42  ;;  %5535 = vrsqrt.f32 %v2778_v15  ;;  %v2361_v17 = vmax.f32 %v7190_v55, %v2360_v29 }
 0x480   : > { %v2585_v61 = vrot.slane %v7200_v44, 1  ;;  %v2375_v36 = vmax.f32 %v2373_v48, %v2374_v34  ;;  %v2599_v40 = vrot.slane %v2598_v16, 1  ;;  %v2514_v3 = vrot.slane %v2506_v7, %v6838_v0  ;;  %v7753_v34 = vld [vmem:[#allocation60_spill] sm:$0xff] }
 0x481   : > { %v2731_v13 = vcombine.low %v2642_v56, %v2649_v21  ;;  %v2521_v32 = vrot.slane %v2507_v23, %v6838_v0  ;;  %v2732_v22 = vcombine.low %v2656_v18, %v2663_v14  ;;  %v2593_v60 = vmin.f32 %v2591_v25, %v2592_v63  ;;  %v7754_v21 = vld [vmem:[#allocation62_spill] sm:$0xff]  ;;  %v7755_v23 = vld [vmem:[#allocation63_spill] sm:$0xff]  ;;  %v7756_v63 = vld [vmem:[#allocation64_spill] sm:$0xff] }
 0x482   : > { %v2607_v39 = vmin.f32 %v2605_v19, %v2606_v31  ;;  %v2471_v26 = vcombine.low %v7110_v4, %v7124_v5  ;;  %v2750_v2 = vrot.slane %v2730_v52, 7  ;;  %v2472_v6 = vcombine.low %v2361_v17, %v2368_v38  ;;  %v7758_v18 = vld [vmem:[#allocation66_spill] sm:$0xff] }
 0x483   : > { %v2473_v11 = vcombine.low %v2375_v36, %v2382_v41  ;;  %v2696_v55 = vcombine.low %v7115_v12, %v7133_v1  ;;  %v2586_v58 = vmin.f32 %v7200_v44, %v2585_v61  ;;  %v2600_v49 = vmin.f32 %v2598_v16, %v2599_v40  ;;  %v7759_v61 = vld [vmem:[#allocation65_spill] sm:$0xff] }
 0x484   : > { %v2739_v8 = vrot.slane %v2731_v13, %v6838_v0  ;;  %v2522_v62 = vcombine.low %v2514_v3, %v2521_v32  ;;  %v2746_v33 = vrot.slane %v2732_v22, %v6838_v0  ;;  %v2529_v53 = vsel %vm2528_vm4, %v7155_v24, %v2471_v26 }
 0x485   : > { %v2697_v37 = vcombine.low %v2586_v58, %v2593_v60  ;;  %v2698_v4 = vcombine.low %v2600_v49, %v2607_v39  ;;  %v2480_v5 = vrot.slane %v2472_v6, %v6838_v0  ;;  %v2487_v43 = vrot.slane %v2473_v11, %v6838_v0  ;;  %v7760_v11 = vld [vmem:[#allocation67_spill] sm:$0xff] }
 0x486   : > { %v2751_v12 = vsel %vm2528_vm4, %v2750_v2, %v2696_v55  ;;  %v2531_v1 = vsel %vm2530_vm5, %v7155_v24, %v2529_v53  ;;  %v2538_v44 = vrot.slane %v2522_v62, 7  ;;  %v2747_v54 = vcombine.low %v2739_v8, %v2746_v33 }
 0x487   : > { %v2705_v48 = vrot.slane %v2697_v37, %v6838_v0  ;;  %v2712_v25 = vrot.slane %v2698_v4, %v6838_v0  ;;  %v2752_v20 = vsel %vm2530_vm5, %v2750_v2, %v2751_v12  ;;  %v2488_v27 = vcombine.low %v2480_v5, %v2487_v43 }
 0x488   : > { %v2533_v47 = vsel %vm2532_vm6, %v7155_v24, %v2531_v1  ;;  %v2757_v57 = vrot.slane %v2747_v54, 7  ;;  %v2753_v10 = vsel %vm2532_vm6, %v2750_v2, %v2752_v20  ;;  %v7757_v41 = vmov 0  }
 0x489   : > { %v2539_v19 = vsel %vm2528_vm4, %v2538_v44, %v2488_v27  ;;  %v2713_v35 = vcombine.low %v2705_v48, %v2712_v25  ;;  %v2535_v46 = vsel %vm2534_vm7, %v7155_v24, %v2533_v47  ;;  %v2754_v16 = vsel %vm2534_vm7, %v2750_v2, %v2753_v10 }
 0x48a   : > { %v2540_v15 = vsel %vm2530_vm5, %v2538_v44, %v2539_v19 }
 0x48b   : > { %v2758_v24 = vsel %vm2528_vm4, %v2757_v57, %v2713_v35  ;;  %v2541_v39 = vsel %vm2532_vm6, %v2538_v44, %v2540_v15 }
 0x48c   : > { %v5536_v9 = vpop.eup %5535  ;;  %v2759_v26 = vsel %vm2530_vm5, %v2757_v57, %v2758_v24  ;;  %v2542_v12 = vsel %vm2534_vm7, %v2538_v44, %v2541_v39  ;;  %v3361_v39 = vld [vmem:[#allocation30 + $0x8c8] sm:$0xff] }
 0x48d   : > { %v2780_v59 = vmul.f32 %v5536_v9, %v2777_v30  ;;  %v2760_v1 = vsel %vm2532_vm6, %v2757_v57, %v2759_v26 }
 0x48e   : > { %v2761_v44 = vsel %vm2534_vm7, %v2757_v57, %v2760_v1 }
 0x48f   : > { %v2782_v42 = vmul.f32 %v2780_v59, %v7259_v50  ;;  %vm2784_vm8 = vcmp.ge.f32.partialorder %v2780_v59, 0.0  ;;  %v2791_v29 = vrot.slane %v2780_v59, %v7752_v28  ;;  %v2795_v45 = vrot.slane %v2780_v59, %v7753_v34 }
 0x490   : > { %v2799_v7 = vrot.slane %v2780_v59, %v7754_v21  ;;  %v2803_v14 = vrot.slane %v2780_v59, %v7755_v23  ;;  %v2807_v31 = vrot.slane %v2780_v59, %v7756_v63  ;;  %v7309_v56 = vsel %vm2784_vm8, 1, %v7757_v41 }
 0x491   : > { %v2783_v52 = vsub.f32 %v2781_v51, %v2782_v42  ;;  %v2820_v38 = vcombine.low %v2791_v29, %v2795_v45  ;;  %v2811_v17 = vrot.slane %v2780_v59, %v7758_v18  ;;  %v2815_v36 = vrot.slane %v2780_v59, %v7759_v61 }
 0x492   : > { %v2821_v50 = vcombine.low %v2799_v7, %v2803_v14  ;;  %v2943_v6 = vrot.slane %v7309_v56, %v7753_v34  ;;  %v2819_v55 = vrot.slane %v2780_v59, %v7760_v11  ;;  %v2939_v48 = vrot.slane %v7309_v56, %v7752_v28 }
 0x493   : > { %v2828_v40 = vrot.slane %v2820_v38, %v6838_v0  ;;  %v2862_v3 = vrot.slane %v2783_v52, %v7752_v28  ;;  %v2866_v13 = vrot.slane %v2783_v52, %v7753_v34  ;;  %v2870_v32 = vrot.slane %v2783_v52, %v7754_v21 }
 0x494   : > { %v2835_v22 = vrot.slane %v2821_v50, %v6838_v0  ;;  %v2874_v60 = vrot.slane %v2783_v52, %v7755_v23  ;;  %v2837_v58 = vcombine.low %v2807_v31, %v2811_v17  ;;  %v2878_v62 = vrot.slane %v2783_v52, %v7756_v63 }
 0x495   : > { %v2891_v2 = vcombine.low %v2862_v3, %v2866_v13  ;;  %v2882_v33 = vrot.slane %v2783_v52, %v7758_v18  ;;  %v2838_v37 = vcombine.low %v2815_v36, %v2819_v55  ;;  %v2886_v5 = vrot.slane %v2783_v52, %v7759_v61 }
 0x496   : > { %v2836_v49 = vcombine.low %v2828_v40, %v2835_v22  ;;  %v2892_v8 = vcombine.low %v2870_v32, %v2874_v60  ;;  %v2845_v4 = vrot.slane %v2837_v58, %v6838_v0  ;;  %v2890_v54 = vrot.slane %v2783_v52, %v7760_v11  ;;  %v3368_v40 = vld [vmem:[#allocation30 + $0x900] sm:$0xff] }
 0x497   : > { %v2899_v53 = vrot.slane %v2891_v2, %v6838_v0  ;;  %v2951_v25 = vrot.slane %v7309_v56, %v7755_v23  ;;  %v2852_v20 = vrot.slane %v2838_v37, %v6838_v0  ;;  %v2908_v30 = vcombine.low %v2878_v62, %v2882_v33 }
 0x498   : > { %v2906_v43 = vrot.slane %v2892_v8, %v6838_v0  ;;  %v2856_v27 = vmul.f32 %v2836_v49, %v2535_v46  ;;  %v2931_v9 = vmul.f32 %v2836_v49, %v2754_v16  ;;  %v2909_v10 = vcombine.low %v2886_v5, %v2890_v54  ;;  %v3396_v49 = vld [vmem:[#allocation30 + $0x9e0] sm:$0xff]  ;;  %v3381_v16 = vld [vmem:[#allocation30 + $0x968] sm:$0xff] }
 0x499   : > { %vm7338_vm9 = vcmp.eq.s32.totalorder %v2943_v6, 1  ;;  %v2853_v19 = vcombine.low %v2845_v4, %v2852_v20  ;;  %v2916_v35 = vrot.slane %v2908_v30, %v6838_v0  ;;  %v2959_v45 = vrot.slane %v7309_v56, %v7758_v18  ;;  %v3524_v20 = vld [vmem:[#allocation30 + $0xde0] sm:$0xff]  ;;  %v3267_v30 = vld [vmem:[#allocation30 + $0x5d8] sm:$0xff] }
 0x49a   : > { %v2907_v47 = vcombine.low %v2899_v53, %v2906_v43  ;;  %v2923_v29 = vrot.slane %v2909_v10, %v6838_v0  ;;  %vm7347_vm10 = vcmp.eq.s32.totalorder %v2939_v48, 1  ;;  %vm7351_vm11 = vcmp.eq.s32.totalorder %v2951_v25, 1  ;;  %v3392_v43 = vld [vmem:[#allocation30 + $0x9c0] sm:$0xff] }
 0x49b   : > { %v2947_v57 = vrot.slane %v7309_v56, %v7754_v21  ;;  %v2967_v7 = vrot.slane %v7309_v56, %v7760_v11  ;;  %v2857_v24 = vmul.f32 %v2853_v19, %v2542_v12  ;;  %v2932_v50 = vmul.f32 %v2853_v19, %v2761_v44  ;;  %v3388_v44 = vld [vmem:[#allocation30 + $0x9a0] sm:$0xff] }
 0x49c   : > { %v2927_v51 = vadd.f32 %v2907_v47, %v2856_v27  ;;  %v2933_v42 = vadd.f32 %v2931_v9, %v2907_v47  ;;  %v2924_v31 = vcombine.low %v2916_v35, %v2923_v29  ;;  %v2955_v41 = vrot.slane %v7309_v56, %v7756_v63  ;;  %v3389_v27 = vld [vmem:[#allocation30 + $0x9a8] sm:$0xff]  ;;  %v3520_v19 = vld [vmem:[#allocation30 + $0xdc0] sm:$0xff] }
 0x49d   : > { %vm7364_vm12 = vcmp.eq.s32.totalorder %v2959_v45, 1  ;;  %vm7375_vm13 = vcmp.eq.s32.totalorder %v2947_v57, 1  ;;  %v2963_v26 = vrot.slane %v7309_v56, %v7759_v61  ;;  %v3393_v61 = vld [vmem:[#allocation30 + $0x9c8] sm:$0xff]  ;;  %vm2975_vm0 = vcmp.eq.s32.totalorder %v2967_v7, 1  ;;  %v3384_v45 = vld [vmem:[#allocation30 + $0x980] sm:$0xff] }
 0x49e   : > { %v2985_v14 = vrot.slane %v2927_v51, %v6838_v0  ;;  %v3029_v15 = vrot.slane %v2933_v42, %v6838_v0  ;;  %v2978_v52 = vcombine.high %v2927_v51, %v2927_v51  ;;  %v3022_v38 = vcombine.high %v2933_v42, %v2933_v42  ;;  %v3521_v47 = vld [vmem:[#allocation30 + $0xdc8] sm:$0xff]  ;;  %v3516_v46 = vld [vmem:[#allocation30 + $0xda0] sm:$0xff] }
 0x49f   : > { %v2928_v32 = vadd.f32 %v2924_v31, %v2857_v24  ;;  %v2934_v22 = vadd.f32 %v2932_v50, %v2924_v31  ;;  %vm7402_vm14 = vcmp.eq.s32.totalorder %v2955_v41, 1  ;;  %vm7424_vm15 = vcmp.eq.s32.totalorder %v2963_v26, 1  ;;  %v3385_v51 = vld [vmem:[#allocation30 + $0x988] sm:$0xff]  ;;  %v3380_v7 = vld [vmem:[#allocation30 + $0x960] sm:$0xff] }
 0x4a0   : > { %v2993_v18 = vcombine.high %v2985_v14, %v2985_v14  ;;  %v3037_v17 = vcombine.high %v3029_v15, %v3029_v15  ;;  %v2992_v36 = vrot.slane %v2978_v52, %v6838_v0  ;;  %v3064_v3 = vsel %vm7347_vm10, %v2985_v14, %v3029_v15  ;;  %v3517_v29 = vld [vmem:[#allocation30 + $0xda8] sm:$0xff]  ;;  %v3512_v14 = vld [vmem:[#allocation30 + $0xd80] sm:$0xff] }
 0x4a1   : > { %v3036_v13 = vrot.slane %v3022_v38, %v6838_v0  ;;  %v7383_v11 = vrot.slane %v2928_v32, %v6838_v0  ;;  %v7386_v55 = vrot.slane %v2934_v22, %v6838_v0  ;;  %v7388_v58 = vmax.f32 %v3064_v3, 0.0  ;;  %v3513_v57 = vld [vmem:[#allocation30 + $0xd88] sm:$0xff]  ;;  %v3376_v38 = vld [vmem:[#allocation30 + $0x940] sm:$0xff] }
 0x4a2   : > { %v7373_v60 = vsel %vm7338_vm9, %v2993_v18, %v3037_v17  ;;  %v2994_v63 = vcombine.high %v2992_v36, %v2992_v36  ;;  %v2995_v62 = vcombine.high %v2928_v32, %v2928_v32  ;;  %v3039_v33 = vcombine.high %v2934_v22, %v2934_v22  ;;  %v3377_v15 = vld [vmem:[#allocation30 + $0x948] sm:$0xff]  ;;  %v3508_v24 = vld [vmem:[#allocation30 + $0xd60] sm:$0xff] }
 0x4a3   : > { %v3073_v2 = vmax.f32 %v7373_v60, 0.0  ;;  %v3038_v6 = vcombine.high %v3036_v13, %v3036_v13  ;;  %v3066_v8 = vsel %vm7375_vm13, %v2992_v36, %v3036_v13  ;;  %v3010_v53 = vcombine.high %v7383_v11, %v7383_v11  ;;  %v3509_v52 = vld [vmem:[#allocation30 + $0xd68] sm:$0xff]  ;;  %v3372_v41 = vld [vmem:[#allocation30 + $0x920] sm:$0xff]  ;;  %v3262_v60 = vld [vmem:[#allocation30 + $0x5b0] sm:$0xff] }
 0x4a4   : > { %v3054_v37 = vcombine.high %v7386_v55, %v7386_v55  ;;  %v7409_v12 = vrot.slane %v2995_v62, %v6838_v0  ;;  %v7412_v1 = vrot.slane %v3039_v33, %v6838_v0  ;;  %v3068_v54 = vsel %vm7402_vm14, %v7383_v11, %v7386_v55  ;;  %v3373_v31 = vld [vmem:[#allocation30 + $0x928] sm:$0xff]  ;;  %v3504_v18 = vld [vmem:[#allocation30 + $0xd40] sm:$0xff]  ;;  %v3139_v11 = vld [vmem:[#allocation30 + $0x1d8] sm:$0xff] }
 0x4a5   : > { %3678 = vmatprep.mubr.f32.mxu0 %v3073_v2  ;;  %v7396_v56 = vsel %vm7351_vm11, %v2994_v63, %v3038_v6  ;;  %v7422_v25 = vmax.f32 %v3066_v8, 0.0  ;;  %v3505_v50 = vld [vmem:[#allocation30 + $0xd48] sm:$0xff]  ;;  %v3500_v3 = vld [vmem:[#allocation30 + $0xd20] sm:$0xff]  ;;  %v3271_v55 = vld [vmem:[#allocation30 + $0x5f8] sm:$0xff] }
 0x4a6   : > { %3679 = vmatmul.mubr.f32.vlgmr.msra.gmra.mxu0 %v7388_v58  ;;  %v3075_v5 = vmax.f32 %v7396_v56, 0.0  ;;  %v7420_v48 = vsel %vm7364_vm12, %v3010_v53, %v3054_v37  ;;  %v3011_v9 = vcombine.high %v7409_v12, %v7409_v12  ;;  %v3055_v10 = vcombine.high %v7412_v1, %v7412_v1  ;;  %v3369_v17 = vld [vmem:[#allocation30 + $0x908] sm:$0xff]  ;;  %v3364_v22 = vld [vmem:[#allocation30 + $0x8e0] sm:$0xff]  ;;  %v3122_v56 = vld [vmem:[#allocation30 + $0x150] sm:$0xff] }
 0x4a7   : > { %3757 = vmatpush1.msra.mxu0 %v3396_v49  ;;  %v3077_v0 = vmax.f32 %v7420_v48, 0.0  ;;  %v3070_v59 = vsel %vm7424_vm15, %v7409_v12, %v7412_v1  ;;  %v3501_v36 = vld [vmem:[#allocation30 + $0xd28] sm:$0xff]  ;;  %v3496_v63 = vld [vmem:[#allocation30 + $0xd00] sm:$0xff]  ;;  %v3266_v12 = vld [vmem:[#allocation30 + $0x5d0] sm:$0xff] }
 0x4a8   : > { %3749 = vmatprep.mubr.f32.mxu1 %v3075_v5  ;;  %3758 = vmatprep.subr.mxu0 %v3393_v61  ;;  %v7442_v35 = vsel %vm2975_vm0, %v3011_v9, %v3055_v10  ;;  %v3365_v13 = vld [vmem:[#allocation30 + $0x8e8] sm:$0xff]  ;;  %v3360_v6 = vld [vmem:[#allocation30 + $0x8c0] sm:$0xff]  ;;  %v7460_v4 = vmax.f32 %v3070_v59, 0.0  ;;  %v3131_v1 = vld [vmem:[#allocation30 + $0x198] sm:$0xff] }
 0x4a9   : > { %3750 = vmatmul.mubr.f32.vlgmr.msra.gmra.mxu1 %v7422_v25  ;;  %3759 = vmatpush1.msra.mxu0 %v3392_v43  ;;  %v3079_v42 = vmax.f32 %v7442_v35, 0.0  ;;  %v3497_v32 = vld [vmem:[#allocation30 + $0xd08] sm:$0xff]  ;;  %v3492_v49 = vld [vmem:[#allocation30 + $0xce0] sm:$0xff]  ;;  %v3263_v59 = vld [vmem:[#allocation30 + $0x5b8] sm:$0xff] }
 0x4aa   : > { %3820 = vmatprep.mubr.f32.mxu0 %v3077_v0  ;;  %3828 = vmatpush1.msra.mxu1 %v3524_v20  ;;  %v3493_v26 = vld [vmem:[#allocation30 + $0xce8] sm:$0xff]  ;;  %v3356_v33 = vld [vmem:[#allocation30 + $0x8a0] sm:$0xff]  ;;  %v3518_v48 = vld [vmem:[#allocation30 + $0xdb0] sm:$0xff] }
 0x4ab   : > { %3760 = vmatprep.subr.mxu0 %v3389_v27  ;;  %3829 = vmatprep.subr.mxu1 %v3521_v47  ;;  %v3357_v8 = vld [vmem:[#allocation30 + $0x8a8] sm:$0xff]  ;;  %v3488_v61 = vld [vmem:[#allocation30 + $0xcc0] sm:$0xff]  ;;  %v3378_v35 = vld [vmem:[#allocation30 + $0x950] sm:$0xff] }
 0x4ac   : > { %3761 = vmatpush1.msra.mxu0 %v3388_v44  ;;  %3830 = vmatpush1.msra.mxu1 %v3520_v19  ;;  %v3489_v62 = vld [vmem:[#allocation30 + $0xcc8] sm:$0xff]  ;;  %v3352_v43 = vld [vmem:[#allocation30 + $0x880] sm:$0xff] }
 0x4ad   : > { %3891 = vmatprep.mubr.f32.mxu1 %v3079_v42  ;;  %3762 = vmatprep.subr.mxu0 %v3385_v51  ;;  %v3353_v53 = vld [vmem:[#allocation30 + $0x888] sm:$0xff]  ;;  %v3484_v20 = vld [vmem:[#allocation30 + $0xca0] sm:$0xff] }
 0x4ae   : > { %3831 = vmatprep.subr.mxu1 %v3517_v29  ;;  %3763 = vmatpush1.msra.mxu0 %v3384_v45  ;;  %v3485_v37 = vld [vmem:[#allocation30 + $0xca8] sm:$0xff]  ;;  %v3348_v9 = vld [vmem:[#allocation30 + $0x860] sm:$0xff] }
 0x4af   : > { %3832 = vmatpush1.msra.mxu1 %v3516_v46  ;;  %3764 = vmatprep.subr.mxu0 %v3381_v16  ;;  %v3349_v27 = vld [vmem:[#allocation30 + $0x868] sm:$0xff]  ;;  %v3480_v10 = vld [vmem:[#allocation30 + $0xc80] sm:$0xff] }
 0x4b0   : > { %3833 = vmatprep.subr.mxu1 %v3513_v57  ;;  %3765 = vmatpush1.msra.mxu0 %v3380_v7  ;;  %v3481_v47 = vld [vmem:[#allocation30 + $0xc88] sm:$0xff]  ;;  %v3344_v51 = vld [vmem:[#allocation30 + $0x840] sm:$0xff] }
 0x4b1   : > { %3834 = vmatpush1.msra.mxu1 %v3512_v14  ;;  %3766 = vmatprep.subr.mxu0 %v3377_v15  ;;  %v3345_v44 = vld [vmem:[#allocation30 + $0x848] sm:$0xff]  ;;  %v3476_v29 = vld [vmem:[#allocation30 + $0xc60] sm:$0xff] }
 0x4b2   : > { %3835 = vmatprep.subr.mxu1 %v3509_v52  ;;  %3767 = vmatpush1.msra.mxu0 %v3376_v38  ;;  %v3477_v19 = vld [vmem:[#allocation30 + $0xc68] sm:$0xff]  ;;  %v3340_v16 = vld [vmem:[#allocation30 + $0x820] sm:$0xff] }
 0x4b3   : > { %3836 = vmatpush1.msra.mxu1 %v3508_v24  ;;  %3768 = vmatprep.subr.mxu0 %v3373_v31  ;;  %v3341_v45 = vld [vmem:[#allocation30 + $0x828] sm:$0xff]  ;;  %v3472_v57 = vld [vmem:[#allocation30 + $0xc40] sm:$0xff] }
 0x4b4   : > { %3837 = vmatprep.subr.mxu1 %v3505_v50  ;;  %3769 = vmatpush1.msra.mxu0 %v3372_v41  ;;  %v3473_v46 = vld [vmem:[#allocation30 + $0xc48] sm:$0xff]  ;;  %v3336_v15 = vld [vmem:[#allocation30 + $0x800] sm:$0xff] }
 0x4b5   : > { %3838 = vmatpush1.msra.mxu1 %v3504_v18  ;;  %3770 = vmatprep.subr.mxu0 %v3369_v17  ;;  %v3337_v7 = vld [vmem:[#allocation30 + $0x808] sm:$0xff]  ;;  %v3468_v52 = vld [vmem:[#allocation30 + $0xc20] sm:$0xff] }
 0x4b6   : > { %3839 = vmatprep.subr.mxu1 %v3501_v36  ;;  %3771 = vmatpush1.msra.mxu0 %v3368_v40  ;;  %v3469_v14 = vld [vmem:[#allocation30 + $0xc28] sm:$0xff]  ;;  %v3460_v31 = vld [vmem:[#allocation30 + $0xbe0] sm:$0xff] }
 0x4b7   : > { %3840 = vmatpush1.msra.mxu1 %v3500_v3  ;;  %3772 = vmatprep.subr.mxu0 %v3365_v13  ;;  %v3461_v38 = vld [vmem:[#allocation30 + $0xbe8] sm:$0xff]  ;;  %v3464_v50 = vld [vmem:[#allocation30 + $0xc00] sm:$0xff] }
 0x4b8   : > { %3841 = vmatprep.subr.mxu1 %v3497_v32  ;;  %3773 = vmatpush1.msra.mxu0 %v3364_v22  ;;  %v3465_v24 = vld [vmem:[#allocation30 + $0xc08] sm:$0xff]  ;;  %v3456_v17 = vld [vmem:[#allocation30 + $0xbc0] sm:$0xff] }
 0x4b9   : > { %3842 = vmatpush1.msra.mxu1 %v3496_v63  ;;  %3774 = vmatprep.subr.mxu0 %v3361_v39  ;;  %v3457_v41 = vld [vmem:[#allocation30 + $0xbc8] sm:$0xff]  ;;  %v3588_v36 = vld [vmem:[#allocation30 + $0xfe0] sm:$0xff] }
 0x4ba   : > { %3843 = vmatprep.subr.mxu1 %v3493_v26  ;;  %3775 = vmatpush1.msra.mxu0 %v3360_v6  ;;  %v3589_v18 = vld [vmem:[#allocation30 + $0xfe8] sm:$0xff]  ;;  %v3452_v13 = vld [vmem:[#allocation30 + $0xba0] sm:$0xff] }
 0x4bb   : > { %3844 = vmatpush1.msra.mxu1 %v3492_v49  ;;  %3776 = vmatprep.subr.mxu0 %v3357_v8  ;;  %v3453_v40 = vld [vmem:[#allocation30 + $0xba8] sm:$0xff]  ;;  %v3584_v32 = vld [vmem:[#allocation30 + $0xfc0] sm:$0xff] }
 0x4bc   : > { %3845 = vmatprep.subr.mxu1 %v3489_v62  ;;  %3777 = vmatpush1.msra.mxu0 %v3356_v33  ;;  %v3585_v3 = vld [vmem:[#allocation30 + $0xfc8] sm:$0xff]  ;;  %v3448_v39 = vld [vmem:[#allocation30 + $0xb80] sm:$0xff] }
 0x4bd   : > { %3846 = vmatpush1.msra.mxu1 %v3488_v61  ;;  %3778 = vmatprep.subr.mxu0 %v3353_v53  ;;  %v3449_v22 = vld [vmem:[#allocation30 + $0xb88] sm:$0xff]  ;;  %v3580_v26 = vld [vmem:[#allocation30 + $0xfa0] sm:$0xff] }
 0x4be   : > { %3847 = vmatprep.subr.mxu1 %v3485_v37  ;;  %3779 = vmatpush1.msra.mxu0 %v3352_v43  ;;  %v3581_v63 = vld [vmem:[#allocation30 + $0xfa8] sm:$0xff]  ;;  %v3444_v8 = vld [vmem:[#allocation30 + $0xb60] sm:$0xff] }
 0x4bf   : > { %3848 = vmatpush1.msra.mxu1 %v3484_v20  ;;  %3780 = vmatprep.subr.mxu0 %v3349_v27  ;;  %v3445_v6 = vld [vmem:[#allocation30 + $0xb68] sm:$0xff]  ;;  %v3576_v62 = vld [vmem:[#allocation30 + $0xf80] sm:$0xff] }
 0x4c0   : > { %3849 = vmatprep.subr.mxu1 %v3481_v47  ;;  %3781 = vmatpush1.msra.mxu0 %v3348_v9  ;;  %v3577_v49 = vld [vmem:[#allocation30 + $0xf88] sm:$0xff]  ;;  %v3440_v53 = vld [vmem:[#allocation30 + $0xb40] sm:$0xff] }
 0x4c1   : > { %3850 = vmatpush1.msra.mxu1 %v3480_v10  ;;  %3782 = vmatprep.subr.mxu0 %v3345_v44  ;;  %v3441_v33 = vld [vmem:[#allocation30 + $0xb48] sm:$0xff]  ;;  %v3572_v37 = vld [vmem:[#allocation30 + $0xf60] sm:$0xff] }
 0x4c2   : > { %3851 = vmatprep.subr.mxu1 %v3477_v19  ;;  %3783 = vmatpush1.msra.mxu0 %v3344_v51  ;;  %v3573_v61 = vld [vmem:[#allocation30 + $0xf68] sm:$0xff]  ;;  %v3436_v27 = vld [vmem:[#allocation30 + $0xb20] sm:$0xff] }
 0x4c3   : > { %3852 = vmatpush1.msra.mxu1 %v3476_v29  ;;  %3784 = vmatprep.subr.mxu0 %v3341_v45  ;;  %v3437_v43 = vld [vmem:[#allocation30 + $0xb28] sm:$0xff]  ;;  %v3568_v47 = vld [vmem:[#allocation30 + $0xf40] sm:$0xff] }
 0x4c4   : > { %3853 = vmatprep.subr.mxu1 %v3473_v46  ;;  %3785 = vmatpush1.msra.mxu0 %v3340_v16  ;;  %v3569_v20 = vld [vmem:[#allocation30 + $0xf48] sm:$0xff]  ;;  %v3432_v44 = vld [vmem:[#allocation30 + $0xb00] sm:$0xff] }
 0x4c5   : > { %3854 = vmatpush1.msra.mxu1 %v3472_v57  ;;  %3786 = vmatprep.subr.mxu0 %v3337_v7  ;;  %v3433_v9 = vld [vmem:[#allocation30 + $0xb08] sm:$0xff]  ;;  %v3564_v19 = vld [vmem:[#allocation30 + $0xf20] sm:$0xff] }
 0x4c6   : > { %3855 = vmatprep.subr.mxu1 %v3469_v14  ;;  %3787 = vmatpush1.msra.mxu0 %v3336_v15  ;;  %v3565_v10 = vld [vmem:[#allocation30 + $0xf28] sm:$0xff]  ;;  %v3428_v45 = vld [vmem:[#allocation30 + $0xae0] sm:$0xff] }
 0x4c7   : > { %3856 = vmatpush1.msra.mxu1 %v3468_v52  ;;  %3788 = vmatprep.subr.mxu0 %v3461_v38  ;;  %v3429_v51 = vld [vmem:[#allocation30 + $0xae8] sm:$0xff]  ;;  %v3560_v46 = vld [vmem:[#allocation30 + $0xf00] sm:$0xff] }
 0x4c8   : > { %3857 = vmatprep.subr.mxu1 %v3465_v24  ;;  %3789 = vmatpush2.msra.mxu0 %v3460_v31  ;;  %v3561_v29 = vld [vmem:[#allocation30 + $0xf08] sm:$0xff]  ;;  %v3424_v7 = vld [vmem:[#allocation30 + $0xac0] sm:$0xff] }
 0x4c9   : > { %3858 = vmatpush1.msra.mxu1 %v3464_v50  ;;  %3790 = vmatprep.subr.mxu0 %v3457_v41  ;;  %v3425_v16 = vld [vmem:[#allocation30 + $0xac8] sm:$0xff]  ;;  %v3556_v14 = vld [vmem:[#allocation30 + $0xee0] sm:$0xff] }
 0x4ca   : > { %3859 = vmatprep.subr.mxu1 %v3589_v18  ;;  %3791 = vmatpush2.msra.mxu0 %v3456_v17  ;;  %v3557_v57 = vld [vmem:[#allocation30 + $0xee8] sm:$0xff]  ;;  %v3420_v38 = vld [vmem:[#allocation30 + $0xaa0] sm:$0xff] }
 0x4cb   : > { %3860 = vmatpush2.msra.mxu1 %v3588_v36  ;;  %3792 = vmatprep.subr.mxu0 %v3453_v40  ;;  %v3421_v15 = vld [vmem:[#allocation30 + $0xaa8] sm:$0xff]  ;;  %v3552_v24 = vld [vmem:[#allocation30 + $0xec0] sm:$0xff] }
 0x4cc   : > { %3861 = vmatprep.subr.mxu1 %v3585_v3  ;;  %3793 = vmatpush2.msra.mxu0 %v3452_v13  ;;  %v3553_v52 = vld [vmem:[#allocation30 + $0xec8] sm:$0xff]  ;;  %v3416_v41 = vld [vmem:[#allocation30 + $0xa80] sm:$0xff] }
 0x4cd   : > { %3862 = vmatpush2.msra.mxu1 %v3584_v32  ;;  %3794 = vmatprep.subr.mxu0 %v3449_v22  ;;  %v3417_v31 = vld [vmem:[#allocation30 + $0xa88] sm:$0xff]  ;;  %v3548_v18 = vld [vmem:[#allocation30 + $0xea0] sm:$0xff] }
 0x4ce   : > { %3863 = vmatprep.subr.mxu1 %v3581_v63  ;;  %3795 = vmatpush2.msra.mxu0 %v3448_v39  ;;  %v3549_v50 = vld [vmem:[#allocation30 + $0xea8] sm:$0xff]  ;;  %v3412_v40 = vld [vmem:[#allocation30 + $0xa60] sm:$0xff] }
 0x4cf   : > { %3864 = vmatpush2.msra.mxu1 %v3580_v26  ;;  %3796 = vmatprep.subr.mxu0 %v3445_v6  ;;  %v3413_v17 = vld [vmem:[#allocation30 + $0xa68] sm:$0xff]  ;;  %v3544_v3 = vld [vmem:[#allocation30 + $0xe80] sm:$0xff] }
 0x4d0   : > { %3865 = vmatprep.subr.mxu1 %v3577_v49  ;;  %3797 = vmatpush2.msra.mxu0 %v3444_v8  ;;  %v3545_v36 = vld [vmem:[#allocation30 + $0xe88] sm:$0xff]  ;;  %v3408_v22 = vld [vmem:[#allocation30 + $0xa40] sm:$0xff] }
 0x4d1   : > { %3866 = vmatpush2.msra.mxu1 %v3576_v62  ;;  %3798 = vmatprep.subr.mxu0 %v3441_v33  ;;  %v3409_v13 = vld [vmem:[#allocation30 + $0xa48] sm:$0xff]  ;;  %v3540_v63 = vld [vmem:[#allocation30 + $0xe60] sm:$0xff] }
 0x4d2   : > { %3867 = vmatprep.subr.mxu1 %v3573_v61  ;;  %3799 = vmatpush2.msra.mxu0 %v3440_v53  ;;  %v3541_v32 = vld [vmem:[#allocation30 + $0xe68] sm:$0xff]  ;;  %v3404_v6 = vld [vmem:[#allocation30 + $0xa20] sm:$0xff]  ;;  %v7452_v53 = vmax.f32 %v3068_v54, 0.0  ;;  %v3138_v54 = vld [vmem:[#allocation30 + $0x1d0] sm:$0xff] }
 0x4d3   : > { %3868 = vmatpush2.msra.mxu1 %v3572_v37  ;;  %3800 = vmatprep.subr.mxu0 %v3437_v43  ;;  %v3405_v39 = vld [vmem:[#allocation30 + $0xa28] sm:$0xff]  ;;  %v3536_v49 = vld [vmem:[#allocation30 + $0xe40] sm:$0xff]  ;;  %v3143_v43 = vld [vmem:[#allocation30 + $0x1f8] sm:$0xff] }
 0x4d4   : > { %3869 = vmatprep.subr.mxu1 %v3569_v20  ;;  %3801 = vmatpush2.msra.mxu0 %v3436_v27  ;;  %v3537_v26 = vld [vmem:[#allocation30 + $0xe48] sm:$0xff]  ;;  %v3400_v33 = vld [vmem:[#allocation30 + $0xa00] sm:$0xff]  ;;  %v3142_v27 = vld [vmem:[#allocation30 + $0x1f0] sm:$0xff] }
 0x4d5   : > { %3870 = vmatpush2.msra.mxu1 %v3568_v47  ;;  %3802 = vmatprep.subr.mxu0 %v3433_v9  ;;  %v3401_v8 = vld [vmem:[#allocation30 + $0xa08] sm:$0xff]  ;;  %v3532_v61 = vld [vmem:[#allocation30 + $0xe20] sm:$0xff]  ;;  %v3270_v47 = vld [vmem:[#allocation30 + $0x5f0] sm:$0xff] }
 0x4d6   : > { %3871 = vmatprep.subr.mxu1 %v3565_v10  ;;  %3803 = vmatpush2.msra.mxu0 %v3432_v44  ;;  %v3533_v62 = vld [vmem:[#allocation30 + $0xe28] sm:$0xff]  ;;  %v3528_v20 = vld [vmem:[#allocation30 + $0xe00] sm:$0xff]  ;;  %v3135_v9 = vld [vmem:[#allocation30 + $0x1b8] sm:$0xff] }
 0x4d7   : > { %3872 = vmatpush2.msra.mxu1 %v3564_v19  ;;  %3804 = vmatprep.subr.mxu0 %v3429_v51  ;;  %v3529_v37 = vld [vmem:[#allocation30 + $0xe08] sm:$0xff]  ;;  %v3134_v10 = vld [vmem:[#allocation30 + $0x1b0] sm:$0xff]  ;;  %v3259_v19 = vld [vmem:[#allocation30 + $0x598] sm:$0xff] }
 0x4d8   : > { %3873 = vmatprep.subr.mxu1 %v3561_v29  ;;  %3805 = vmatpush2.msra.mxu0 %v3428_v45  ;;  %v3130_v44 = vld [vmem:[#allocation30 + $0x190] sm:$0xff]  ;;  %v3123_v45 = vld [vmem:[#allocation30 + $0x158] sm:$0xff] }
 0x4d9   : > { %3874 = vmatpush2.msra.mxu1 %v3560_v46  ;;  %3806 = vmatprep.subr.mxu0 %v3425_v16  ;;  %v3126_v51 = vld [vmem:[#allocation30 + $0x170] sm:$0xff]  ;;  %v3255_v46 = vld [vmem:[#allocation30 + $0x578] sm:$0xff] }
 0x4da   : > { %3875 = vmatprep.subr.mxu1 %v3557_v57  ;;  %3807 = vmatpush2.msra.mxu0 %v3424_v7  ;;  %v3258_v29 = vld [vmem:[#allocation30 + $0x590] sm:$0xff]  ;;  %v3119_v16 = vld [vmem:[#allocation30 + $0x138] sm:$0xff] }
 0x4db   : > { %3876 = vmatpush2.msra.mxu1 %v3556_v14  ;;  %3808 = vmatprep.subr.mxu0 %v3421_v15  ;;  %v3251_v57 = vld [vmem:[#allocation30 + $0x558] sm:$0xff]  ;;  %v3118_v7 = vld [vmem:[#allocation30 + $0x130] sm:$0xff] }
 0x4dc   : > { %3877 = vmatprep.subr.mxu1 %v3553_v52  ;;  %3809 = vmatpush2.msra.mxu0 %v3420_v38  ;;  %v3250_v14 = vld [vmem:[#allocation30 + $0x550] sm:$0xff]  ;;  %v3115_v15 = vld [vmem:[#allocation30 + $0x118] sm:$0xff] }
 0x4dd   : > { %3878 = vmatpush2.msra.mxu1 %v3552_v24  ;;  %3810 = vmatprep.subr.mxu0 %v3417_v31  ;;  %v3247_v52 = vld [vmem:[#allocation30 + $0x538] sm:$0xff]  ;;  %v3114_v38 = vld [vmem:[#allocation30 + $0x110] sm:$0xff] }
 0x4de   : > { %3879 = vmatprep.subr.mxu1 %v3549_v50  ;;  %3811 = vmatpush2.msra.mxu0 %v3416_v41  ;;  %v3246_v24 = vld [vmem:[#allocation30 + $0x530] sm:$0xff]  ;;  %v3111_v31 = vld [vmem:[#allocation30 + $0xf8] sm:$0xff] }
 0x4df   : > { %3880 = vmatpush2.msra.mxu1 %v3548_v18  ;;  %3812 = vmatprep.subr.mxu0 %v3413_v17  ;;  %v3243_v50 = vld [vmem:[#allocation30 + $0x518] sm:$0xff]  ;;  %v3110_v41 = vld [vmem:[#allocation30 + $0xf0] sm:$0xff] }
 0x4e0   : > { %3881 = vmatprep.subr.mxu1 %v3545_v36  ;;  %3813 = vmatpush2.msra.mxu0 %v3412_v40  ;;  %v3242_v18 = vld [vmem:[#allocation30 + $0x510] sm:$0xff]  ;;  %v3107_v17 = vld [vmem:[#allocation30 + $0xd8] sm:$0xff] }
 0x4e1   : > { %3882 = vmatpush2.msra.mxu1 %v3544_v3  ;;  %3814 = vmatprep.subr.mxu0 %v3409_v13  ;;  %v3239_v36 = vld [vmem:[#allocation30 + $0x4f8] sm:$0xff]  ;;  %v3106_v40 = vld [vmem:[#allocation30 + $0xd0] sm:$0xff] }
 0x4e2   : > { %3883 = vmatprep.subr.mxu1 %v3541_v32  ;;  %3815 = vmatpush2.msra.mxu0 %v3408_v22  ;;  %v3238_v3 = vld [vmem:[#allocation30 + $0x4f0] sm:$0xff]  ;;  %v3103_v13 = vld [vmem:[#allocation30 + $0xb8] sm:$0xff] }
 0x4e3   : > { %3884 = vmatpush2.msra.mxu1 %v3540_v63  ;;  %3816 = vmatprep.subr.mxu0 %v3405_v39  ;;  %v3235_v32 = vld [vmem:[#allocation30 + $0x4d8] sm:$0xff]  ;;  %v3102_v22 = vld [vmem:[#allocation30 + $0xb0] sm:$0xff] }
 0x4e4   : > { %3885 = vmatprep.subr.mxu1 %v3537_v26  ;;  %3817 = vmatpush2.msra.mxu0 %v3404_v6  ;;  %v3234_v63 = vld [vmem:[#allocation30 + $0x4d0] sm:$0xff]  ;;  %v3099_v39 = vld [vmem:[#allocation30 + $0x98] sm:$0xff] }
 0x4e5   : > { %3886 = vmatpush2.msra.mxu1 %v3536_v49  ;;  %3818 = vmatprep.subr.mxu0 %v3401_v8  ;;  %v3231_v26 = vld [vmem:[#allocation30 + $0x4b8] sm:$0xff]  ;;  %v3098_v6 = vld [vmem:[#allocation30 + $0x90] sm:$0xff] }
 0x4e6   : > { %3887 = vmatprep.subr.mxu1 %v3533_v62  ;;  %3819 = vmatpush2.msra.mxu0 %v3400_v33  ;;  %v3230_v49 = vld [vmem:[#allocation30 + $0x4b0] sm:$0xff]  ;;  %v3095_v8 = vld [vmem:[#allocation30 + $0x78] sm:$0xff] }
 0x4e7   : > { %3888 = vmatpush2.msra.mxu1 %v3532_v61  ;;  %3821 = vmatmul.mubr.f32.vlgmr.msra.gmra.mxu0 %v7452_v53  ;;  %v3227_v62 = vld [vmem:[#allocation30 + $0x498] sm:$0xff]  ;;  %v3094_v33 = vld [vmem:[#allocation30 + $0x70] sm:$0xff] }
 0x4e8   : > { %3889 = vmatprep.subr.mxu1 %v3529_v37  ;;  %3898 = vmatprep.subr.mxu0 %v3143_v43  ;;  %v3226_v61 = vld [vmem:[#allocation30 + $0x490] sm:$0xff]  ;;  %v3091_v37 = vld [vmem:[#allocation30 + $0x58] sm:$0xff] }
 0x4e9   : > { %3890 = vmatpush2.msra.mxu1 %v3528_v20  ;;  %3899 = vmatpush1.msra.mxu0 %v3142_v27  ;;  %v3223_v43 = vld [vmem:[#allocation30 + $0x478] sm:$0xff]  ;;  %v3090_v20 = vld [vmem:[#allocation30 + $0x50] sm:$0xff] }
 0x4ea   : > { %3962 = vmatprep.mubr.f32.mxu0 %v3073_v2  ;;  %3892 = vmatmul.mubr.f32.vlgmr.msra.gmra.mxu1 %v7460_v4  ;;  %v3127_v2 = vld [vmem:[#allocation30 + $0x178] sm:$0xff]  ;;  %v3222_v27 = vld [vmem:[#allocation30 + $0x470] sm:$0xff] }
 0x4eb   : > { %3900 = vmatprep.subr.mxu0 %v3139_v11  ;;  %3969 = vmatprep.subr.mxu1 %v3271_v55  ;;  %v3087_v11 = vld [vmem:[#allocation30 + $0x38] sm:$0xff] }
 0x4ec   : > { %3901 = vmatpush1.msra.mxu0 %v3138_v54  ;;  %3970 = vmatpush1.msra.mxu1 %v3270_v47  ;;  %v3219_v55 = vld [vmem:[#allocation30 + $0x458] sm:$0xff]  ;;  %v3086_v54 = vld [vmem:[#allocation30 + $0x30] sm:$0xff] }
 0x4ed   : > { %4033 = vmatprep.mubr.f32.mxu1 %v3075_v5  ;;  %3902 = vmatprep.subr.mxu0 %v3135_v9  ;;  %v3254_v5 = vld [vmem:[#allocation30 + $0x570] sm:$0xff]  ;;  %v3083_v9 = vld [vmem:[#allocation30 + $0x18] sm:$0xff] }
 0x4ee   : > { %3971 = vmatprep.subr.mxu1 %v3267_v30  ;;  %3903 = vmatpush1.msra.mxu0 %v3134_v10  ;;  %v3218_v47 = vld [vmem:[#allocation30 + $0x450] sm:$0xff]  ;;  %v3215_v30 = vld [vmem:[#allocation30 + $0x438] sm:$0xff] }
 0x4ef   : > { %3972 = vmatpush1.msra.mxu1 %v3266_v12  ;;  %3904 = vmatprep.subr.mxu0 %v3131_v1  ;;  %v3082_v10 = vld [vmem:[#allocation30 + $0x10] sm:$0xff]  ;;  %v3207_v1 = vld [vmem:[#allocation30 + $0x3f8] sm:$0xff] }
 0x4f0   : > { %3973 = vmatprep.subr.mxu1 %v3263_v59  ;;  %3905 = vmatpush1.msra.mxu0 %v3130_v44  ;;  %v3214_v12 = vld [vmem:[#allocation30 + $0x430] sm:$0xff]  ;;  %v3211_v59 = vld [vmem:[#allocation30 + $0x418] sm:$0xff] }
 0x4f1   : > { %3974 = vmatpush1.msra.mxu1 %v3262_v60  ;;  %3906 = vmatprep.subr.mxu0 %v3127_v2  ;;  %v3206_v44 = vld [vmem:[#allocation30 + $0x3f0] sm:$0xff]  ;;  %v3203_v2 = vld [vmem:[#allocation30 + $0x3d8] sm:$0xff] }
 0x4f2   : > { %3975 = vmatprep.subr.mxu1 %v3259_v19  ;;  %3907 = vmatpush1.msra.mxu0 %v3126_v51  ;;  %v3210_v60 = vld [vmem:[#allocation30 + $0x410] sm:$0xff]  ;;  %v3335_v19 = vld [vmem:[#allocation30 + $0x7f8] sm:$0xff] }
 0x4f3   : > { %3976 = vmatpush1.msra.mxu1 %v3258_v29  ;;  %3908 = vmatprep.subr.mxu0 %v3123_v45  ;;  %v3202_v51 = vld [vmem:[#allocation30 + $0x3d0] sm:$0xff]  ;;  %v3199_v45 = vld [vmem:[#allocation30 + $0x3b8] sm:$0xff] }
 0x4f4   : > { %3977 = vmatprep.subr.mxu1 %v3255_v46  ;;  %3909 = vmatpush1.msra.mxu0 %v3122_v56  ;;  %v3334_v29 = vld [vmem:[#allocation30 + $0x7f0] sm:$0xff]  ;;  %v3331_v46 = vld [vmem:[#allocation30 + $0x7d8] sm:$0xff] }
 0x4f5   : > { %3978 = vmatpush1.msra.mxu1 %v3254_v5  ;;  %3910 = vmatprep.subr.mxu0 %v3119_v16  ;;  %v3198_v56 = vld [vmem:[#allocation30 + $0x3b0] sm:$0xff]  ;;  %v3195_v16 = vld [vmem:[#allocation30 + $0x398] sm:$0xff] }
 0x4f6   : > { %3979 = vmatprep.subr.mxu1 %v3251_v57  ;;  %3911 = vmatpush1.msra.mxu0 %v3118_v7  ;;  %v3330_v5 = vld [vmem:[#allocation30 + $0x7d0] sm:$0xff]  ;;  %v3327_v57 = vld [vmem:[#allocation30 + $0x7b8] sm:$0xff] }
 0x4f7   : > { %3980 = vmatpush1.msra.mxu1 %v3250_v14  ;;  %3912 = vmatprep.subr.mxu0 %v3115_v15  ;;  %v3194_v7 = vld [vmem:[#allocation30 + $0x390] sm:$0xff]  ;;  %v3191_v15 = vld [vmem:[#allocation30 + $0x378] sm:$0xff] }
 0x4f8   : > { %3981 = vmatprep.subr.mxu1 %v3247_v52  ;;  %3913 = vmatpush1.msra.mxu0 %v3114_v38  ;;  %v3326_v14 = vld [vmem:[#allocation30 + $0x7b0] sm:$0xff]  ;;  %v3323_v52 = vld [vmem:[#allocation30 + $0x798] sm:$0xff] }
 0x4f9   : > { %3982 = vmatpush1.msra.mxu1 %v3246_v24  ;;  %3914 = vmatprep.subr.mxu0 %v3111_v31  ;;  %v3190_v38 = vld [vmem:[#allocation30 + $0x370] sm:$0xff]  ;;  %v3187_v31 = vld [vmem:[#allocation30 + $0x358] sm:$0xff] }
 0x4fa   : > { %3983 = vmatprep.subr.mxu1 %v3243_v50  ;;  %3915 = vmatpush1.msra.mxu0 %v3110_v41  ;;  %v3322_v24 = vld [vmem:[#allocation30 + $0x790] sm:$0xff]  ;;  %v3319_v50 = vld [vmem:[#allocation30 + $0x778] sm:$0xff] }
 0x4fb   : > { %3984 = vmatpush1.msra.mxu1 %v3242_v18  ;;  %3916 = vmatprep.subr.mxu0 %v3107_v17  ;;  %v3186_v41 = vld [vmem:[#allocation30 + $0x350] sm:$0xff]  ;;  %v3183_v17 = vld [vmem:[#allocation30 + $0x338] sm:$0xff] }
 0x4fc   : > { %3985 = vmatprep.subr.mxu1 %v3239_v36  ;;  %3917 = vmatpush1.msra.mxu0 %v3106_v40  ;;  %v3318_v18 = vld [vmem:[#allocation30 + $0x770] sm:$0xff]  ;;  %v3315_v36 = vld [vmem:[#allocation30 + $0x758] sm:$0xff] }
 0x4fd   : > { %3986 = vmatpush1.msra.mxu1 %v3238_v3  ;;  %3918 = vmatprep.subr.mxu0 %v3103_v13  ;;  %v3182_v40 = vld [vmem:[#allocation30 + $0x330] sm:$0xff]  ;;  %v3179_v13 = vld [vmem:[#allocation30 + $0x318] sm:$0xff] }
 0x4fe   : > { %3987 = vmatprep.subr.mxu1 %v3235_v32  ;;  %3919 = vmatpush1.msra.mxu0 %v3102_v22  ;;  %v3314_v3 = vld [vmem:[#allocation30 + $0x750] sm:$0xff]  ;;  %v3311_v32 = vld [vmem:[#allocation30 + $0x738] sm:$0xff] }
 0x4ff   : > { %3988 = vmatpush1.msra.mxu1 %v3234_v63  ;;  %3920 = vmatprep.subr.mxu0 %v3099_v39  ;;  %v3178_v22 = vld [vmem:[#allocation30 + $0x310] sm:$0xff]  ;;  %v3175_v39 = vld [vmem:[#allocation30 + $0x2f8] sm:$0xff] }
 0x500   : > { %3989 = vmatprep.subr.mxu1 %v3231_v26  ;;  %3921 = vmatpush1.msra.mxu0 %v3098_v6  ;;  %v3310_v63 = vld [vmem:[#allocation30 + $0x730] sm:$0xff]  ;;  %v3307_v26 = vld [vmem:[#allocation30 + $0x718] sm:$0xff] }
 0x501   : > { %3990 = vmatpush1.msra.mxu1 %v3230_v49  ;;  %3922 = vmatprep.subr.mxu0 %v3095_v8  ;;  %v3174_v6 = vld [vmem:[#allocation30 + $0x2f0] sm:$0xff]  ;;  %v3171_v8 = vld [vmem:[#allocation30 + $0x2d8] sm:$0xff] }
 0x502   : > { %3991 = vmatprep.subr.mxu1 %v3227_v62  ;;  %3923 = vmatpush1.msra.mxu0 %v3094_v33  ;;  %v3306_v49 = vld [vmem:[#allocation30 + $0x710] sm:$0xff]  ;;  %v3303_v62 = vld [vmem:[#allocation30 + $0x6f8] sm:$0xff] }
 0x503   : > { %3992 = vmatpush1.msra.mxu1 %v3226_v61  ;;  %3924 = vmatprep.subr.mxu0 %v3091_v37  ;;  %v3170_v33 = vld [vmem:[#allocation30 + $0x2d0] sm:$0xff]  ;;  %v3167_v37 = vld [vmem:[#allocation30 + $0x2b8] sm:$0xff] }
 0x504   : > { %3993 = vmatprep.subr.mxu1 %v3223_v43  ;;  %3925 = vmatpush1.msra.mxu0 %v3090_v20  ;;  %v3302_v61 = vld [vmem:[#allocation30 + $0x6f0] sm:$0xff]  ;;  %v3299_v43 = vld [vmem:[#allocation30 + $0x6d8] sm:$0xff] }
 0x505   : > { %3994 = vmatpush1.msra.mxu1 %v3222_v27  ;;  %3926 = vmatprep.subr.mxu0 %v3087_v11  ;;  %v3166_v20 = vld [vmem:[#allocation30 + $0x2b0] sm:$0xff]  ;;  %v3163_v11 = vld [vmem:[#allocation30 + $0x298] sm:$0xff] }
 0x506   : > { %3995 = vmatprep.subr.mxu1 %v3219_v55  ;;  %3927 = vmatpush1.msra.mxu0 %v3086_v54  ;;  %v3298_v27 = vld [vmem:[#allocation30 + $0x6d0] sm:$0xff]  ;;  %v3295_v55 = vld [vmem:[#allocation30 + $0x6b8] sm:$0xff] }
 0x507   : > { %3996 = vmatpush1.msra.mxu1 %v3218_v47  ;;  %3928 = vmatprep.subr.mxu0 %v3083_v9  ;;  %v3162_v54 = vld [vmem:[#allocation30 + $0x290] sm:$0xff]  ;;  %v3159_v9 = vld [vmem:[#allocation30 + $0x278] sm:$0xff] }
 0x508   : > { %3997 = vmatprep.subr.mxu1 %v3215_v30  ;;  %3929 = vmatpush1.msra.mxu0 %v3082_v10  ;;  %v3294_v47 = vld [vmem:[#allocation30 + $0x6b0] sm:$0xff]  ;;  %v3291_v30 = vld [vmem:[#allocation30 + $0x698] sm:$0xff] }
 0x509   : > { %3998 = vmatpush1.msra.mxu1 %v3214_v12  ;;  %3930 = vmatprep.subr.mxu0 %v3207_v1  ;;  %v3158_v10 = vld [vmem:[#allocation30 + $0x270] sm:$0xff]  ;;  %v3155_v1 = vld [vmem:[#allocation30 + $0x258] sm:$0xff] }
 0x50a   : > { %3999 = vmatprep.subr.mxu1 %v3211_v59  ;;  %3931 = vmatpush2.msra.mxu0 %v3206_v44  ;;  %v3290_v12 = vld [vmem:[#allocation30 + $0x690] sm:$0xff]  ;;  %v3287_v59 = vld [vmem:[#allocation30 + $0x678] sm:$0xff] }
 0x50b   : > { %4000 = vmatpush1.msra.mxu1 %v3210_v60  ;;  %3932 = vmatprep.subr.mxu0 %v3203_v2  ;;  %v3154_v44 = vld [vmem:[#allocation30 + $0x250] sm:$0xff]  ;;  %v3151_v2 = vld [vmem:[#allocation30 + $0x238] sm:$0xff] }
 0x50c   : > { %4001 = vmatprep.subr.mxu1 %v3335_v19  ;;  %3933 = vmatpush2.msra.mxu0 %v3202_v51  ;;  %v3286_v60 = vld [vmem:[#allocation30 + $0x670] sm:$0xff]  ;;  %v3283_v19 = vld [vmem:[#allocation30 + $0x658] sm:$0xff] }
 0x50d   : > { %4002 = vmatpush2.msra.mxu1 %v3334_v29  ;;  %3934 = vmatprep.subr.mxu0 %v3199_v45  ;;  %v3150_v51 = vld [vmem:[#allocation30 + $0x230] sm:$0xff]  ;;  %v3147_v45 = vld [vmem:[#allocation30 + $0x218] sm:$0xff] }
 0x50e   : > { %4003 = vmatprep.subr.mxu1 %v3331_v46  ;;  %3935 = vmatpush2.msra.mxu0 %v3198_v56  ;;  %v3282_v29 = vld [vmem:[#allocation30 + $0x650] sm:$0xff]  ;;  %v3279_v46 = vld [vmem:[#allocation30 + $0x638] sm:$0xff] }
 0x50f   : > { %4004 = vmatpush2.msra.mxu1 %v3330_v5  ;;  %3936 = vmatprep.subr.mxu0 %v3195_v16  ;;  %v3146_v56 = vld [vmem:[#allocation30 + $0x210] sm:$0xff]  ;;  %v3275_v16 = vld [vmem:[#allocation30 + $0x618] sm:$0xff] }
 0x510   : > { %4005 = vmatprep.subr.mxu1 %v3327_v57  ;;  %3937 = vmatpush2.msra.mxu0 %v3194_v7  ;;  %v3278_v5 = vld [vmem:[#allocation30 + $0x630] sm:$0xff]  ;;  %v3399_v57 = vld [vmem:[#allocation30 + $0x9f8] sm:$0xff] }
 0x511   : > { %4006 = vmatpush2.msra.mxu1 %v3326_v14  ;;  %3938 = vmatprep.subr.mxu0 %v3191_v15  ;;  %v3274_v7 = vld [vmem:[#allocation30 + $0x610] sm:$0xff]  ;;  %v3395_v15 = vld [vmem:[#allocation30 + $0x9d8] sm:$0xff] }
 0x512   : > { %4007 = vmatprep.subr.mxu1 %v3323_v52  ;;  %3939 = vmatpush2.msra.mxu0 %v3190_v38  ;;  %v3398_v14 = vld [vmem:[#allocation30 + $0x9f0] sm:$0xff]  ;;  %v3527_v52 = vld [vmem:[#allocation30 + $0xdf8] sm:$0xff] }
 0x513   : > { %4008 = vmatpush2.msra.mxu1 %v3322_v24  ;;  %3940 = vmatprep.subr.mxu0 %v3187_v31  ;;  %v3394_v38 = vld [vmem:[#allocation30 + $0x9d0] sm:$0xff]  ;;  %v3391_v31 = vld [vmem:[#allocation30 + $0x9b8] sm:$0xff] }
 0x514   : > { %4009 = vmatprep.subr.mxu1 %v3319_v50  ;;  %3941 = vmatpush2.msra.mxu0 %v3186_v41  ;;  %v3526_v24 = vld [vmem:[#allocation30 + $0xdf0] sm:$0xff]  ;;  %v3523_v50 = vld [vmem:[#allocation30 + $0xdd8] sm:$0xff] }
 0x515   : > { %4010 = vmatpush2.msra.mxu1 %v3318_v18  ;;  %3942 = vmatprep.subr.mxu0 %v3183_v17  ;;  %v3390_v41 = vld [vmem:[#allocation30 + $0x9b0] sm:$0xff]  ;;  %v3387_v18 = vld [vmem:[#allocation30 + $0x998] sm:$0xff] }
 0x516   : > { %4011 = vmatprep.subr.mxu1 %v3315_v36  ;;  %3943 = vmatpush2.msra.mxu0 %v3182_v40  ;;  %v3519_v17 = vld [vmem:[#allocation30 + $0xdb8] sm:$0xff]  ;;  %v3386_v36 = vld [vmem:[#allocation30 + $0x990] sm:$0xff] }
 0x517   : > { %4012 = vmatpush2.msra.mxu1 %v3314_v3  ;;  %3944 = vmatprep.subr.mxu0 %v3179_v13  ;;  %v3382_v40 = vld [vmem:[#allocation30 + $0x970] sm:$0xff]  ;;  %v3379_v13 = vld [vmem:[#allocation30 + $0x958] sm:$0xff] }
 0x518   : > { %4013 = vmatprep.subr.mxu1 %v3311_v32  ;;  %3945 = vmatpush2.msra.mxu0 %v3178_v22  ;;  %v3514_v3 = vld [vmem:[#allocation30 + $0xd90] sm:$0xff]  ;;  %v3511_v32 = vld [vmem:[#allocation30 + $0xd78] sm:$0xff] }
 0x519   : > { %4014 = vmatpush2.msra.mxu1 %v3310_v63  ;;  %3946 = vmatprep.subr.mxu0 %v3175_v39  ;;  %v3375_v22 = vld [vmem:[#allocation30 + $0x938] sm:$0xff]  ;;  %v3374_v39 = vld [vmem:[#allocation30 + $0x930] sm:$0xff] }
 0x51a   : > { %4015 = vmatprep.subr.mxu1 %v3307_v26  ;;  %3947 = vmatpush2.msra.mxu0 %v3174_v6  ;;  %v3507_v63 = vld [vmem:[#allocation30 + $0xd58] sm:$0xff]  ;;  %v3506_v26 = vld [vmem:[#allocation30 + $0xd50] sm:$0xff] }
 0x51b   : > { %4016 = vmatpush2.msra.mxu1 %v3306_v49  ;;  %3948 = vmatprep.subr.mxu0 %v3171_v8  ;;  %v3371_v6 = vld [vmem:[#allocation30 + $0x918] sm:$0xff]  ;;  %v3370_v8 = vld [vmem:[#allocation30 + $0x910] sm:$0xff] }
 0x51c   : > { %4017 = vmatprep.subr.mxu1 %v3303_v62  ;;  %3949 = vmatpush2.msra.mxu0 %v3170_v33  ;;  %v3503_v49 = vld [vmem:[#allocation30 + $0xd38] sm:$0xff]  ;;  %v3502_v62 = vld [vmem:[#allocation30 + $0xd30] sm:$0xff] }
 0x51d   : > { %4018 = vmatpush2.msra.mxu1 %v3302_v61  ;;  %3950 = vmatprep.subr.mxu0 %v3167_v37  ;;  %v3367_v33 = vld [vmem:[#allocation30 + $0x8f8] sm:$0xff]  ;;  %v3366_v37 = vld [vmem:[#allocation30 + $0x8f0] sm:$0xff] }
 0x51e   : > { %4019 = vmatprep.subr.mxu1 %v3299_v43  ;;  %3951 = vmatpush2.msra.mxu0 %v3166_v20  ;;  %v3499_v61 = vld [vmem:[#allocation30 + $0xd18] sm:$0xff]  ;;  %v3498_v43 = vld [vmem:[#allocation30 + $0xd10] sm:$0xff] }
 0x51f   : > { %4020 = vmatpush2.msra.mxu1 %v3298_v27  ;;  %3952 = vmatprep.subr.mxu0 %v3163_v11  ;;  %v3363_v20 = vld [vmem:[#allocation30 + $0x8d8] sm:$0xff]  ;;  %v3362_v11 = vld [vmem:[#allocation30 + $0x8d0] sm:$0xff] }
 0x520   : > { %4021 = vmatprep.subr.mxu1 %v3295_v55  ;;  %3953 = vmatpush2.msra.mxu0 %v3162_v54  ;;  %v3495_v27 = vld [vmem:[#allocation30 + $0xcf8] sm:$0xff]  ;;  %v3494_v55 = vld [vmem:[#allocation30 + $0xcf0] sm:$0xff] }
 0x521   : > { %4022 = vmatpush2.msra.mxu1 %v3294_v47  ;;  %3954 = vmatprep.subr.mxu0 %v3159_v9  ;;  %v3359_v54 = vld [vmem:[#allocation30 + $0x8b8] sm:$0xff]  ;;  %v3358_v9 = vld [vmem:[#allocation30 + $0x8b0] sm:$0xff] }
 0x522   : > { %4023 = vmatprep.subr.mxu1 %v3291_v30  ;;  %3955 = vmatpush2.msra.mxu0 %v3158_v10  ;;  %v3491_v47 = vld [vmem:[#allocation30 + $0xcd8] sm:$0xff]  ;;  %v3490_v30 = vld [vmem:[#allocation30 + $0xcd0] sm:$0xff] }
 0x523   : > { %4024 = vmatpush2.msra.mxu1 %v3290_v12  ;;  %3956 = vmatprep.subr.mxu0 %v3155_v1  ;;  %v3355_v10 = vld [vmem:[#allocation30 + $0x898] sm:$0xff]  ;;  %v3354_v1 = vld [vmem:[#allocation30 + $0x890] sm:$0xff] }
 0x524   : > { %4025 = vmatprep.subr.mxu1 %v3287_v59  ;;  %3957 = vmatpush2.msra.mxu0 %v3154_v44  ;;  %v3487_v12 = vld [vmem:[#allocation30 + $0xcb8] sm:$0xff]  ;;  %v3486_v59 = vld [vmem:[#allocation30 + $0xcb0] sm:$0xff] }
 0x525   : > { %4026 = vmatpush2.msra.mxu1 %v3286_v60  ;;  %3958 = vmatprep.subr.mxu0 %v3151_v2  ;;  %v3351_v44 = vld [vmem:[#allocation30 + $0x878] sm:$0xff]  ;;  %v3350_v2 = vld [vmem:[#allocation30 + $0x870] sm:$0xff] }
 0x526   : > { %4027 = vmatprep.subr.mxu1 %v3283_v19  ;;  %3959 = vmatpush2.msra.mxu0 %v3150_v51  ;;  %v3483_v60 = vld [vmem:[#allocation30 + $0xc98] sm:$0xff]  ;;  %v3482_v19 = vld [vmem:[#allocation30 + $0xc90] sm:$0xff] }
 0x527   : > { %4028 = vmatpush2.msra.mxu1 %v3282_v29  ;;  %3960 = vmatprep.subr.mxu0 %v3147_v45  ;;  %v3347_v51 = vld [vmem:[#allocation30 + $0x858] sm:$0xff]  ;;  %v3346_v45 = vld [vmem:[#allocation30 + $0x850] sm:$0xff] }
 0x528   : > { %4029 = vmatprep.subr.mxu1 %v3279_v46  ;;  %3961 = vmatpush2.msra.mxu0 %v3146_v56  ;;  %v3479_v29 = vld [vmem:[#allocation30 + $0xc78] sm:$0xff]  ;;  %v3478_v46 = vld [vmem:[#allocation30 + $0xc70] sm:$0xff] }
 0x529   : > { %4030 = vmatpush2.msra.mxu1 %v3278_v5  ;;  %3963 = vmatmul.mubr.f32.vlgmr.msra.gmra.mxu0 %v7388_v58  ;;  %v3522_v58 = vld [vmem:[#allocation30 + $0xdd0] sm:$0xff]  ;;  %v3343_v56 = vld [vmem:[#allocation30 + $0x838] sm:$0xff] }
 0x52a   : > { %4031 = vmatprep.subr.mxu1 %v3275_v16  ;;  %4040 = vmatprep.subr.mxu0 %v3399_v57  ;;  %v3475_v5 = vld [vmem:[#allocation30 + $0xc58] sm:$0xff]  ;;  %v3342_v16 = vld [vmem:[#allocation30 + $0x830] sm:$0xff] }
 0x52b   : > { %4032 = vmatpush2.msra.mxu1 %v3274_v7  ;;  %4041 = vmatpush1.msra.mxu0 %v3398_v14  ;;  %v3474_v57 = vld [vmem:[#allocation30 + $0xc50] sm:$0xff]  ;;  %v3339_v7 = vld [vmem:[#allocation30 + $0x818] sm:$0xff] }
 0x52c   : > { %4104 = vmatprep.mubr.f32.mxu0 %v3077_v0  ;;  %4034 = vmatmul.mubr.f32.vlgmr.msra.gmra.mxu1 %v7422_v25  ;;  %v3383_v0 = vld [vmem:[#allocation30 + $0x978] sm:$0xff] }
 0x52d   : > { %4042 = vmatprep.subr.mxu0 %v3395_v15  ;;  %4111 = vmatprep.subr.mxu1 %v3527_v52  ;;  %v3515_v25 = vld [vmem:[#allocation30 + $0xd98] sm:$0xff]  ;;  %v3338_v15 = vld [vmem:[#allocation30 + $0x810] sm:$0xff] }
 0x52e   : > { %4043 = vmatpush1.msra.mxu0 %v3394_v38  ;;  %4112 = vmatpush1.msra.mxu1 %v3526_v24  ;;  %v3471_v14 = vld [vmem:[#allocation30 + $0xc38] sm:$0xff]  ;;  %v3470_v52 = vld [vmem:[#allocation30 + $0xc30] sm:$0xff] }
 0x52f   : > { %4175 = vmatprep.mubr.f32.mxu1 %v3079_v42  ;;  %4044 = vmatprep.subr.mxu0 %v3391_v31  ;;  %v3510_v42 = vld [vmem:[#allocation30 + $0xd70] sm:$0xff]  ;;  %v3463_v38 = vld [vmem:[#allocation30 + $0xbf8] sm:$0xff] }
 0x530   : > { %4113 = vmatprep.subr.mxu1 %v3523_v50  ;;  %4045 = vmatpush1.msra.mxu0 %v3390_v41  ;;  %v3467_v24 = vld [vmem:[#allocation30 + $0xc18] sm:$0xff]  ;;  %v3462_v31 = vld [vmem:[#allocation30 + $0xbf0] sm:$0xff] }
 0x531   : > { %4114 = vmatpush1.msra.mxu1 %v3522_v58  ;;  %4046 = vmatprep.subr.mxu0 %v3387_v18  ;;  %v3466_v50 = vld [vmem:[#allocation30 + $0xc10] sm:$0xff]  ;;  %v3459_v41 = vld [vmem:[#allocation30 + $0xbd8] sm:$0xff] }
 0x532   : > { %4115 = vmatprep.subr.mxu1 %v3519_v17  ;;  %4047 = vmatpush1.msra.mxu0 %v3386_v36  ;;  %v3591_v58 = vld [vmem:[#allocation30 + $0xff8] sm:$0xff]  ;;  %v3458_v18 = vld [vmem:[#allocation30 + $0xbd0] sm:$0xff] }
 0x533   : > { %4116 = vmatpush1.msra.mxu1 %v3518_v48  ;;  %4048 = vmatprep.subr.mxu0 %v3383_v0  ;;  %v3590_v17 = vld [vmem:[#allocation30 + $0xff0] sm:$0xff]  ;;  %v3455_v36 = vld [vmem:[#allocation30 + $0xbb8] sm:$0xff] }
 0x534   : > { %4117 = vmatprep.subr.mxu1 %v3515_v25  ;;  %4049 = vmatpush1.msra.mxu0 %v3382_v40  ;;  %v3587_v48 = vld [vmem:[#allocation30 + $0xfd8] sm:$0xff]  ;;  %v3454_v0 = vld [vmem:[#allocation30 + $0xbb0] sm:$0xff] }
 0x535   : > { %4118 = vmatpush1.msra.mxu1 %v3514_v3  ;;  %4050 = vmatprep.subr.mxu0 %v3379_v13  ;;  %v3586_v25 = vld [vmem:[#allocation30 + $0xfd0] sm:$0xff]  ;;  %v3451_v40 = vld [vmem:[#allocation30 + $0xb98] sm:$0xff] }
 0x536   : > { %4119 = vmatprep.subr.mxu1 %v3511_v32  ;;  %4051 = vmatpush1.msra.mxu0 %v3378_v35  ;;  %v3583_v3 = vld [vmem:[#allocation30 + $0xfb8] sm:$0xff]  ;;  %v3450_v13 = vld [vmem:[#allocation30 + $0xb90] sm:$0xff] }
 0x537   : > { %4120 = vmatpush1.msra.mxu1 %v3510_v42  ;;  %4052 = vmatprep.subr.mxu0 %v3375_v22  ;;  %v3582_v32 = vld [vmem:[#allocation30 + $0xfb0] sm:$0xff]  ;;  %v3447_v35 = vld [vmem:[#allocation30 + $0xb78] sm:$0xff] }
 0x538   : > { %4121 = vmatprep.subr.mxu1 %v3507_v63  ;;  %4053 = vmatpush1.msra.mxu0 %v3374_v39  ;;  %v3579_v42 = vld [vmem:[#allocation30 + $0xf98] sm:$0xff]  ;;  %v3446_v22 = vld [vmem:[#allocation30 + $0xb70] sm:$0xff] }
 0x539   : > { %4122 = vmatpush1.msra.mxu1 %v3506_v26  ;;  %4054 = vmatprep.subr.mxu0 %v3371_v6  ;;  %v3578_v63 = vld [vmem:[#allocation30 + $0xf90] sm:$0xff]  ;;  %v3443_v39 = vld [vmem:[#allocation30 + $0xb58] sm:$0xff] }
 0x53a   : > { %4123 = vmatprep.subr.mxu1 %v3503_v49  ;;  %4055 = vmatpush1.msra.mxu0 %v3370_v8  ;;  %v3575_v26 = vld [vmem:[#allocation30 + $0xf78] sm:$0xff]  ;;  %v3442_v6 = vld [vmem:[#allocation30 + $0xb50] sm:$0xff] }
 0x53b   : > { %4124 = vmatpush1.msra.mxu1 %v3502_v62  ;;  %4056 = vmatprep.subr.mxu0 %v3367_v33  ;;  %v3574_v49 = vld [vmem:[#allocation30 + $0xf70] sm:$0xff]  ;;  %v3439_v8 = vld [vmem:[#allocation30 + $0xb38] sm:$0xff] }
 0x53c   : > { %4125 = vmatprep.subr.mxu1 %v3499_v61  ;;  %4057 = vmatpush1.msra.mxu0 %v3366_v37  ;;  %v3571_v62 = vld [vmem:[#allocation30 + $0xf58] sm:$0xff]  ;;  %v3438_v33 = vld [vmem:[#allocation30 + $0xb30] sm:$0xff] }
 0x53d   : > { %4126 = vmatpush1.msra.mxu1 %v3498_v43  ;;  %4058 = vmatprep.subr.mxu0 %v3363_v20  ;;  %v3570_v61 = vld [vmem:[#allocation30 + $0xf50] sm:$0xff]  ;;  %v3435_v37 = vld [vmem:[#allocation30 + $0xb18] sm:$0xff] }
 0x53e   : > { %4127 = vmatprep.subr.mxu1 %v3495_v27  ;;  %4059 = vmatpush1.msra.mxu0 %v3362_v11  ;;  %v3567_v43 = vld [vmem:[#allocation30 + $0xf38] sm:$0xff]  ;;  %v3434_v20 = vld [vmem:[#allocation30 + $0xb10] sm:$0xff] }
 0x53f   : > { %4128 = vmatpush1.msra.mxu1 %v3494_v55  ;;  %4060 = vmatprep.subr.mxu0 %v3359_v54  ;;  %v3566_v27 = vld [vmem:[#allocation30 + $0xf30] sm:$0xff]  ;;  %v3431_v11 = vld [vmem:[#allocation30 + $0xaf8] sm:$0xff] }
 0x540   : > { %4129 = vmatprep.subr.mxu1 %v3491_v47  ;;  %4061 = vmatpush1.msra.mxu0 %v3358_v9  ;;  %v3563_v55 = vld [vmem:[#allocation30 + $0xf18] sm:$0xff]  ;;  %v3430_v54 = vld [vmem:[#allocation30 + $0xaf0] sm:$0xff] }
 0x541   : > { %4130 = vmatpush1.msra.mxu1 %v3490_v30  ;;  %4062 = vmatprep.subr.mxu0 %v3355_v10  ;;  %v3562_v47 = vld [vmem:[#allocation30 + $0xf10] sm:$0xff]  ;;  %v3427_v9 = vld [vmem:[#allocation30 + $0xad8] sm:$0xff] }
 0x542   : > { %4131 = vmatprep.subr.mxu1 %v3487_v12  ;;  %4063 = vmatpush1.msra.mxu0 %v3354_v1  ;;  %v3559_v30 = vld [vmem:[#allocation30 + $0xef8] sm:$0xff]  ;;  %v3426_v10 = vld [vmem:[#allocation30 + $0xad0] sm:$0xff] }
 0x543   : > { %4132 = vmatpush1.msra.mxu1 %v3486_v59  ;;  %4064 = vmatprep.subr.mxu0 %v3351_v44  ;;  %v3558_v12 = vld [vmem:[#allocation30 + $0xef0] sm:$0xff]  ;;  %v3423_v1 = vld [vmem:[#allocation30 + $0xab8] sm:$0xff] }
 0x544   : > { %4133 = vmatprep.subr.mxu1 %v3483_v60  ;;  %4065 = vmatpush1.msra.mxu0 %v3350_v2  ;;  %v3555_v59 = vld [vmem:[#allocation30 + $0xed8] sm:$0xff]  ;;  %v3422_v44 = vld [vmem:[#allocation30 + $0xab0] sm:$0xff] }
 0x545   : > { %4134 = vmatpush1.msra.mxu1 %v3482_v19  ;;  %4066 = vmatprep.subr.mxu0 %v3347_v51  ;;  %v3554_v60 = vld [vmem:[#allocation30 + $0xed0] sm:$0xff]  ;;  %v3419_v2 = vld [vmem:[#allocation30 + $0xa98] sm:$0xff] }
 0x546   : > { %4135 = vmatprep.subr.mxu1 %v3479_v29  ;;  %4067 = vmatpush1.msra.mxu0 %v3346_v45  ;;  %v3551_v19 = vld [vmem:[#allocation30 + $0xeb8] sm:$0xff]  ;;  %v3418_v51 = vld [vmem:[#allocation30 + $0xa90] sm:$0xff] }
 0x547   : > { %4136 = vmatpush1.msra.mxu1 %v3478_v46  ;;  %4068 = vmatprep.subr.mxu0 %v3343_v56  ;;  %v3550_v29 = vld [vmem:[#allocation30 + $0xeb0] sm:$0xff]  ;;  %v3415_v45 = vld [vmem:[#allocation30 + $0xa78] sm:$0xff] }
 0x548   : > { %4137 = vmatprep.subr.mxu1 %v3475_v5  ;;  %4069 = vmatpush1.msra.mxu0 %v3342_v16  ;;  %v3547_v46 = vld [vmem:[#allocation30 + $0xe98] sm:$0xff]  ;;  %v3414_v56 = vld [vmem:[#allocation30 + $0xa70] sm:$0xff] }
 0x549   : > { %4138 = vmatpush1.msra.mxu1 %v3474_v57  ;;  %4070 = vmatprep.subr.mxu0 %v3339_v7  ;;  %v3546_v5 = vld [vmem:[#allocation30 + $0xe90] sm:$0xff]  ;;  %v3411_v16 = vld [vmem:[#allocation30 + $0xa58] sm:$0xff] }
 0x54a   : > { %4139 = vmatprep.subr.mxu1 %v3471_v14  ;;  %4071 = vmatpush1.msra.mxu0 %v3338_v15  ;;  %v3543_v57 = vld [vmem:[#allocation30 + $0xe78] sm:$0xff]  ;;  %v3410_v7 = vld [vmem:[#allocation30 + $0xa50] sm:$0xff] }
 0x54b   : > { %4140 = vmatpush1.msra.mxu1 %v3470_v52  ;;  %4072 = vmatprep.subr.mxu0 %v3463_v38  ;;  %v3542_v14 = vld [vmem:[#allocation30 + $0xe70] sm:$0xff]  ;;  %v3407_v15 = vld [vmem:[#allocation30 + $0xa38] sm:$0xff] }
 0x54c   : > { %4141 = vmatprep.subr.mxu1 %v3467_v24  ;;  %4073 = vmatpush2.msra.mxu0 %v3462_v31  ;;  %v3539_v52 = vld [vmem:[#allocation30 + $0xe58] sm:$0xff]  ;;  %v3406_v38 = vld [vmem:[#allocation30 + $0xa30] sm:$0xff] }
 0x54d   : > { %4142 = vmatpush1.msra.mxu1 %v3466_v50  ;;  %4074 = vmatprep.subr.mxu0 %v3459_v41  ;;  %v3538_v24 = vld [vmem:[#allocation30 + $0xe50] sm:$0xff]  ;;  %v3403_v31 = vld [vmem:[#allocation30 + $0xa18] sm:$0xff] }
 0x54e   : > { %4143 = vmatprep.subr.mxu1 %v3591_v58  ;;  %4075 = vmatpush2.msra.mxu0 %v3458_v18  ;;  %v3535_v50 = vld [vmem:[#allocation30 + $0xe38] sm:$0xff]  ;;  %v3402_v41 = vld [vmem:[#allocation30 + $0xa10] sm:$0xff] }
 0x54f   : > { %4144 = vmatpush2.msra.mxu1 %v3590_v17  ;;  %4076 = vmatprep.subr.mxu0 %v3455_v36  ;;  %v3534_v58 = vld [vmem:[#allocation30 + $0xe30] sm:$0xff]  ;;  %v3531_v18 = vld [vmem:[#allocation30 + $0xe18] sm:$0xff]  ;;  %v4355_v17 = vld [vmem:[#allocation36 + $0xf8] sm:$0xff] }
 0x550   : > { %4145 = vmatprep.subr.mxu1 %v3587_v48  ;;  %4077 = vmatpush2.msra.mxu0 %v3454_v0  ;;  %v3530_v36 = vld [vmem:[#allocation30 + $0xe10] sm:$0xff]  ;;  %v4354_v48 = vld [vmem:[#allocation36 + $0xf0] sm:$0xff] }
 0x551   : > { %4146 = vmatpush2.msra.mxu1 %v3586_v25  ;;  %4078 = vmatprep.subr.mxu0 %v3451_v40  ;;  %v4353_v0 = vld [vmem:[#allocation36 + $0xe8] sm:$0xff]  ;;  %v4352_v25 = vld [vmem:[#allocation36 + $0xe0] sm:$0xff]  ;;  %v4351_v40 = vld [vmem:[#allocation36 + $0xd8] sm:$0xff] }
 0x552   : > { %4147 = vmatprep.subr.mxu1 %v3583_v3  ;;  %4079 = vmatpush2.msra.mxu0 %v3450_v13  ;;  %v4350_v3 = vld [vmem:[#allocation36 + $0xd0] sm:$0xff]  ;;  %v4349_v13 = vld [vmem:[#allocation36 + $0xc8] sm:$0xff] }
 0x553   : > { %4148 = vmatpush2.msra.mxu1 %v3582_v32  ;;  %4080 = vmatprep.subr.mxu0 %v3447_v35  ;;  %v4348_v32 = vld [vmem:[#allocation36 + $0xc0] sm:$0xff]  ;;  %v4347_v35 = vld [vmem:[#allocation36 + $0xb8] sm:$0xff] }
 0x554   : > { %4149 = vmatprep.subr.mxu1 %v3579_v42  ;;  %4081 = vmatpush2.msra.mxu0 %v3446_v22  ;;  %v4346_v42 = vld [vmem:[#allocation36 + $0xb0] sm:$0xff]  ;;  %v4344_v22 = vld [vmem:[#allocation36 + $0xa0] sm:$0xff] }
 0x555   : > { %4150 = vmatpush2.msra.mxu1 %v3578_v63  ;;  %4082 = vmatprep.subr.mxu0 %v3443_v39  ;;  %v4343_v63 = vld [vmem:[#allocation36 + $0x98] sm:$0xff]  ;;  %v4342_v39 = vld [vmem:[#allocation36 + $0x90] sm:$0xff] }
 0x556   : > { %4151 = vmatprep.subr.mxu1 %v3575_v26  ;;  %4083 = vmatpush2.msra.mxu0 %v3442_v6  ;;  %v4340_v26 = vld [vmem:[#allocation36 + $0x80] sm:$0xff]  ;;  %v4339_v6 = vld [vmem:[#allocation36 + $0x78] sm:$0xff] }
 0x557   : > { %4152 = vmatpush2.msra.mxu1 %v3574_v49  ;;  %4084 = vmatprep.subr.mxu0 %v3439_v8  ;;  %v4338_v49 = vld [vmem:[#allocation36 + $0x70] sm:$0xff]  ;;  %v4337_v8 = vld [vmem:[#allocation36 + $0x68] sm:$0xff] }
 0x558   : > { %4153 = vmatprep.subr.mxu1 %v3571_v62  ;;  %4085 = vmatpush2.msra.mxu0 %v3438_v33  ;;  %v4336_v62 = vld [vmem:[#allocation36 + $0x60] sm:$0xff]  ;;  %v4335_v33 = vld [vmem:[#allocation36 + $0x58] sm:$0xff] }
 0x559   : > { %4154 = vmatpush2.msra.mxu1 %v3570_v61  ;;  %4086 = vmatprep.subr.mxu0 %v3435_v37  ;;  %v4334_v61 = vld [vmem:[#allocation36 + $0x50] sm:$0xff]  ;;  %v4333_v37 = vld [vmem:[#allocation36 + $0x48] sm:$0xff] }
 0x55a   : > { %4155 = vmatprep.subr.mxu1 %v3567_v43  ;;  %4087 = vmatpush2.msra.mxu0 %v3434_v20  ;;  %v4332_v43 = vld [vmem:[#allocation36 + $0x40] sm:$0xff]  ;;  %v4331_v20 = vld [vmem:[#allocation36 + $0x38] sm:$0xff] }
 0x55b   : > { %4156 = vmatpush2.msra.mxu1 %v3566_v27  ;;  %4088 = vmatprep.subr.mxu0 %v3431_v11  ;;  %v4330_v27 = vld [vmem:[#allocation36 + $0x30] sm:$0xff]  ;;  %v4329_v11 = vld [vmem:[#allocation36 + $0x28] sm:$0xff] }
 0x55c   : > { %4157 = vmatprep.subr.mxu1 %v3563_v55  ;;  %4089 = vmatpush2.msra.mxu0 %v3430_v54  ;;  %v4328_v55 = vld [vmem:[#allocation36 + $0x20] sm:$0xff]  ;;  %v4327_v54 = vld [vmem:[#allocation36 + $0x18] sm:$0xff] }
 0x55d   : > { %4158 = vmatpush2.msra.mxu1 %v3562_v47  ;;  %4090 = vmatprep.subr.mxu0 %v3427_v9  ;;  %v4326_v47 = vld [vmem:[#allocation36 + $0x10] sm:$0xff]  ;;  %v4325_v9 = vld [vmem:[#allocation36 + $0x8] sm:$0xff] }
 0x55e   : > { %4159 = vmatprep.subr.mxu1 %v3559_v30  ;;  %4091 = vmatpush2.msra.mxu0 %v3426_v10  ;;  %v4324_v30 = vld [vmem:[#allocation36] sm:$0xff]  ;;  %v4387_v10 = vld [vmem:[#allocation36 + $0x1f8] sm:$0xff] }
 0x55f   : > { %4160 = vmatpush2.msra.mxu1 %v3558_v12  ;;  %4092 = vmatprep.subr.mxu0 %v3423_v1  ;;  %v4386_v12 = vld [vmem:[#allocation36 + $0x1f0] sm:$0xff]  ;;  %v4385_v1 = vld [vmem:[#allocation36 + $0x1e8] sm:$0xff] }
 0x560   : > { %4161 = vmatprep.subr.mxu1 %v3555_v59  ;;  %4093 = vmatpush2.msra.mxu0 %v3422_v44  ;;  %v4384_v59 = vld [vmem:[#allocation36 + $0x1e0] sm:$0xff]  ;;  %v4383_v44 = vld [vmem:[#allocation36 + $0x1d8] sm:$0xff] }
 0x561   : > { %4162 = vmatpush2.msra.mxu1 %v3554_v60  ;;  %4094 = vmatprep.subr.mxu0 %v3419_v2  ;;  %v4382_v60 = vld [vmem:[#allocation36 + $0x1d0] sm:$0xff]  ;;  %v4381_v2 = vld [vmem:[#allocation36 + $0x1c8] sm:$0xff] }
 0x562   : > { %4163 = vmatprep.subr.mxu1 %v3551_v19  ;;  %4095 = vmatpush2.msra.mxu0 %v3418_v51  ;;  %v4380_v19 = vld [vmem:[#allocation36 + $0x1c0] sm:$0xff]  ;;  %v4379_v51 = vld [vmem:[#allocation36 + $0x1b8] sm:$0xff] }
 0x563   : > { %4164 = vmatpush2.msra.mxu1 %v3550_v29  ;;  %4096 = vmatprep.subr.mxu0 %v3415_v45  ;;  %v4378_v29 = vld [vmem:[#allocation36 + $0x1b0] sm:$0xff]  ;;  %v4377_v45 = vld [vmem:[#allocation36 + $0x1a8] sm:$0xff] }
 0x564   : > { %4165 = vmatprep.subr.mxu1 %v3547_v46  ;;  %4097 = vmatpush2.msra.mxu0 %v3414_v56  ;;  %v4376_v46 = vld [vmem:[#allocation36 + $0x1a0] sm:$0xff]  ;;  %v4375_v56 = vld [vmem:[#allocation36 + $0x198] sm:$0xff] }
 0x565   : > { %4166 = vmatpush2.msra.mxu1 %v3546_v5  ;;  %4098 = vmatprep.subr.mxu0 %v3411_v16  ;;  %v4374_v5 = vld [vmem:[#allocation36 + $0x190] sm:$0xff]  ;;  %v4373_v16 = vld [vmem:[#allocation36 + $0x188] sm:$0xff] }
 0x566   : > { %4167 = vmatprep.subr.mxu1 %v3543_v57  ;;  %4099 = vmatpush2.msra.mxu0 %v3410_v7  ;;  %v4372_v57 = vld [vmem:[#allocation36 + $0x180] sm:$0xff]  ;;  %v4371_v7 = vld [vmem:[#allocation36 + $0x178] sm:$0xff] }
 0x567   : > { %4168 = vmatpush2.msra.mxu1 %v3542_v14  ;;  %4100 = vmatprep.subr.mxu0 %v3407_v15  ;;  %v4370_v14 = vld [vmem:[#allocation36 + $0x170] sm:$0xff] }
 0x568   : > { %4169 = vmatprep.subr.mxu1 %v3539_v52  ;;  %4101 = vmatpush2.msra.mxu0 %v3406_v38  ;;  %v7475_v15 = vld [vmem:[#allocation31] sm:$0xf]  ;;  %v4369_v52 = vld [vmem:[#allocation36 + $0x168] sm:$0xff]  ;;  %v4368_v38 = vld [vmem:[#allocation36 + $0x160] sm:$0xff] }
 0x569   : > { %4170 = vmatpush2.msra.mxu1 %v3538_v24  ;;  %4102 = vmatprep.subr.mxu0 %v3403_v31  ;;  %v3680_v24 = vpop.f32.mrf.mxu0  ;;  %v4367_v31 = vld [vmem:[#allocation36 + $0x158] sm:$0xff] }
 0x56a   : > { %4171 = vmatprep.subr.mxu1 %v3535_v50  ;;  %4103 = vmatpush2.msra.mxu0 %v3402_v41  ;;  %v3597_v50 = vrot.slane %v7475_v15, %v7752_v28  ;;  %v4366_v41 = vld [vmem:[#allocation36 + $0x150] sm:$0xff] }
 0x56b   : > { %4172 = vmatpush2.msra.mxu1 %v3534_v58  ;;  %4105 = vmatmul.mubr.f32.vlgmr.msra.gmra.mxu0 %v7452_v53  ;;  %v4345_v53 = vld [vmem:[#allocation36 + $0xa8] sm:$0xff] }
 0x56c   : > { %4173 = vmatprep.subr.mxu1 %v3531_v18  ;;  %4464 = vmatprep.subr.mxu0 %v4355_v17  ;;  %v4365_v58 = vld [vmem:[#allocation36 + $0x148] sm:$0xff]  ;;  %v3601_v18 = vrot.slane %v7475_v15, %v7753_v34  ;;  %v4364_v17 = vld [vmem:[#allocation36 + $0x140] sm:$0xff] }
 0x56d   : > { %4174 = vmatpush2.msra.mxu1 %v3530_v36  ;;  %4465 = vmatpush1.msra.mxu0 %v4354_v48  ;;  %v3682_v36 = vpop.f32.mrf.mxu0  ;;  %v3751_v48 = vpop.f32.mrf.mxu1 }
 0x56e   : > { %4176 = vmatmul.mubr.f32.vlgmr.msra.gmra.mxu1 %v7460_v4  ;;  %4466 = vmatprep.subr.mxu0 %v4353_v0  ;;  %v4341_v4 = vld [vmem:[#allocation36 + $0x88] sm:$0xff]  ;;  %v4363_v0 = vld [vmem:[#allocation36 + $0x138] sm:$0xff] }
 0x56f   : > { %4467 = vmatpush1.msra.mxu0 %v4352_v25  ;;  %v3681_v25 = vadd.f32 %v3680_v24, %v3597_v50  ;;  %v4415_v24 = vld [vmem:[#allocation36 + $0x2d8] sm:$0xff] }
 0x570   : > { %4468 = vmatprep.subr.mxu0 %v4351_v40  ;;  %v4362_v40 = vld [vmem:[#allocation36 + $0x130] sm:$0xff] }
 0x571   : > { %4469 = vmatpush1.msra.mxu0 %v4350_v3  ;;  %v4361_v3 = vld [vmem:[#allocation36 + $0x128] sm:$0xff] }
 0x572   : > { %4470 = vmatprep.subr.mxu0 %v4349_v13  ;;  %v3683_v13 = vadd.f32 %v3682_v36, %v3601_v18  ;;  %v4412_v18 = vld [vmem:[#allocation36 + $0x2c0] sm:$0xff] }
 0x573   : > { %4471 = vmatpush1.msra.mxu0 %v4348_v32  ;;  %v4360_v32 = vld [vmem:[#allocation36 + $0x120] sm:$0xff] }
 0x574   : > { %4472 = vmatprep.subr.mxu0 %v4347_v35  ;;  %v3753_v35 = vpop.f32.mrf.mxu1 }
 0x575   : > { %4473 = vmatpush1.msra.mxu0 %v4346_v42  ;;  %v4359_v42 = vld [vmem:[#allocation36 + $0x118] sm:$0xff] }
 0x576   : > { %4474 = vmatprep.subr.mxu0 %v4345_v53  ;;  %v3752_v53 = vadd.f32 %v3751_v48, %v3681_v25  ;;  %v4411_v48 = vld [vmem:[#allocation36 + $0x2b8] sm:$0xff] }
 0x577   : > { %4475 = vmatpush1.msra.mxu0 %v4344_v22  ;;  %v4358_v22 = vld [vmem:[#allocation36 + $0x110] sm:$0xff] }
 0x578   : > { %4476 = vmatprep.subr.mxu0 %v4343_v63 }
 0x579   : > { %4477 = vmatpush1.msra.mxu0 %v4342_v39  ;;  %v4357_v39 = vld [vmem:[#allocation36 + $0x108] sm:$0xff] }
 0x57a   : > { %4478 = vmatprep.subr.mxu0 %v4341_v4  ;;  %v3754_v4 = vadd.f32 %v3753_v35, %v3683_v13  ;;  %v4408_v13 = vld [vmem:[#allocation36 + $0x2a0] sm:$0xff] }
 0x57b   : > { %4479 = vmatpush1.msra.mxu0 %v4340_v26 }
 0x57c   : > { %4480 = vmatprep.subr.mxu0 %v4339_v6  ;;  %v4356_v6 = vld [vmem:[#allocation36 + $0x100] sm:$0xff] }
 0x57d   : > { %4481 = vmatpush1.msra.mxu0 %v4338_v49 }
 0x57e   : > { %4482 = vmatprep.subr.mxu0 %v4337_v8 }
 0x57f   : > { %4483 = vmatpush1.msra.mxu0 %v4336_v62 }
 0x580   : > { %4484 = vmatprep.subr.mxu0 %v4335_v33 }
 0x581   : > { %4485 = vmatpush1.msra.mxu0 %v4334_v61 }
 0x582   : > { %4486 = vmatprep.subr.mxu0 %v4333_v37 }
 0x583   : > { %4487 = vmatpush1.msra.mxu0 %v4332_v43 }
 0x584   : > { %4488 = vmatprep.subr.mxu0 %v4331_v20 }
 0x585   : > { %4489 = vmatpush1.msra.mxu0 %v4330_v27 }
 0x586   : > { %4490 = vmatprep.subr.mxu0 %v4329_v11 }
 0x587   : > { %4491 = vmatpush1.msra.mxu0 %v4328_v55 }
 0x588   : > { %4492 = vmatprep.subr.mxu0 %v4327_v54 }
 0x589   : > { %4493 = vmatpush1.msra.mxu0 %v4326_v47 }
 0x58a   : > { %4494 = vmatprep.subr.mxu0 %v4325_v9 }
 0x58b   : > { %4495 = vmatpush1.msra.mxu0 %v4324_v30 }
 0x58c   : > { %4496 = vmatprep.subr.mxu0 %v4387_v10 }
 0x58d   : > { %4497 = vmatpush2.msra.mxu0 %v4386_v12 }
 0x58e   : > { %4498 = vmatprep.subr.mxu0 %v4385_v1 }
 0x58f   : > { %4499 = vmatpush2.msra.mxu0 %v4384_v59 }
 0x590   : > { %4500 = vmatprep.subr.mxu0 %v4383_v44 }
 0x591   : > { %4501 = vmatpush2.msra.mxu0 %v4382_v60 }
 0x592   : > { %4502 = vmatprep.subr.mxu0 %v4381_v2 }
 0x593   : > { %4503 = vmatpush2.msra.mxu0 %v4380_v19 }
 0x594   : > { %4504 = vmatprep.subr.mxu0 %v4379_v51 }
 0x595   : > { %4505 = vmatpush2.msra.mxu0 %v4378_v29 }
 0x596   : > { %4506 = vmatprep.subr.mxu0 %v4377_v45  ;;  %v4419_v45 = vld [vmem:[#allocation36 + $0x2f8] sm:$0xff] }
 0x597   : > { %4507 = vmatpush2.msra.mxu0 %v4376_v46  ;;  %4535 = vmatprep.subr.mxu1 %v4419_v45  ;;  %v4451_v45 = vld [vmem:[#allocation36 + $0x3f8] sm:$0xff] }
 0x598   : > { %4508 = vmatprep.subr.mxu0 %v4375_v56 }
 0x599   : > { %4509 = vmatpush2.msra.mxu0 %v4374_v5  ;;  %v4418_v5 = vld [vmem:[#allocation36 + $0x2f0] sm:$0xff] }
 0x59a   : > { %4510 = vmatprep.subr.mxu0 %v4373_v16  ;;  %4536 = vmatpush1.msra.mxu1 %v4418_v5  ;;  %v4450_v5 = vld [vmem:[#allocation36 + $0x3f0] sm:$0xff] }
 0x59b   : > { %4511 = vmatpush2.msra.mxu0 %v4372_v57  ;;  %v4417_v57 = vld [vmem:[#allocation36 + $0x2e8] sm:$0xff] }
 0x59c   : > { %4512 = vmatprep.subr.mxu0 %v4371_v7  ;;  %4537 = vmatprep.subr.mxu1 %v4417_v57 }
 0x59d   : > { %4513 = vmatpush2.msra.mxu0 %v4370_v14  ;;  %v4416_v14 = vld [vmem:[#allocation36 + $0x2e0] sm:$0xff] }
 0x59e   : > { %4514 = vmatprep.subr.mxu0 %v4369_v52  ;;  %4538 = vmatpush1.msra.mxu1 %v4416_v14  ;;  %v4449_v14 = vld [vmem:[#allocation36 + $0x3e8] sm:$0xff] }
 0x59f   : > { %4515 = vmatpush2.msra.mxu0 %v4368_v38  ;;  %4539 = vmatprep.subr.mxu1 %v4415_v24 }
 0x5a0   : > { %4516 = vmatprep.subr.mxu0 %v4367_v31  ;;  %v4414_v31 = vld [vmem:[#allocation36 + $0x2d0] sm:$0xff] }
 0x5a1   : > { %4517 = vmatpush2.msra.mxu0 %v4366_v41  ;;  %4540 = vmatpush1.msra.mxu1 %v4414_v31  ;;  %v4446_v31 = vld [vmem:[#allocation36 + $0x3d0] sm:$0xff] }
 0x5a2   : > { %4518 = vmatprep.subr.mxu0 %v4365_v58  ;;  %v4413_v58 = vld [vmem:[#allocation36 + $0x2c8] sm:$0xff] }
 0x5a3   : > { %4519 = vmatpush2.msra.mxu0 %v4364_v17  ;;  %4541 = vmatprep.subr.mxu1 %v4413_v58  ;;  %v4444_v58 = vld [vmem:[#allocation36 + $0x3c0] sm:$0xff] }
 0x5a4   : > { %4520 = vmatprep.subr.mxu0 %v4363_v0  ;;  %4542 = vmatpush1.msra.mxu1 %v4412_v18  ;;  %v4410_v0 = vld [vmem:[#allocation36 + $0x2b0] sm:$0xff]  ;;  %v4443_v18 = vld [vmem:[#allocation36 + $0x3b8] sm:$0xff] }
 0x5a5   : > { %4521 = vmatpush2.msra.mxu0 %v4362_v40  ;;  %4543 = vmatprep.subr.mxu1 %v4411_v48 }
 0x5a6   : > { %4522 = vmatprep.subr.mxu0 %v4361_v3  ;;  %4544 = vmatpush1.msra.mxu1 %v4410_v0  ;;  %v4409_v3 = vld [vmem:[#allocation36 + $0x2a8] sm:$0xff]  ;;  %v4440_v0 = vld [vmem:[#allocation36 + $0x3a0] sm:$0xff] }
 0x5a7   : > { %v3822_v63 = vpop.f32.mrf.mxu0  ;;  %4523 = vmatpush2.msra.mxu0 %v4360_v32  ;;  %4545 = vmatprep.subr.mxu1 %v4409_v3  ;;  %v4437_v3 = vld [vmem:[#allocation36 + $0x388] sm:$0xff] }
 0x5a8   : > { %v3823_v26 = vadd.f32 %v3822_v63, %v3752_v53  ;;  %4524 = vmatprep.subr.mxu0 %v4359_v42  ;;  %4546 = vmatpush1.msra.mxu1 %v4408_v13  ;;  %v4407_v42 = vld [vmem:[#allocation36 + $0x298] sm:$0xff]  ;;  %v4406_v53 = vld [vmem:[#allocation36 + $0x290] sm:$0xff]  ;;  %v4436_v13 = vld [vmem:[#allocation36 + $0x380] sm:$0xff] }
 0x5a9   : > { %v3824_v49 = vpop.f32.mrf.mxu0  ;;  %4525 = vmatpush2.msra.mxu0 %v4358_v22  ;;  %4547 = vmatprep.subr.mxu1 %v4407_v42  ;;  %v4433_v42 = vld [vmem:[#allocation36 + $0x368] sm:$0xff] }
 0x5aa   : > { %v3825_v8 = vadd.f32 %v3824_v49, %v3754_v4  ;;  %v3893_v62 = vpop.f32.mrf.mxu1  ;;  %4526 = vmatprep.subr.mxu0 %v4357_v39  ;;  %4548 = vmatpush1.msra.mxu1 %v4406_v53  ;;  %v4405_v39 = vld [vmem:[#allocation36 + $0x288] sm:$0xff]  ;;  %v4404_v4 = vld [vmem:[#allocation36 + $0x280] sm:$0xff]  ;;  %v4403_v49 = vld [vmem:[#allocation36 + $0x278] sm:$0xff] }
 0x5ab   : > { %v3894_v33 = vadd.f32 %v3893_v62, %v3823_v26  ;;  %4527 = vmatpush2.msra.mxu0 %v4356_v6  ;;  %4549 = vmatprep.subr.mxu1 %v4405_v39  ;;  %v4432_v53 = vld [vmem:[#allocation36 + $0x360] sm:$0xff]  ;;  %v4429_v39 = vld [vmem:[#allocation36 + $0x348] sm:$0xff] }
 0x5ac   : > { %v3895_v61 = vpop.f32.mrf.mxu1  ;;  %4550 = vmatpush1.msra.mxu1 %v4404_v4  ;;  %v4428_v4 = vld [vmem:[#allocation36 + $0x340] sm:$0xff] }
 0x5ad   : > { %v4185_v37 = vsel %vm4184_vm1, %v3894_v33, 0.0  ;;  %v3896_v43 = vadd.f32 %v3895_v61, %v3825_v8  ;;  %4551 = vmatprep.subr.mxu1 %v4403_v49  ;;  %v4402_v8 = vld [vmem:[#allocation36 + $0x270] sm:$0xff]  ;;  %v4400_v61 = vld [vmem:[#allocation36 + $0x260] sm:$0xff]  ;;  %v4425_v49 = vld [vmem:[#allocation36 + $0x328] sm:$0xff] }
 0x5ae   : > { %v4186_v20 = vrot.slane %v4185_v37, 4  ;;  %4552 = vmatpush1.msra.mxu1 %v4402_v8  ;;  %v4424_v8 = vld [vmem:[#allocation36 + $0x320] sm:$0xff] }
 0x5af   : > { %v4192_v27 = vsel %vm4184_vm1, %v3896_v43, 0.0 }
 0x5b0   : > { %v4187_v11 = vadd.f32 %v4186_v20, %v4185_v37  ;;  %v4193_v55 = vrot.slane %v4192_v27, 4  ;;  %v4399_v37 = vld [vmem:[#allocation36 + $0x258] sm:$0xff]  ;;  %v4397_v20 = vld [vmem:[#allocation36 + $0x248] sm:$0xff] }
 0x5b2   : > { %v4188_v54 = vrot.slane %v4187_v11, 2  ;;  %v4194_v47 = vadd.f32 %v4193_v55, %v4192_v27  ;;  %v4396_v27 = vld [vmem:[#allocation36 + $0x240] sm:$0xff]  ;;  %v4394_v55 = vld [vmem:[#allocation36 + $0x230] sm:$0xff] }
 0x5b4   : > { %v4189_v9 = vadd.f32 %v4188_v54, %v4187_v11  ;;  %v4195_v30 = vrot.slane %v4194_v47, 2  ;;  %v4395_v11 = vld [vmem:[#allocation36 + $0x238] sm:$0xff]  ;;  %v4393_v54 = vld [vmem:[#allocation36 + $0x228] sm:$0xff] }
 0x5b6   : > { %v4190_v10 = vrot.slane %v4189_v9, 1  ;;  %v4196_v12 = vadd.f32 %v4195_v30, %v4194_v47  ;;  %v7493_v47 = vld [vmem:[#allocation33] sm:$0xf] }
 0x5b7   : > { %v4391_v30 = vld [vmem:[#allocation36 + $0x218] sm:$0xff] }
 0x5b8   : > { %v4191_v1 = vadd.f32 %v4190_v10, %v4189_v9  ;;  %v4197_v59 = vrot.slane %v4196_v12, 1  ;;  %v4392_v9 = vld [vmem:[#allocation36 + $0x220] sm:$0xff]  ;;  %v4390_v10 = vld [vmem:[#allocation36 + $0x210] sm:$0xff] }
 0x5ba   : > { %v4214_v44 = vmul.f32 0.5, %v4191_v1  ;;  %v4198_v60 = vadd.f32 %v4197_v59, %v4196_v12  ;;  %v4274_v12 = vrot.slane %v7493_v47, %v7752_v28  ;;  %v7497_v1 = vld [vmem:[#allocation34] sm:$0xf]  ;;  %v4389_v59 = vld [vmem:[#allocation36 + $0x208] sm:$0xff] }
 0x5bc   : > { %v7483_v2 = vsub.f32 %v3894_v33, %v4214_v44  ;;  %v4215_v19 = vmul.f32 0.5, %v4198_v60  ;;  %v4401_v33 = vld [vmem:[#allocation36 + $0x268] sm:$0xff]  ;;  %v4388_v60 = vld [vmem:[#allocation36 + $0x200] sm:$0xff] }
 0x5bd   : > { %4553 = vmatprep.subr.mxu1 %v4401_v33  ;;  %v4422_v33 = vld [vmem:[#allocation36 + $0x310] sm:$0xff] }
 0x5be   : > { %v4222_v51 = vmul.f32 %v7483_v2, %v7483_v2  ;;  %v7487_v29 = vsub.f32 %v3896_v43, %v4215_v19  ;;  %4554 = vmatpush1.msra.mxu1 %v4400_v61  ;;  %v4398_v43 = vld [vmem:[#allocation36 + $0x250] sm:$0xff]  ;;  %v4421_v61 = vld [vmem:[#allocation36 + $0x308] sm:$0xff] }
 0x5bf   : > { %4555 = vmatprep.subr.mxu1 %v4399_v37  ;;  %v4420_v37 = vld [vmem:[#allocation36 + $0x300] sm:$0xff] }
 0x5c0   : > { %v4226_v46 = vsel %vm4184_vm1, %v4222_v51, 0.0  ;;  %v4223_v56 = vmul.f32 %v7487_v29, %v7487_v29  ;;  %4556 = vmatpush1.msra.mxu1 %v4398_v43  ;;  %v4278_v51 = vrot.slane %v7493_v47, %v7753_v34 }
 0x5c1   : > { %v4227_v16 = vrot.slane %v4226_v46, 4  ;;  %4557 = vmatprep.subr.mxu1 %v4397_v20  ;;  %v3605_v20 = vrot.slane %v7475_v15, %v7754_v21 }
 0x5c2   : > { %v4233_v7 = vsel %vm4184_vm1, %v4223_v56, 0.0  ;;  %4558 = vmatpush1.msra.mxu1 %v4396_v27  ;;  %v4299_v56 = vrot.slane %v7497_v1, %v7752_v28  ;;  %v3609_v27 = vrot.slane %v7475_v15, %v7755_v23 }
 0x5c3   : > { %v4228_v52 = vadd.f32 %v4227_v16, %v4226_v46  ;;  %v4234_v38 = vrot.slane %v4233_v7, 4  ;;  %4559 = vmatprep.subr.mxu1 %v4395_v11 }
 0x5c4   : > { %4560 = vmatpush1.msra.mxu1 %v4394_v55 }
 0x5c5   : > { %v4229_v50 = vrot.slane %v4228_v52, 2  ;;  %v4235_v41 = vadd.f32 %v4234_v38, %v4233_v7  ;;  %4561 = vmatprep.subr.mxu1 %v4393_v54  ;;  %v4303_v7 = vrot.slane %v7497_v1, %v7753_v34  ;;  %v4447_v38 = vld [vmem:[#allocation36 + $0x3d8] sm:$0xff] }
 0x5c6   : > { %4562 = vmatpush1.msra.mxu1 %v4392_v9 }
 0x5c7   : > { %v4230_v17 = vadd.f32 %v4229_v50, %v4228_v52  ;;  %v4236_v36 = vrot.slane %v4235_v41, 2  ;;  %4563 = vmatprep.subr.mxu1 %v4391_v30 }
 0x5c8   : > { %4564 = vmatpush1.msra.mxu1 %v4390_v10 }
 0x5c9   : > { %v4231_v25 = vrot.slane %v4230_v17, 1  ;;  %v4237_v40 = vadd.f32 %v4236_v36, %v4235_v41  ;;  %4565 = vmatprep.subr.mxu1 %v4389_v59  ;;  %v4445_v41 = vld [vmem:[#allocation36 + $0x3c8] sm:$0xff] }
 0x5ca   : > { %4566 = vmatpush1.msra.mxu1 %v4388_v60  ;;  %v4441_v36 = vld [vmem:[#allocation36 + $0x3a8] sm:$0xff] }
 0x5cb   : > { %v4232_v32 = vadd.f32 %v4231_v25, %v4230_v17  ;;  %v4238_v35 = vrot.slane %v4237_v40, 1  ;;  %4567 = vmatprep.subr.mxu1 %v4451_v45  ;;  %v4439_v25 = vld [vmem:[#allocation36 + $0x398] sm:$0xff] }
 0x5cc   : > { %4568 = vmatpush2.msra.mxu1 %v4450_v5 }
 0x5cd   : > { %v4254_v22 = vmul.f32 0.5, %v4232_v32  ;;  %v4239_v63 = vadd.f32 %v4238_v35, %v4237_v40  ;;  %4569 = vmatprep.subr.mxu1 %v4449_v14  ;;  %v4438_v40 = vld [vmem:[#allocation36 + $0x390] sm:$0xff]  ;;  %v4435_v32 = vld [vmem:[#allocation36 + $0x378] sm:$0xff] }
 0x5ce   : > { %v4434_v35 = vld [vmem:[#allocation36 + $0x370] sm:$0xff] }
 0x5cf   : > { %v4258_v26 = vadd.f32 1e-05, %v4254_v22  ;;  %v4255_v6 = vmul.f32 0.5, %v4239_v63  ;;  %v4431_v22 = vld [vmem:[#allocation36 + $0x358] sm:$0xff]  ;;  %v4430_v63 = vld [vmem:[#allocation36 + $0x350] sm:$0xff] }
 0x5d1   : > { %5537 = vrsqrt.f32 %v4258_v26  ;;  %v4259_v62 = vadd.f32 1e-05, %v4255_v6  ;;  %v4427_v26 = vld [vmem:[#allocation36 + $0x338] sm:$0xff]  ;;  %v4426_v6 = vld [vmem:[#allocation36 + $0x330] sm:$0xff] }
 0x5d3   : > { %5539 = vrsqrt.f32 %v4259_v62  ;;  %v4423_v62 = vld [vmem:[#allocation36 + $0x318] sm:$0xff] }
 0x5de   : > { %v5538_v44 = vpop.eup %5537 }
 0x5df   : > { %v4266_v19 = vmul.f32 %v5538_v44, %v7483_v2  ;;  %v4448_v2 = vld [vmem:[#allocation36 + $0x3e0] sm:$0xff] }
 0x5e0   : > { %v5540_v46 = vpop.eup %5539  ;;  %4570 = vmatpush2.msra.mxu1 %v4448_v2 }
 0x5e1   : > { %v4291_v16 = vmul.f32 %v4274_v12, %v4266_v19  ;;  %v4267_v57 = vmul.f32 %v5540_v46, %v7487_v29  ;;  %4571 = vmatprep.subr.mxu1 %v4447_v38  ;;  %v4442_v29 = vld [vmem:[#allocation36 + $0x3b0] sm:$0xff] }
 0x5e2   : > { %4572 = vmatpush2.msra.mxu1 %v4446_v31 }
 0x5e3   : > { %v4292_v52 = vmul.f32 %v4278_v51, %v4267_v57  ;;  %v4316_v24 = vadd.f32 %v4299_v56, %v4291_v16  ;;  %4573 = vmatprep.subr.mxu1 %v4445_v41 }
 0x5e4   : > { %4574 = vmatpush2.msra.mxu1 %v4444_v58 }
 0x5e5   : > { %v4317_v50 = vadd.f32 %v4303_v7, %v4292_v52  ;;  %v4320_v48 = vmax.f32 %v4316_v24, 0.0  ;;  %4575 = vmatprep.subr.mxu1 %v4443_v18 }
 0x5e6   : > { %4576 = vmatpush2.msra.mxu1 %v4442_v29 }
 0x5e7   : > { %v4321_v17 = vmax.f32 %v4317_v50, 0.0  ;;  %4577 = vmatprep.subr.mxu1 %v4441_v36 }
 0x5e8   : > { %4578 = vmatpush2.msra.mxu1 %v4440_v0 }
 0x5e9   : > { %4528 = vmatprep.mubr.f32.mxu0 %v4321_v17  ;;  %4579 = vmatprep.subr.mxu1 %v4439_v25  ;;  %v3964_v43 = vpop.f32.mrf.mxu0 }
 0x5ea   : > { %4529 = vmatmul.mubr.f32.vlgmr.msra.gmra.mxu0 %v4320_v48  ;;  %4580 = vmatpush2.msra.mxu1 %v4438_v40  ;;  %v3965_v54 = vadd.f32 %v3964_v43, %v3605_v20  ;;  %v4286_v20 = vrot.slane %v7493_v47, %v7755_v23 }
 0x5eb   : > { %4581 = vmatprep.subr.mxu1 %v4437_v3  ;;  %v3966_v11 = vpop.f32.mrf.mxu0 }
 0x5ec   : > { %4582 = vmatpush2.msra.mxu1 %v4436_v13  ;;  %v4035_v55 = vpop.f32.mrf.mxu1  ;;  %v3967_v9 = vadd.f32 %v3966_v11, %v3609_v27  ;;  %v4307_v11 = vrot.slane %v7497_v1, %v7754_v21 }
 0x5ed   : > { %4583 = vmatprep.subr.mxu1 %v4435_v32  ;;  %v4036_v10 = vadd.f32 %v4035_v55, %v3965_v54 }
 0x5ee   : > { %4584 = vmatpush2.msra.mxu1 %v4434_v35  ;;  %v4037_v30 = vpop.f32.mrf.mxu1 }
 0x5ef   : > { %4585 = vmatprep.subr.mxu1 %v4433_v42  ;;  %v4038_v59 = vadd.f32 %v4037_v30, %v3967_v9  ;;  %v4311_v9 = vrot.slane %v7497_v1, %v7755_v23  ;;  %v4708_v23 = vld [vmem:[%s7775_s6 + $0xf0] sm:$0xff] }
 0x5f0   : > { %4586 = vmatpush2.msra.mxu1 %v4432_v53  ;;  %v4692_v1 = vld [vmem:[%s7775_s6 + $0x70] sm:$0xff] }
 0x5f1   : > { %4587 = vmatprep.subr.mxu1 %v4431_v22 }
 0x5f2   : > { %4588 = vmatpush2.msra.mxu1 %v4430_v63 }
 0x5f3   : > { %4589 = vmatprep.subr.mxu1 %v4429_v39 }
 0x5f4   : > { %4590 = vmatpush2.msra.mxu1 %v4428_v4 }
 0x5f5   : > { %4591 = vmatprep.subr.mxu1 %v4427_v26 }
 0x5f6   : > { %4592 = vmatpush2.msra.mxu1 %v4426_v6 }
 0x5f7   : > { %4593 = vmatprep.subr.mxu1 %v4425_v49 }
 0x5f8   : > { %4594 = vmatpush2.msra.mxu1 %v4424_v8 }
 0x5f9   : > { %4595 = vmatprep.subr.mxu1 %v4423_v62 }
 0x5fa   : > { %4596 = vmatpush2.msra.mxu1 %v4422_v33 }
 0x5fb   : > { %4597 = vmatprep.subr.mxu1 %v4421_v61  ;;  %v4282_v61 = vrot.slane %v7493_v47, %v7754_v21  ;;  %v4709_v47 = vld [vmem:[%s7775_s6 + $0xf8] sm:$0xff] }
 0x5fc   : > { %4598 = vmatpush2.msra.mxu1 %v4420_v37  ;;  %5209 = vmatprep.subr.mxu0 %v4709_v47  ;;  %v4693_v21 = vld [vmem:[%s7775_s6 + $0x78] sm:$0xff] }
 0x5fd   : > { %5210 = vmatpush3.msra.mxu0 %v4693_v21 }
 0x5fe   : > { %5211 = vmatprep.subr.mxu0 %v4708_v23 }
 0x5ff   : > { %5212 = vmatpush3.msra.mxu0 %v4692_v1 }
 0x62b   : > { %v4106_v12 = vpop.f32.mrf.mxu0 }
 0x62c   : > { %v4107_v44 = vadd.f32 %v4106_v12, %v4036_v10 }
 0x62d   : > { %v4108_v60 = vpop.f32.mrf.mxu0 }
 0x62e   : > { %v4109_v19 = vadd.f32 %v4108_v60, %v4038_v59  ;;  %v4177_v51 = vpop.f32.mrf.mxu1  ;;  %v4707_v60 = vld [vmem:[%s7775_s6 + $0xe8] sm:$0xff] }
 0x62f   : > { %v4178_v45 = vadd.f32 %v4177_v51, %v4107_v44  ;;  %5213 = vmatprep.subr.mxu0 %v4707_v60  ;;  %v4706_v51 = vld [vmem:[%s7775_s6 + $0xe0] sm:$0xff] }
 0x630   : > { %v4179_v46 = vpop.f32.mrf.mxu1 }
 0x631   : > { %v4199_v56 = vsel %vm4184_vm1, %v4178_v45, 0.0  ;;  %v4180_v5 = vadd.f32 %v4179_v46, %v4109_v19  ;;  %v4691_v19 = vld [vmem:[%s7775_s6 + $0x68] sm:$0xff]  ;;  %v4705_v46 = vld [vmem:[%s7775_s6 + $0xd8] sm:$0xff] }
 0x632   : > { %v4200_v16 = vrot.slane %v4199_v56, 4  ;;  %5214 = vmatpush3.msra.mxu0 %v4691_v19 }
 0x633   : > { %v4206_v15 = vsel %vm4184_vm1, %v4180_v5, 0.0  ;;  %5215 = vmatprep.subr.mxu0 %v4706_v51 }
 0x634   : > { %v4201_v57 = vadd.f32 %v4200_v16, %v4199_v56  ;;  %v4207_v7 = vrot.slane %v4206_v15, 4  ;;  %v4689_v56 = vld [vmem:[%s7775_s6 + $0x58] sm:$0xff]  ;;  %v4688_v16 = vld [vmem:[%s7775_s6 + $0x50] sm:$0xff] }
 0x636   : > { %v4202_v14 = vrot.slane %v4201_v57, 2  ;;  %v4208_v2 = vadd.f32 %v4207_v7, %v4206_v15  ;;  %v4703_v15 = vld [vmem:[%s7775_s6 + $0xc8] sm:$0xff]  ;;  %v4702_v7 = vld [vmem:[%s7775_s6 + $0xc0] sm:$0xff] }
 0x638   : > { %v4203_v52 = vadd.f32 %v4202_v14, %v4201_v57  ;;  %v4209_v38 = vrot.slane %v4208_v2, 2  ;;  %v4687_v57 = vld [vmem:[%s7775_s6 + $0x48] sm:$0xff]  ;;  %v4686_v14 = vld [vmem:[%s7775_s6 + $0x40] sm:$0xff] }
 0x63a   : > { %v4204_v24 = vrot.slane %v4203_v52, 1  ;;  %v4210_v31 = vadd.f32 %v4209_v38, %v4208_v2  ;;  %v4701_v2 = vld [vmem:[%s7775_s6 + $0xb8] sm:$0xff]  ;;  %v4700_v38 = vld [vmem:[%s7775_s6 + $0xb0] sm:$0xff] }
 0x63c   : > { %v4205_v50 = vadd.f32 %v4204_v24, %v4203_v52  ;;  %v4211_v41 = vrot.slane %v4210_v31, 1  ;;  %v4685_v52 = vld [vmem:[%s7775_s6 + $0x38] sm:$0xff]  ;;  %v4684_v24 = vld [vmem:[%s7775_s6 + $0x30] sm:$0xff] }
 0x63e   : > { %v4216_v58 = vmul.f32 0.5, %v4205_v50  ;;  %v4212_v18 = vadd.f32 %v4211_v41, %v4210_v31  ;;  %v4699_v31 = vld [vmem:[%s7775_s6 + $0xa8] sm:$0xff]  ;;  %v4698_v41 = vld [vmem:[%s7775_s6 + $0xa0] sm:$0xff] }
 0x63f   : > { %v4683_v50 = vld [vmem:[%s7775_s6 + $0x28] sm:$0xff] }
 0x640   : > { %v4220_v29 = vsub.f32 %v4178_v45, %v4216_v58  ;;  %v4217_v17 = vmul.f32 0.5, %v4212_v18  ;;  %v4690_v45 = vld [vmem:[%s7775_s6 + $0x60] sm:$0xff]  ;;  %v4697_v18 = vld [vmem:[%s7775_s6 + $0x98] sm:$0xff] }
 0x641   : > { %5216 = vmatpush3.msra.mxu0 %v4690_v45  ;;  %v4682_v58 = vld [vmem:[%s7775_s6 + $0x20] sm:$0xff] }
 0x642   : > { %v4224_v36 = vmul.f32 %v4220_v29, %v4220_v29  ;;  %v4221_v48 = vsub.f32 %v4180_v5, %v4217_v17  ;;  %v4704_v5 = vld [vmem:[%s7775_s6 + $0xd0] sm:$0xff]  ;;  %5217 = vmatprep.subr.mxu0 %v4705_v46 }
 0x643   : > { %5218 = vmatpush3.msra.mxu0 %v4689_v56  ;;  %v4696_v17 = vld [vmem:[%s7775_s6 + $0x90] sm:$0xff] }
 0x644   : > { %v4240_v0 = vsel %vm4184_vm1, %v4224_v36, 0.0  ;;  %v4225_v25 = vmul.f32 %v4221_v48, %v4221_v48  ;;  %5219 = vmatprep.subr.mxu0 %v4704_v5  ;;  %v4680_v36 = vld [vmem:[%s7775_s6 + $0x10] sm:$0xff] }
 0x645   : > { %v4241_v40 = vrot.slane %v4240_v0, 4  ;;  %5220 = vmatpush3.msra.mxu0 %v4688_v16 }
 0x646   : > { %v4247_v3 = vsel %vm4184_vm1, %v4225_v25, 0.0  ;;  %5221 = vmatprep.subr.mxu0 %v4703_v15  ;;  %v4694_v25 = vld [vmem:[%s7775_s6 + $0x80] sm:$0xff] }
 0x647   : > { %v4242_v13 = vadd.f32 %v4241_v40, %v4240_v0  ;;  %v4248_v32 = vrot.slane %v4247_v3, 4  ;;  %5222 = vmatpush3.msra.mxu0 %v4687_v57  ;;  %v4679_v0 = vld [vmem:[%s7775_s6 + $0x8] sm:$0xff]  ;;  %v4678_v40 = vld [vmem:[%s7775_s6] sm:$0xff] }
 0x648   : > { %5223 = vmatprep.subr.mxu0 %v4702_v7 }
 0x649   : > { %v4243_v35 = vrot.slane %v4242_v13, 2  ;;  %v4249_v42 = vadd.f32 %v4248_v32, %v4247_v3  ;;  %5224 = vmatpush3.msra.mxu0 %v4686_v14  ;;  %v4452_v3 = vld [vmem:[#allocation37] sm:$0x3] }
 0x64a   : > { %5225 = vmatprep.subr.mxu0 %v4701_v2  ;;  %v4457_v32 = vrot.slane %v4452_v3, %v7752_v28 }
 0x64b   : > { %v4244_v53 = vadd.f32 %v4243_v35, %v4242_v13  ;;  %v4250_v22 = vrot.slane %v4249_v42, 2  ;;  %5226 = vmatpush3.msra.mxu0 %v4685_v52  ;;  %v4461_v35 = vrot.slane %v4452_v3, %v7753_v34 }
 0x64c   : > { %5227 = vmatprep.subr.mxu0 %v4700_v38 }
 0x64d   : > { %v4245_v63 = vrot.slane %v4244_v53, 1  ;;  %v4251_v39 = vadd.f32 %v4250_v22, %v4249_v42  ;;  %5228 = vmatpush3.msra.mxu0 %v4684_v24  ;;  %v4606_v24 = vld [vmem:[#allocation39] sm:$0x3] }
 0x64e   : > { %5229 = vmatprep.subr.mxu0 %v4699_v31  ;;  %v4654_v31 = vrot.slane %v4606_v24, %v7752_v28 }
 0x64f   : > { %v4246_v4 = vadd.f32 %v4245_v63, %v4244_v53  ;;  %v4252_v26 = vrot.slane %v4251_v39, 1  ;;  %5230 = vmatpush3.msra.mxu0 %v4683_v50  ;;  %v4607_v50 = vld [vmem:[#allocation40] sm:$0x3] }
 0x650   : > { %5231 = vmatprep.subr.mxu0 %v4698_v41 }
 0x651   : > { %v4256_v6 = vmul.f32 0.5, %v4246_v4  ;;  %v4253_v49 = vadd.f32 %v4252_v26, %v4251_v39  ;;  %5232 = vmatpush3.msra.mxu0 %v4682_v58 }
 0x652   : > { %5233 = vmatprep.subr.mxu0 %v4697_v18  ;;  %v4658_v18 = vrot.slane %v4606_v24, %v7753_v34 }
 0x653   : > { %v4260_v8 = vadd.f32 1e-05, %v4256_v6  ;;  %v4257_v62 = vmul.f32 0.5, %v4253_v49 }
 0x655   : > { %5541 = vrsqrt.f32 %v4260_v8  ;;  %v4261_v33 = vadd.f32 1e-05, %v4257_v62 }
 0x657   : > { %5543 = vrsqrt.f32 %v4261_v33 }
 0x662   : > { %v5542_v37 = vpop.eup %5541 }
 0x663   : > { %v4268_v43 = vmul.f32 %v5542_v37, %v4220_v29  ;;  %v4681_v29 = vld [vmem:[%s7775_s6 + $0x18] sm:$0xff] }
 0x664   : > { %v5544_v27 = vpop.eup %5543  ;;  %5234 = vmatpush3.msra.mxu0 %v4681_v29 }
 0x665   : > { %v4293_v55 = vmul.f32 %v4282_v61, %v4268_v43  ;;  %v4269_v54 = vmul.f32 %v5544_v27, %v4221_v48  ;;  %v4695_v48 = vld [vmem:[%s7775_s6 + $0x88] sm:$0xff]  ;;  %5235 = vmatprep.subr.mxu0 %v4696_v17  ;;  %v4667_v17 = vrot.slane %v4607_v50, %v7752_v28 }
 0x666   : > { %5236 = vmatpush3.msra.mxu0 %v4680_v36 }
 0x667   : > { %v4294_v30 = vmul.f32 %v4286_v20, %v4269_v54  ;;  %v4318_v10 = vadd.f32 %v4307_v11, %v4293_v55  ;;  %5237 = vmatprep.subr.mxu0 %v4695_v48 }
 0x668   : > { %5238 = vmatpush3.msra.mxu0 %v4679_v0  ;;  %v4671_v0 = vrot.slane %v4607_v50, %v7753_v34 }
 0x669   : > { %v4319_v12 = vadd.f32 %v4311_v9, %v4294_v30  ;;  %v4322_v44 = vmax.f32 %v4318_v10, 0.0  ;;  %5239 = vmatprep.subr.mxu0 %v4694_v25 }
 0x66a   : > { %5240 = vmatpush3.msra.mxu0 %v4678_v40 }
 0x66b   : > { %v4323_v59 = vmax.f32 %v4319_v12, 0.0 }
 0x66d   : > { %4599 = vmatprep.mubr.f32.mxu1 %v4323_v59 }
 0x66e   : > { %4600 = vmatmul.mubr.f32.vlgmr.msra.gmra.mxu1 %v4322_v44 }
 0x6aa   : > { %v4530_v13 = vpop.f32.mrf.mxu0 }
 0x6ab   : > { %v4531_v53 = vadd.f32 %v4530_v13, %v4457_v32 }
 0x6ac   : > { %v4532_v42 = vpop.f32.mrf.mxu0 }
 0x6ad   : > { %v4533_v63 = vadd.f32 %v4532_v42, %v4461_v35  ;;  %v5196_v42 = vld [vmem:[#allocation42] ss:$0 sm:$0xff] }
 0x72e   : > { %v4601_v22 = vpop.f32.mrf.mxu1 }
 0x72f   : > { %v4602_v39 = vadd.f32 %v4601_v22, %v4531_v53 }
 0x730   : > { %v4603_v4 = vpop.f32.mrf.mxu1 }
 0x731   : > { %v4608_v26 = vsel %vm4184_vm1, %v4602_v39, 0.0  ;;  %v4604_v6 = vadd.f32 %v4603_v4, %v4533_v63  ;;  %v5197_v63 = vld [vmem:[#allocation43] ss:$0 sm:$0xff] }
 0x732   : > { %v4609_v49 = vrot.slane %v4608_v26, 4 }
 0x733   : > { %v4615_v8 = vsel %vm4184_vm1, %v4604_v6, 0.0 }
 0x734   : > { %v4610_v62 = vadd.f32 %v4609_v49, %v4608_v26  ;;  %v4616_v33 = vrot.slane %v4615_v8, 4 }
 0x736   : > { %v4611_v61 = vrot.slane %v4610_v62, 2  ;;  %v4617_v37 = vadd.f32 %v4616_v33, %v4615_v8 }
 0x738   : > { %v4612_v43 = vadd.f32 %v4611_v61, %v4610_v62  ;;  %v4618_v20 = vrot.slane %v4617_v37, 2 }
 0x73a   : > { %v4613_v27 = vrot.slane %v4612_v43, 1  ;;  %v4619_v11 = vadd.f32 %v4618_v20, %v4617_v37 }
 0x73c   : > { %v4614_v55 = vadd.f32 %v4613_v27, %v4612_v43  ;;  %v4620_v54 = vrot.slane %v4619_v11, 1 }
 0x73e   : > { %v4622_v9 = vmul.f32 0.5, %v4614_v55  ;;  %v4621_v30 = vadd.f32 %v4620_v54, %v4619_v11 }
 0x740   : > { %v4624_v10 = vsub.f32 %v4602_v39, %v4622_v9  ;;  %v4623_v12 = vmul.f32 0.5, %v4621_v30 }
 0x742   : > { %v4626_v59 = vmul.f32 %v4624_v10, %v4624_v10  ;;  %v4625_v44 = vsub.f32 %v4604_v6, %v4623_v12 }
 0x744   : > { %v4628_v47 = vsel %vm4184_vm1, %v4626_v59, 0.0  ;;  %v4627_v21 = vmul.f32 %v4625_v44, %v4625_v44 }
 0x745   : > { %v4629_v23 = vrot.slane %v4628_v47, 4 }
 0x746   : > { %v4635_v1 = vsel %vm4184_vm1, %v4627_v21, 0.0 }
 0x747   : > { %v4630_v60 = vadd.f32 %v4629_v23, %v4628_v47  ;;  %v4636_v19 = vrot.slane %v4635_v1, 4 }
 0x749   : > { %v4631_v51 = vrot.slane %v4630_v60, 2  ;;  %v4637_v45 = vadd.f32 %v4636_v19, %v4635_v1 }
 0x74b   : > { %v4632_v46 = vadd.f32 %v4631_v51, %v4630_v60  ;;  %v4638_v56 = vrot.slane %v4637_v45, 2 }
 0x74d   : > { %v4633_v5 = vrot.slane %v4632_v46, 1  ;;  %v4639_v16 = vadd.f32 %v4638_v56, %v4637_v45 }
 0x74f   : > { %v4634_v15 = vadd.f32 %v4633_v5, %v4632_v46  ;;  %v4640_v57 = vrot.slane %v4639_v16, 1 }
 0x751   : > { %v4642_v7 = vmul.f32 0.5, %v4634_v15  ;;  %v4641_v14 = vadd.f32 %v4640_v57, %v4639_v16 }
 0x753   : > { %v4644_v2 = vadd.f32 1e-05, %v4642_v7  ;;  %v4643_v52 = vmul.f32 0.5, %v4641_v14 }
 0x755   : > { %5545 = vrsqrt.f32 %v4644_v2  ;;  %v4645_v38 = vadd.f32 1e-05, %v4643_v52 }
 0x757   : > { %5547 = vrsqrt.f32 %v4645_v38 }
 0x762   : > { %v5546_v41 = vpop.eup %5545 }
 0x763   : > { %v4648_v58 = vmul.f32 %v5546_v41, %v4624_v10 }
 0x764   : > { %v5548_v29 = vpop.eup %5547 }
 0x765   : > { %v4661_v36 = vmul.f32 %v4654_v31, %v4648_v58  ;;  %v4649_v48 = vmul.f32 %v5548_v29, %v4625_v44 }
 0x767   : > { %v4662_v25 = vmul.f32 %v4658_v18, %v4649_v48  ;;  %v4674_v40 = vadd.f32 %v4667_v17, %v4661_v36 }
 0x769   : > { %v4675_v3 = vadd.f32 %v4671_v0, %v4662_v25  ;;  %v4676_v32 = vmax.f32 %v4674_v40, 0.0 }
 0x76b   : > { %v4677_v13 = vmax.f32 %v4675_v3, 0.0 }
 0x76d   : > { %4781 = vmatprep.mubr.f32.mxu0 %v4677_v13 }
 0x76e   : > { %4782 = vmatmul.mubr.f32.vlgmr.msra.gmra.mxu0 %v4676_v32 }
 0x82e   : > { %v5241_v35 = vpop.f32.mrf.mxu0 }
 0x830   : > { %v5242_v53 = vpop.f32.mrf.mxu0 }
 0x831   : > { %v5243_v22 = vadd.f32 %v5242_v53, %v5241_v35 }
 0x833   : > { %v4784_v39 = vadd.f32 %v5243_v22, %v5196_v42 }
 0x835   : > { %v4794_v4 = vadd.f32 %v5197_v63, %v4784_v39 }
 0x837   : > { %4796 = vst.msk [vmem:[#allocation45] sm:$0x3] %vm4795_vm2, %v4794_v4 }
 0x838 PF: > { %s7776_s25 = sld [smem:[#allocation59_spill]]  ;;  %s6256_s0 = smov [#allocation45]  }
 0x839   : > { %s4804_s8 = sshll.u32 %s6256_s0, 4  ;;  %s4805_s8 = int_to_ptr.vmem [resolvable:$true] %s4804_s8 }
 0x83a   : > { %s6121_s2 = scalar_lea.vmem %s4805_s8, 32  ;;  %p6128_p9 = scmp.lt.s32.totalorder %s4805_s8, %s4805_s8 }
 0x83b   : > { %p6122_p4 = scmp.ne.s32.totalorder %s4805_s8, %s6121_s2  ;;  %p6129_p10 = scmp.lt.s32.totalorder %s6121_s2, %s6121_s2 }
 0x83d   : > { %p6130_p3 = por %p6129_p10, %p6128_p9 }
 0x83e   : > { %s7777_s10 = sadd.s32 4294967295, %s7776_s25  }
 0x83f   : > { %p7631_p1 = scmp.eq.s32.totalorder %s7777_s10, 2 }
 0x841   : > { %p6123_p7 = pnand %p6122_p4, %p7631_p1 }
 0x843   : > { %p6124_p8 = pneg %p6123_p7 }
 0x845   : > { %p6131_p11 = pnand %p6130_p3, %p6124_p8 }
 0x847   : > { %6134 = shalt.err (!%p6131_p11)
}
 0x848   : > { %s7779_s27 = sld [smem:[#allocation81_spill]] }
 0x84e   : > { %5345 = dma.vmem_to_hbm [thread:$0]  (%p7631_p1), %s4805_s8, 32, %s7779_s27, [#allocation12]  }
 0x84f   : > { %6206 = dma.done.wait (%p7631_p1), [#allocation12], 32  }
 0x850   : > { %6208 = vsyncadd (%p7631_p1), [#allocation12], 4294967264 }
 0x851 PF: > { %s7780_s1 = sld [smem:[#allocation59_spill]]  ;;  %s7781_s5 = smov %s6215_s26 }
 0x852   : > { %s7782_s26 = smov %s7784_s21 }
 0x857   : > { %s47_s27 = sadd.s32 1, %s7780_s1  }
 0x858   : > { %p44_p12 = scmp.ge.s32.totalorder %s47_s27, 5  }
 0x85a   :  { %46 = sbr.rel (!%p44_p12) target bundleno = 28 (0x1c), region = 258 }
 0x85f   :  { %4817 = vsyncpa [#allocation11], 1 }
 0x860   :  { %4819 = vsyncpa [#allocation11 + $0x1], 1 }
 0x861   :  { %4820 = vsyncpa [#allocation14], 1 }
 0x862   :  { %4821 = vsyncpa [#allocation17], 1 }
 0x863   :  { %4822 = vsyncpa [#allocation20], 1 }
 0x864   :  { %4823 = vsyncpa [#allocation23], 1 }
 0x865   :  { %4824 = vsyncpa [#allocation26], 1 }
 0x866   :  { %4825 = vsyncpa [#allocation29], 1 }
 0x867   :  { %4826 = vsyncpa [#allocation32], 1 }
 0x868   :  { %4827 = vsyncpa [#allocation35], 1 }
 0x869   :  { %4828 = vsyncpa [#allocation38], 1 }
 0x86a   :  { %4829 = vsyncpa [#allocation41], 1 }
 0x86b   :  { %4830 = vsyncpa [#allocation44], 1 }
 0x86c   :  { %4831 = vsyncpa [#allocation12], 1 }
 0x86d   :  { %4833 = vsyncpa [#allocation12 + $0x1], 1 }

</bundles_post_ra>
